<compile_context>
chip_gen: v6e
topology: v6e:2x2x1
jax: 0.10.0
libtpu: 0.0.40
codegen_flags: <defaults>
</compile_context>

<pallas_src>
import functools

import jax
import jax.numpy as jnp
import numpy as np
from jax.experimental import pallas as pl
from jax.experimental.pallas import tpu as pltpu

_VMEM_LIMIT = 32 * 1024 * 1024  # safe on v5e/v6e/v7x; raises v5e's 16 MiB default


# ----------------------------------------------------------------------------
# Kernel 1: 3x3 conv (stride 1, input pre-padded by 1) for one image as a
# single im2col MXU matmul, fused with the per-channel batch-statistics
# partial sums needed by training-mode BatchNorm.
# ----------------------------------------------------------------------------
def _conv3x3_stats_kernel(xpad_ref, w_ref, y_ref, psum_ref, psumsq_ref, *, H, W):
    # xpad_ref: (1, H+2, W+2, Cin) bf16
    # w_ref:    (9*Cin, Cout)      bf16, rows ordered (ky, kx, cin)
    # y_ref:    (1, H*W, Cout)     f32   (no conv bias: cancelled by BN)
    # psum_ref / psumsq_ref: (1, 1, Cout) f32 per-image channel sums
    Cin = xpad_ref.shape[3]
    cols = []
    for dy in range(3):
        for dx in range(3):
            cols.append(xpad_ref[0, dy:dy + H, dx:dx + W, :].reshape(H * W, Cin))
    patch = jnp.concatenate(cols, axis=-1)                      # (H*W, 9*Cin)
    acc = jnp.dot(patch, w_ref[...], preferred_element_type=jnp.float32)
    y_ref[0] = acc
    psum_ref[...] = jnp.sum(acc, axis=0).reshape(1, 1, -1)
    psumsq_ref[...] = jnp.sum(acc * acc, axis=0).reshape(1, 1, -1)


def conv3x3_with_stats(x_nhwc, w_hwio):
    """3x3 conv, stride 1, padding 1, bf16 MXU operands, f32 accumulation.

    Returns (y, psum, psumsq):
      y:      (N, H*W, Cout) f32 conv output (bias-free)
      psum:   (N, 1, Cout)   per-image channel sums of y
      psumsq: (N, 1, Cout)   per-image channel sums of y*y
    """
    N, H, W, Cin = x_nhwc.shape
    Cout = w_hwio.shape[3]
    HW = H * W

    xpad = jnp.pad(x_nhwc.astype(jnp.bfloat16), ((0, 0), (1, 1), (1, 1), (0, 0)))
    w_flat = w_hwio.reshape(9 * Cin, Cout).astype(jnp.bfloat16)

    kern = functools.partial(_conv3x3_stats_kernel, H=H, W=W)
    flops = 2 * N * HW * 9 * Cin * Cout + 3 * N * HW * Cout
    bytes_accessed = (N * (H + 2) * (W + 2) * Cin * 2      # bf16 padded input
                      + 9 * Cin * Cout * 2                 # bf16 weights
                      + N * HW * Cout * 4                  # f32 output
                      + 2 * N * Cout * 4)                  # stats

    return pl.pallas_call(
        kern,
        out_shape=(
            jax.ShapeDtypeStruct((N, HW, Cout), jnp.float32),
            jax.ShapeDtypeStruct((N, 1, Cout), jnp.float32),
            jax.ShapeDtypeStruct((N, 1, Cout), jnp.float32),
        ),
        grid=(N,),
        in_specs=[
            pl.BlockSpec((1, H + 2, W + 2, Cin), lambda n: (n, 0, 0, 0)),
            pl.BlockSpec((9 * Cin, Cout), lambda n: (0, 0)),
        ],
        out_specs=(
            pl.BlockSpec((1, HW, Cout), lambda n: (n, 0, 0)),
            pl.BlockSpec((1, 1, Cout), lambda n: (n, 0, 0)),
            pl.BlockSpec((1, 1, Cout), lambda n: (n, 0, 0)),
        ),
        compiler_params=pltpu.CompilerParams(
            dimension_semantics=("parallel",),
            vmem_limit_bytes=_VMEM_LIMIT),
        cost_estimate=pl.CostEstimate(
            flops=flops, transcendentals=0, bytes_accessed=bytes_accessed),
    )(xpad, w_flat)


# ----------------------------------------------------------------------------
# Kernel 2a: fused BN affine + ReLU (no residual) -> bf16 activation.
# Kernel 2b: fused BN affine + residual add + ReLU -> f32 output.
# Both operate on (N, H*W, C) with grid over (batch, spatial row tiles).
# ----------------------------------------------------------------------------
def _bn_relu_kernel(y_ref, scale_ref, bias_ref, h_ref):
    y = y_ref[0]                                   # (T, C) f32
    h = jnp.maximum(y * scale_ref[0] + bias_ref[0], 0.0)
    h_ref[0] = h.astype(h_ref.dtype)


def _bn_add_relu_kernel(y_ref, scale_ref, bias_ref, res_ref, out_ref):
    y = y_ref[0]                                   # (T, C) f32
    out = jnp.maximum(y * scale_ref[0] + bias_ref[0] + res_ref[0], 0.0)
    out_ref[0] = out.astype(out_ref.dtype)


def _pick_hw_tile(hw, max_rows=4096):
    """Largest spatial row tile dividing hw (multiple of 8, or the full extent)."""
    if hw <= max_rows:
        return hw
    for t in range(max_rows - max_rows % 8, 7, -8):
        if hw % t == 0:
            return t
    return hw


def _elementwise_call(kernel, inputs_flat, scale, bias, out_dtype, extra_flops=0):
    y = inputs_flat[0]
    N, HW, C = y.shape
    T = _pick_hw_tile(HW)
    grid = (N, HW // T)

    tensor_spec = pl.BlockSpec((1, T, C), lambda n, t: (n, t, 0))
    vec_spec = pl.BlockSpec((1, C), lambda n, t: (0, 0))
    in_specs = [tensor_spec, vec_spec, vec_spec] + [tensor_spec] * (len(inputs_flat) - 1)

    bytes_accessed = sum(int(np.prod(a.shape)) * a.dtype.itemsize for a in inputs_flat)
    bytes_accessed += 2 * C * 4 + N * HW * C * jnp.dtype(out_dtype).itemsize
    flops = (3 + extra_flops) * N * HW * C

    return pl.pallas_call(
        kernel,
        out_shape=jax.ShapeDtypeStruct((N, HW, C), out_dtype),
        grid=grid,
        in_specs=in_specs,
        out_specs=tensor_spec,
        compiler_params=pltpu.CompilerParams(
            dimension_semantics=("parallel", "parallel"),
            vmem_limit_bytes=_VMEM_LIMIT),
        cost_estimate=pl.CostEstimate(
            flops=flops, transcendentals=0, bytes_accessed=bytes_accessed),
    )(inputs_flat[0], scale.reshape(1, C), bias.reshape(1, C), *inputs_flat[1:])


def bn_relu(y_flat, scale, bias):
    return _elementwise_call(_bn_relu_kernel, (y_flat,), scale, bias, jnp.bfloat16)


def bn_add_relu(y_flat, scale, bias, res_flat):
    return _elementwise_call(_bn_add_relu_kernel, (y_flat, res_flat), scale, bias,
                             jnp.float32, extra_flops=1)


# ----------------------------------------------------------------------------
# Glue: fold batch statistics (from the conv kernel's partial sums) into a
# per-channel scale/bias.  Training-mode BN: biased variance, as PyTorch.
# ----------------------------------------------------------------------------
def fold_bn_stats(psum, psumsq, count, gamma, beta, eps=1e-5):
    s = jnp.sum(psum, axis=(0, 1))
    ss = jnp.sum(psumsq, axis=(0, 1))
    mean = s / count
    var = jnp.maximum(ss / count - mean * mean, 0.0)
    scale = gamma * jax.lax.rsqrt(var + eps)
    bias = beta - mean * scale
    return scale, bias


def bottleneck_block2d_s(x_nchw, params):
    """Forward pass of Bottleneck_block2D_s (stride=1, ds_layer=None)."""
    x = jnp.transpose(x_nchw, (0, 2, 3, 1)).astype(jnp.float32)  # NCHW -> NHWC
    N, H, W, C = x.shape
    HW = H * W
    x_flat = x.reshape(N, HW, C)                                 # residual (x.clone())

    # conv1 (+ fused batch stats) -> BN1 -> ReLU    (conv bias cancels under BN)
    y1, s1, ss1 = conv3x3_with_stats(x, params["w1"])
    scale1, bias1 = fold_bn_stats(s1, ss1, N * HW, params["g1"], params["beta1"])
    h = bn_relu(y1, scale1, bias1)                               # bf16, (N, HW, Cmid)

    # conv2 (+ fused batch stats) -> BN2 -> + residual -> ReLU
    Cmid = params["w1"].shape[3]
    y2, s2, ss2 = conv3x3_with_stats(h.reshape(N, H, W, Cmid), params["w2"])
    scale2, bias2 = fold_bn_stats(s2, ss2, N * HW, params["g2"], params["beta2"])
    out_flat = bn_add_relu(y2, scale2, bias2, x_flat)            # f32, (N, HW, C)

    out = out_flat.reshape(N, H, W, C)
    return jnp.transpose(out, (0, 3, 1, 2))                      # NHWC -> NCHW


# ----------------------------------------------------------------------------
# Pure-JAX f32 reference (includes the conv bias and two-pass BN statistics;
# verifies the bias-cancellation and fused-stats refactors numerically).
# ----------------------------------------------------------------------------
def _ref_conv(x_nhwc, w_hwio, b):
    y = jax.lax.conv_general_dilated(
        x_nhwc, w_hwio, window_strides=(1, 1), padding="SAME",
        dimension_numbers=("NHWC", "HWIO", "NHWC"))
    return y + b


def _ref_bn(y, gamma, beta, eps=1e-5):
    mean = y.mean(axis=(0, 1, 2))
    var = ((y - mean) ** 2).mean(axis=(0, 1, 2))
    return (y - mean) / jnp.sqrt(var + eps) * gamma + beta


def reference_forward(x_nchw, params):
    x = jnp.transpose(x_nchw, (0, 2, 3, 1)).astype(jnp.float32)
    h = jax.nn.relu(_ref_bn(_ref_conv(x, params["w1"], params["b1"]),
                            params["g1"], params["beta1"]))
    y = _ref_bn(_ref_conv(h, params["w2"], params["b2"]),
                params["g2"], params["beta2"])
    out = jax.nn.relu(y + x)
    return jnp.transpose(out, (0, 3, 1, 2))


if __name__ == "__main__":
    # Small shapes consistent with the module: residual path (ds_layer=None)
    # requires n_inCh == n_outCh.
    N, C, H, W = 2, 4, 16, 16

    key = jax.random.PRNGKey(0)
    ks = jax.random.split(key, 7)
    params = {
        # conv weights stored HWIO; equivalent to PyTorch OIHW transposed (2,3,1,0).
        "w1": 0.1 * jax.random.normal(ks[0], (3, 3, C, C), jnp.float32),
        "b1": 0.1 * jax.random.normal(ks[1], (C,), jnp.float32),
        "w2": 0.1 * jax.random.normal(ks[2], (3, 3, C, C), jnp.float32),
        "b2": 0.1 * jax.random.normal(ks[3], (C,), jnp.float32),
        "g1": 1.0 + 0.1 * jax.random.normal(ks[4], (C,), jnp.float32),
        "beta1": 0.1 * jax.random.normal(ks[5], (C,), jnp.float32),
        "g2": jnp.ones((C,), jnp.float32),
        "beta2": jnp.zeros((C,), jnp.float32),
    }

    x = jax.random.normal(ks[6], (N, C, H, W), jnp.float32)

    fwd = jax.jit(bottleneck_block2d_s)
    ref_fwd = jax.jit(reference_forward)

    out = jax.block_until_ready(fwd(x, params))
    ref = jax.block_until_ready(ref_fwd(x, params))

    # bf16 MXU operands + bf16 intermediate activation => looser tolerance than
    # the all-f32 reference (anticipated in the perf review).
    np.testing.assert_allclose(np.asarray(out), np.asarray(ref),
                               rtol=3e-2, atol=3e-2)
    assert out.shape == (N, C, H, W)
    print("KERNEL_OK")
</pallas_src>

<mosaic_0001>
module attributes {stable_mosaic.version = 11 : i64} {
  func.func @_bn_add_relu_kernel(%arg0: i32, %arg1: i32, %arg2: memref<1x256x4xf32, #tpu.memory_space<vmem>>, %arg3: memref<1x4xf32, #tpu.memory_space<vmem>>, %arg4: memref<1x4xf32, #tpu.memory_space<vmem>>, %arg5: memref<1x256x4xf32, #tpu.memory_space<vmem>>, %arg6: memref<1x256x4xf32, #tpu.memory_space<vmem>>) attributes {dimension_semantics = [#tpu.dimension_semantics<parallel>, #tpu.dimension_semantics<parallel>], iteration_bounds = array<i64: 2, 1>, scalar_prefetch = 0 : i64, scratch_operands = 0 : i64, tpu.core_type = #tpu.core_type<tc>, window_params = [{transform_indices = @transform_0, window_bounds = array<i64: 1, 256, 4>}, {pipeline_mode = #tpu.pipeline_mode<synchronous>, transform_indices = @transform_1, window_bounds = array<i64: 1, 4>}, {pipeline_mode = #tpu.pipeline_mode<synchronous>, transform_indices = @transform_2, window_bounds = array<i64: 1, 4>}, {transform_indices = @transform_3, window_bounds = array<i64: 1, 256, 4>}, {transform_indices = @transform_4, window_bounds = array<i64: 1, 256, 4>}]} {
    %c0 = arith.constant 0 : index
    %c0_0 = arith.constant 0 : index
    %c0_1 = arith.constant 0 : index
    %0 = vector.load %arg2[%c0, %c0_0, %c0_1] : memref<1x256x4xf32, #tpu.memory_space<vmem>>, vector<1x256x4xf32>
    %1 = vector.shape_cast %0 : vector<1x256x4xf32> to vector<256x4xf32>
    %c0_2 = arith.constant 0 : index
    %c0_3 = arith.constant 0 : index
    %2 = vector.load %arg3[%c0_2, %c0_3] : memref<1x4xf32, #tpu.memory_space<vmem>>, vector<1x4xf32>
    %3 = vector.shape_cast %2 : vector<1x4xf32> to vector<4xf32>
    %4 = vector.shape_cast %3 : vector<4xf32> to vector<1x4xf32>
    %5 = vector.broadcast %4 : vector<1x4xf32> to vector<256x4xf32>
    %6 = arith.mulf %1, %5 : vector<256x4xf32>
    %c0_4 = arith.constant 0 : index
    %c0_5 = arith.constant 0 : index
    %7 = vector.load %arg4[%c0_4, %c0_5] : memref<1x4xf32, #tpu.memory_space<vmem>>, vector<1x4xf32>
    %8 = vector.shape_cast %7 : vector<1x4xf32> to vector<4xf32>
    %9 = vector.shape_cast %8 : vector<4xf32> to vector<1x4xf32>
    %10 = vector.broadcast %9 : vector<1x4xf32> to vector<256x4xf32>
    %11 = arith.addf %6, %10 : vector<256x4xf32>
    %c0_6 = arith.constant 0 : index
    %c0_7 = arith.constant 0 : index
    %c0_8 = arith.constant 0 : index
    %12 = vector.load %arg5[%c0_6, %c0_7, %c0_8] : memref<1x256x4xf32, #tpu.memory_space<vmem>>, vector<1x256x4xf32>
    %13 = vector.shape_cast %12 : vector<1x256x4xf32> to vector<256x4xf32>
    %14 = arith.addf %11, %13 : vector<256x4xf32>
    %cst = arith.constant 0.000000e+00 : f32
    %15 = vector.broadcast %cst : f32 to vector<256x4xf32>
    %16 = arith.maximumf %14, %15 : vector<256x4xf32>
    %c0_9 = arith.constant 0 : index
    %c0_10 = arith.constant 0 : index
    %c0_11 = arith.constant 0 : index
    %17 = vector.load %arg6[%c0_9, %c0_10, %c0_11] : memref<1x256x4xf32, #tpu.memory_space<vmem>>, vector<1x256x4xf32>
    %18 = vector.shape_cast %17 : vector<1x256x4xf32> to vector<256x4xf32>
    %19 = vector.shape_cast %16 : vector<256x4xf32> to vector<1x256x4xf32>
    tpu.vector_store %arg6[%c0_9, %c0_10, %c0_11], %19 {strides = array<i32>} : memref<1x256x4xf32, #tpu.memory_space<vmem>>, vector<1x256x4xf32>,
    return
  }
  func.func @transform_0(%arg0: i32, %arg1: i32) -> (i32, i32, i32) {
    %c0_i32 = arith.constant 0 : i32
    %c0_i32_0 = arith.constant 0 : i32
    return %arg0, %arg1, %c0_i32 : i32, i32, i32
  }
  func.func @transform_1(%arg0: i32, %arg1: i32) -> (i32, i32) {
    %c0_i32 = arith.constant 0 : i32
    %c0_i32_0 = arith.constant 0 : i32
    %c0_i32_1 = arith.constant 0 : i32
    return %c0_i32, %c0_i32_0 : i32, i32
  }
  func.func @transform_2(%arg0: i32, %arg1: i32) -> (i32, i32) {
    %c0_i32 = arith.constant 0 : i32
    %c0_i32_0 = arith.constant 0 : i32
    %c0_i32_1 = arith.constant 0 : i32
    return %c0_i32, %c0_i32_0 : i32, i32
  }
  func.func @transform_3(%arg0: i32, %arg1: i32) -> (i32, i32, i32) {
    %c0_i32 = arith.constant 0 : i32
    %c0_i32_0 = arith.constant 0 : i32
    return %arg0, %arg1, %c0_i32 : i32, i32, i32
  }
  func.func @transform_4(%arg0: i32, %arg1: i32) -> (i32, i32, i32) {
    %c0_i32 = arith.constant 0 : i32
    %c0_i32_0 = arith.constant 0 : i32
    return %arg0, %arg1, %c0_i32 : i32, i32, i32
  }
}

module attributes {stable_mosaic.version = 11 : i64} {
  func.func @_conv3x3_stats_kernel(%arg0: i32, %arg1: memref<1x18x18x4xbf16, #tpu.memory_space<vmem>>, %arg2: memref<36x4xbf16, #tpu.memory_space<vmem>>, %arg3: memref<1x256x4xf32, #tpu.memory_space<vmem>>, %arg4: memref<1x1x4xf32, #tpu.memory_space<vmem>>, %arg5: memref<1x1x4xf32, #tpu.memory_space<vmem>>) attributes {dimension_semantics = [#tpu.dimension_semantics<parallel>], iteration_bounds = array<i64: 2>, scalar_prefetch = 0 : i64, scratch_operands = 0 : i64, tpu.core_type = #tpu.core_type<tc>, window_params = [{transform_indices = @transform_0, window_bounds = array<i64: 1, 18, 18, 4>}, {pipeline_mode = #tpu.pipeline_mode<synchronous>, transform_indices = @transform_1, window_bounds = array<i64: 36, 4>}, {transform_indices = @transform_2, window_bounds = array<i64: 1, 256, 4>}, {transform_indices = @transform_3, window_bounds = array<i64: 1, 1, 4>}, {transform_indices = @transform_4, window_bounds = array<i64: 1, 1, 4>}]} {
    %c0 = arith.constant 0 : index
    %c0_0 = arith.constant 0 : index
    %c0_1 = arith.constant 0 : index
    %c0_2 = arith.constant 0 : index
    %0 = vector.load %arg1[%c0, %c0_0, %c0_1, %c0_2] : memref<1x18x18x4xbf16, #tpu.memory_space<vmem>>, vector<1x16x16x4xbf16>
    %1 = vector.shape_cast %0 : vector<1x16x16x4xbf16> to vector<16x16x4xbf16>
    %2 = vector.shape_cast %1 : vector<16x16x4xbf16> to vector<256x4xbf16>
    %c0_3 = arith.constant 0 : index
    %c0_4 = arith.constant 0 : index
    %c1 = arith.constant 1 : index
    %c0_5 = arith.constant 0 : index
    %3 = vector.load %arg1[%c0_3, %c0_4, %c1, %c0_5] : memref<1x18x18x4xbf16, #tpu.memory_space<vmem>>, vector<1x16x16x4xbf16>
    %4 = vector.shape_cast %3 : vector<1x16x16x4xbf16> to vector<16x16x4xbf16>
    %5 = vector.shape_cast %4 : vector<16x16x4xbf16> to vector<256x4xbf16>
    %c0_6 = arith.constant 0 : index
    %c0_7 = arith.constant 0 : index
    %c2 = arith.constant 2 : index
    %c0_8 = arith.constant 0 : index
    %6 = vector.load %arg1[%c0_6, %c0_7, %c2, %c0_8] : memref<1x18x18x4xbf16, #tpu.memory_space<vmem>>, vector<1x16x16x4xbf16>
    %7 = vector.shape_cast %6 : vector<1x16x16x4xbf16> to vector<16x16x4xbf16>
    %8 = vector.shape_cast %7 : vector<16x16x4xbf16> to vector<256x4xbf16>
    %c0_9 = arith.constant 0 : index
    %c1_10 = arith.constant 1 : index
    %c0_11 = arith.constant 0 : index
    %c0_12 = arith.constant 0 : index
    %9 = vector.load %arg1[%c0_9, %c1_10, %c0_11, %c0_12] : memref<1x18x18x4xbf16, #tpu.memory_space<vmem>>, vector<1x16x16x4xbf16>
    %10 = vector.shape_cast %9 : vector<1x16x16x4xbf16> to vector<16x16x4xbf16>
    %11 = vector.shape_cast %10 : vector<16x16x4xbf16> to vector<256x4xbf16>
    %c0_13 = arith.constant 0 : index
    %c1_14 = arith.constant 1 : index
    %c1_15 = arith.constant 1 : index
    %c0_16 = arith.constant 0 : index
    %12 = vector.load %arg1[%c0_13, %c1_14, %c1_15, %c0_16] : memref<1x18x18x4xbf16, #tpu.memory_space<vmem>>, vector<1x16x16x4xbf16>
    %13 = vector.shape_cast %12 : vector<1x16x16x4xbf16> to vector<16x16x4xbf16>
    %14 = vector.shape_cast %13 : vector<16x16x4xbf16> to vector<256x4xbf16>
    %c0_17 = arith.constant 0 : index
    %c1_18 = arith.constant 1 : index
    %c2_19 = arith.constant 2 : index
    %c0_20 = arith.constant 0 : index
    %15 = vector.load %arg1[%c0_17, %c1_18, %c2_19, %c0_20] : memref<1x18x18x4xbf16, #tpu.memory_space<vmem>>, vector<1x16x16x4xbf16>
    %16 = vector.shape_cast %15 : vector<1x16x16x4xbf16> to vector<16x16x4xbf16>
    %17 = vector.shape_cast %16 : vector<16x16x4xbf16> to vector<256x4xbf16>
    %c0_21 = arith.constant 0 : index
    %c2_22 = arith.constant 2 : index
    %c0_23 = arith.constant 0 : index
    %c0_24 = arith.constant 0 : index
    %18 = vector.load %arg1[%c0_21, %c2_22, %c0_23, %c0_24] : memref<1x18x18x4xbf16, #tpu.memory_space<vmem>>, vector<1x16x16x4xbf16>
    %19 = vector.shape_cast %18 : vector<1x16x16x4xbf16> to vector<16x16x4xbf16>
    %20 = vector.shape_cast %19 : vector<16x16x4xbf16> to vector<256x4xbf16>
    %c0_25 = arith.constant 0 : index
    %c2_26 = arith.constant 2 : index
    %c1_27 = arith.constant 1 : index
    %c0_28 = arith.constant 0 : index
    %21 = vector.load %arg1[%c0_25, %c2_26, %c1_27, %c0_28] : memref<1x18x18x4xbf16, #tpu.memory_space<vmem>>, vector<1x16x16x4xbf16>
    %22 = vector.shape_cast %21 : vector<1x16x16x4xbf16> to vector<16x16x4xbf16>
    %23 = vector.shape_cast %22 : vector<16x16x4xbf16> to vector<256x4xbf16>
    %c0_29 = arith.constant 0 : index
    %c2_30 = arith.constant 2 : index
    %c2_31 = arith.constant 2 : index
    %c0_32 = arith.constant 0 : index
    %24 = vector.load %arg1[%c0_29, %c2_30, %c2_31, %c0_32] : memref<1x18x18x4xbf16, #tpu.memory_space<vmem>>, vector<1x16x16x4xbf16>
    %25 = vector.shape_cast %24 : vector<1x16x16x4xbf16> to vector<16x16x4xbf16>
    %26 = vector.shape_cast %25 : vector<16x16x4xbf16> to vector<256x4xbf16>
    %27 = tpu.concatenate %2, %5, %8, %11, %14, %17, %20, %23, %26 in 1 : vector<256x4xbf16>, vector<256x4xbf16>, vector<256x4xbf16>, vector<256x4xbf16>, vector<256x4xbf16>, vector<256x4xbf16>, vector<256x4xbf16>, vector<256x4xbf16>, vector<256x4xbf16> -> vector<256x36xbf16>
    %c0_33 = arith.constant 0 : index
    %c0_34 = arith.constant 0 : index
    %28 = vector.load %arg2[%c0_33, %c0_34] : memref<36x4xbf16, #tpu.memory_space<vmem>>, vector<36x4xbf16>
    %cst = arith.constant dense<0.000000e+00> : vector<256x4xf32>
    %29 = tpu.matmul %27, %28, %cst {dimension_numbers = #tpu.dot_dimension_numbers<[1], [0], [0], [1], [0, 0, 1, 1], [], []>} : vector<256x36xbf16>, vector<36x4xbf16>, vector<256x4xf32> -> vector<256x4xf32>
    %c0_35 = arith.constant 0 : index
    %c0_36 = arith.constant 0 : index
    %c0_37 = arith.constant 0 : index
    %30 = vector.load %arg3[%c0_35, %c0_36, %c0_37] : memref<1x256x4xf32, #tpu.memory_space<vmem>>, vector<1x256x4xf32>
    %31 = vector.shape_cast %30 : vector<1x256x4xf32> to vector<256x4xf32>
    %32 = vector.shape_cast %29 : vector<256x4xf32> to vector<1x256x4xf32>
    tpu.vector_store %arg3[%c0_35, %c0_36, %c0_37], %32 {strides = array<i32>} : memref<1x256x4xf32, #tpu.memory_space<vmem>>, vector<1x256x4xf32>,
    %cst_38 = arith.constant dense<0.000000e+00> : vector<4xf32>
    %33 = vector.multi_reduction <add>, %29, %cst_38 [0] : vector<256x4xf32> to vector<4xf32>
    %34 = vector.shape_cast %33 : vector<4xf32> to vector<1x1x4xf32>
    %c0_39 = arith.constant 0 : index
    %c0_40 = arith.constant 0 : index
    %c0_41 = arith.constant 0 : index
    %35 = vector.load %arg4[%c0_39, %c0_40, %c0_41] : memref<1x1x4xf32, #tpu.memory_space<vmem>>, vector<1x1x4xf32>
    tpu.vector_store %arg4[%c0_39, %c0_40, %c0_41], %34 {strides = array<i32>} : memref<1x1x4xf32, #tpu.memory_space<vmem>>, vector<1x1x4xf32>,
    %36 = arith.mulf %29, %29 : vector<256x4xf32>
    %cst_42 = arith.constant dense<0.000000e+00> : vector<4xf32>
    %37 = vector.multi_reduction <add>, %36, %cst_42 [0] : vector<256x4xf32> to vector<4xf32>
    %38 = vector.shape_cast %37 : vector<4xf32> to vector<1x1x4xf32>
    %c0_43 = arith.constant 0 : index
    %c0_44 = arith.constant 0 : index
    %c0_45 = arith.constant 0 : index
    %39 = vector.load %arg5[%c0_43, %c0_44, %c0_45] : memref<1x1x4xf32, #tpu.memory_space<vmem>>, vector<1x1x4xf32>
    tpu.vector_store %arg5[%c0_43, %c0_44, %c0_45], %38 {strides = array<i32>} : memref<1x1x4xf32, #tpu.memory_space<vmem>>, vector<1x1x4xf32>,
    return
  }
  func.func @transform_0(%arg0: i32) -> (i32, i32, i32, i32) {
    %c0_i32 = arith.constant 0 : i32
    %c0_i32_0 = arith.constant 0 : i32
    %c0_i32_1 = arith.constant 0 : i32
    %c0_i32_2 = arith.constant 0 : i32
    return %arg0, %c0_i32, %c0_i32_0, %c0_i32_1 : i32, i32, i32, i32
  }
  func.func @transform_1(%arg0: i32) -> (i32, i32) {
    %c0_i32 = arith.constant 0 : i32
    %c0_i32_0 = arith.constant 0 : i32
    %c0_i32_1 = arith.constant 0 : i32
    return %c0_i32, %c0_i32_0 : i32, i32
  }
  func.func @transform_2(%arg0: i32) -> (i32, i32, i32) {
    %c0_i32 = arith.constant 0 : i32
    %c0_i32_0 = arith.constant 0 : i32
    %c0_i32_1 = arith.constant 0 : i32
    return %arg0, %c0_i32, %c0_i32_0 : i32, i32, i32
  }
  func.func @transform_3(%arg0: i32) -> (i32, i32, i32) {
    %c0_i32 = arith.constant 0 : i32
    %c0_i32_0 = arith.constant 0 : i32
    %c0_i32_1 = arith.constant 0 : i32
    return %arg0, %c0_i32, %c0_i32_0 : i32, i32, i32
  }
  func.func @transform_4(%arg0: i32) -> (i32, i32, i32) {
    %c0_i32 = arith.constant 0 : i32
    %c0_i32_0 = arith.constant 0 : i32
    %c0_i32_1 = arith.constant 0 : i32
    return %arg0, %c0_i32, %c0_i32_0 : i32, i32, i32
  }
}

module attributes {stable_mosaic.version = 11 : i64} {
  func.func @_bn_relu_kernel(%arg0: i32, %arg1: i32, %arg2: memref<1x256x4xf32, #tpu.memory_space<vmem>>, %arg3: memref<1x4xf32, #tpu.memory_space<vmem>>, %arg4: memref<1x4xf32, #tpu.memory_space<vmem>>, %arg5: memref<1x256x4xbf16, #tpu.memory_space<vmem>>) attributes {dimension_semantics = [#tpu.dimension_semantics<parallel>, #tpu.dimension_semantics<parallel>], iteration_bounds = array<i64: 2, 1>, scalar_prefetch = 0 : i64, scratch_operands = 0 : i64, tpu.core_type = #tpu.core_type<tc>, window_params = [{transform_indices = @transform_0, window_bounds = array<i64: 1, 256, 4>}, {pipeline_mode = #tpu.pipeline_mode<synchronous>, transform_indices = @transform_1, window_bounds = array<i64: 1, 4>}, {pipeline_mode = #tpu.pipeline_mode<synchronous>, transform_indices = @transform_2, window_bounds = array<i64: 1, 4>}, {transform_indices = @transform_3, window_bounds = array<i64: 1, 256, 4>}]} {
    %c0 = arith.constant 0 : index
    %c0_0 = arith.constant 0 : index
    %c0_1 = arith.constant 0 : index
    %0 = vector.load %arg2[%c0, %c0_0, %c0_1] : memref<1x256x4xf32, #tpu.memory_space<vmem>>, vector<1x256x4xf32>
    %1 = vector.shape_cast %0 : vector<1x256x4xf32> to vector<256x4xf32>
    %c0_2 = arith.constant 0 : index
    %c0_3 = arith.constant 0 : index
    %2 = vector.load %arg3[%c0_2, %c0_3] : memref<1x4xf32, #tpu.memory_space<vmem>>, vector<1x4xf32>
    %3 = vector.shape_cast %2 : vector<1x4xf32> to vector<4xf32>
    %4 = vector.shape_cast %3 : vector<4xf32> to vector<1x4xf32>
    %5 = vector.broadcast %4 : vector<1x4xf32> to vector<256x4xf32>
    %6 = arith.mulf %1, %5 : vector<256x4xf32>
    %c0_4 = arith.constant 0 : index
    %c0_5 = arith.constant 0 : index
    %7 = vector.load %arg4[%c0_4, %c0_5] : memref<1x4xf32, #tpu.memory_space<vmem>>, vector<1x4xf32>
    %8 = vector.shape_cast %7 : vector<1x4xf32> to vector<4xf32>
    %9 = vector.shape_cast %8 : vector<4xf32> to vector<1x4xf32>
    %10 = vector.broadcast %9 : vector<1x4xf32> to vector<256x4xf32>
    %11 = arith.addf %6, %10 : vector<256x4xf32>
    %cst = arith.constant 0.000000e+00 : f32
    %12 = vector.broadcast %cst : f32 to vector<256x4xf32>
    %13 = arith.maximumf %11, %12 : vector<256x4xf32>
    %14 = arith.truncf %13 : vector<256x4xf32> to vector<256x4xbf16>
    %c0_6 = arith.constant 0 : index
    %c0_7 = arith.constant 0 : index
    %c0_8 = arith.constant 0 : index
    %15 = vector.load %arg5[%c0_6, %c0_7, %c0_8] : memref<1x256x4xbf16, #tpu.memory_space<vmem>>, vector<1x256x4xbf16>
    %16 = vector.shape_cast %15 : vector<1x256x4xbf16> to vector<256x4xbf16>
    %17 = vector.shape_cast %14 : vector<256x4xbf16> to vector<1x256x4xbf16>
    tpu.vector_store %arg5[%c0_6, %c0_7, %c0_8], %17 {strides = array<i32>} : memref<1x256x4xbf16, #tpu.memory_space<vmem>>, vector<1x256x4xbf16>,
    return
  }
  func.func @transform_0(%arg0: i32, %arg1: i32) -> (i32, i32, i32) {
    %c0_i32 = arith.constant 0 : i32
    %c0_i32_0 = arith.constant 0 : i32
    return %arg0, %arg1, %c0_i32 : i32, i32, i32
  }
  func.func @transform_1(%arg0: i32, %arg1: i32) -> (i32, i32) {
    %c0_i32 = arith.constant 0 : i32
    %c0_i32_0 = arith.constant 0 : i32
    %c0_i32_1 = arith.constant 0 : i32
    return %c0_i32, %c0_i32_0 : i32, i32
  }
  func.func @transform_2(%arg0: i32, %arg1: i32) -> (i32, i32) {
    %c0_i32 = arith.constant 0 : i32
    %c0_i32_0 = arith.constant 0 : i32
    %c0_i32_1 = arith.constant 0 : i32
    return %c0_i32, %c0_i32_0 : i32, i32
  }
  func.func @transform_3(%arg0: i32, %arg1: i32) -> (i32, i32, i32) {
    %c0_i32 = arith.constant 0 : i32
    %c0_i32_0 = arith.constant 0 : i32
    return %arg0, %arg1, %c0_i32 : i32, i32, i32
  }
}

</mosaic_0001>

<bundles_post_ra>
// kernel: bottleneck_block2d_s.7
= control target key start
LH: loop header
LB: loop body
LE: loop exit
PB: predicated region body
PF: predicated region fallthrough
CT: control target
= control target key end

     0   :  { %s708_s15 = smov 0   ;;  %s710_s16 = smov 0   ;;  %s957_s0 = inlined_call_operand.vmem [shape: f32[2,256,4], index: 0, kind: input, shape index: {}]   ;;  %s958_s1 = inlined_call_operand.vmem [shape: f32[1,4], index: 1, kind: input, shape index: {}]   ;;  %s959_s2 = inlined_call_operand.vmem [shape: f32[1,4], index: 2, kind: input, shape index: {}]   ;;  %s960_s3 = inlined_call_operand.vmem [shape: f32[2,256,4], index: 3, kind: input, shape index: {}]   ;;  %s961_s4 = inlined_call_operand.vmem [shape: f32[2,256,4], index: 4, kind: output, shape index: {}]  }
   0x1   :  { %s712_s17 = smov 0  }
   0x2 LB: > { %s26_s18 = sadd.s32 1, %s677_s16  ;;  %p621_p0 = scmp.ge.s32.totalorder %s681_s17, 1  ;;  %s681_s17 = sphi %s712_s17, %s14_s17   ;;  %s677_s16 = sphi %s710_s16, %s963_s16   ;;  %s673_s15 = sphi %s708_s15, %s962_s15  }
   0x3   : > { %p28_p1 = scmp.ge.s32.totalorder %s26_s18, 2  ;;  %p200_p2 = scmp.lt.s32.totalorder %s681_s17, 3 }
   0x5   : > { %s965_s18 = smov (%p28_p1, %s26_s18), 0  ;;  %p201_p3 = pnand %p621_p0, %p200_p2 }
   0x6   : > { %p244_p4 = scmp.lt.s32.totalorder (!%p201_p3), %s673_s15, 1 }
   0x7   : > { %204 = sbr.rel (%p201_p3) target bundleno = 54 (0x36), region = 36 }
   0xc   : > { %s967_s15 = smov (!%p244_p4, %s673_s15), 1  ;;  %v731_v0 = vld [vmem:[%s958_s1] ss:$0 sm:$0xff]  ;;  %vm479_vm0 = vcmask 31744  }
   0xd   : > { %s726_s19 = sshll.u32 %s967_s15, 8  ;;  %v749_v2 = vld [vmem:[%s959_s2] ss:$0 sm:$0xff] }
   0xe   : > { %s737_s24 = scalar_lea.vmem %s957_s0, %s726_s19  ;;  %s743_s27 = scalar_lea.vmem %s960_s3, %s726_s19 }
   0xf   : > { %v273_v1 = vld [vmem:[%s737_s24] sm:$0xff]  ;;  %v274_v3 = vld [vmem:[%s737_s24 + $0x8] sm:$0xff]  ;;  %v275_v7 = vld [vmem:[%s737_s24 + $0x10] sm:$0xff]  ;;  %s779_s6 = scalar_lea.vmem %s961_s4, %s726_s19 }
  0x10   : > { %v312_v4 = vmul.f32 %v731_v0, %v273_v1  ;;  %v383_v5 = vld [vmem:[%s743_s27] sm:$0xff]  ;;  %v313_v6 = vmul.f32 %v731_v0, %v274_v3  ;;  %v384_v8 = vld [vmem:[%s743_s27 + $0x8] sm:$0xff]  ;;  %v314_v9 = vmul.f32 %v731_v0, %v275_v7  ;;  %v276_v10 = vld [vmem:[%s737_s24 + $0x18] sm:$0xff] }
  0x11   : > { %v277_v11 = vld [vmem:[%s737_s24 + $0x20] sm:$0xff]  ;;  %v385_v14 = vld [vmem:[%s743_s27 + $0x10] sm:$0xff]  ;;  %v315_v15 = vmul.f32 %v731_v0, %v276_v10  ;;  %v386_v16 = vld [vmem:[%s743_s27 + $0x18] sm:$0xff] }
  0x12   : > { %v351_v12 = vadd.f32 %v749_v2, %v312_v4  ;;  %v352_v13 = vadd.f32 %v749_v2, %v313_v6  ;;  %v316_v17 = vmul.f32 %v731_v0, %v277_v11  ;;  %v278_v18 = vld [vmem:[%s737_s24 + $0x28] sm:$0xff]  ;;  %v353_v19 = vadd.f32 %v749_v2, %v314_v9  ;;  %v387_v20 = vld [vmem:[%s743_s27 + $0x20] sm:$0xff]  ;;  %v279_v22 = vld [vmem:[%s737_s24 + $0x30] sm:$0xff] }
  0x13   : > { %v317_v21 = vmul.f32 %v731_v0, %v278_v18  ;;  %v280_v23 = vld [vmem:[%s737_s24 + $0x38] sm:$0xff]  ;;  %v354_v26 = vadd.f32 %v749_v2, %v315_v15  ;;  %v388_v28 = vld [vmem:[%s743_s27 + $0x28] sm:$0xff]  ;;  %v318_v31 = vmul.f32 %v731_v0, %v279_v22  ;;  %v281_v33 = vld [vmem:[%s737_s24 + $0x40] sm:$0xff] }
  0x14   : > { %v415_v24 = vadd.f32 %v383_v5, %v351_v12  ;;  %v416_v25 = vadd.f32 %v384_v8, %v352_v13  ;;  %v355_v27 = vadd.f32 %v749_v2, %v316_v17  ;;  %v417_v29 = vadd.f32 %v385_v14, %v353_v19  ;;  %v282_v34 = vld [vmem:[%s737_s24 + $0x48] sm:$0xff]  ;;  %v389_v39 = vld [vmem:[%s743_s27 + $0x30] sm:$0xff]  ;;  %v390_v40 = vld [vmem:[%s743_s27 + $0x38] sm:$0xff] }
  0x15   : > { %v356_v30 = vadd.f32 %v749_v2, %v317_v21  ;;  %v319_v32 = vmul.f32 %v731_v0, %v280_v23  ;;  %v418_v37 = vadd.f32 %v386_v16, %v354_v26  ;;  %v283_v41 = vld [vmem:[%s737_s24 + $0x50] sm:$0xff]  ;;  %v357_v44 = vadd.f32 %v749_v2, %v318_v31  ;;  %v284_v46 = vld [vmem:[%s737_s24 + $0x58] sm:$0xff]  ;;  %v285_v47 = vld [vmem:[%s737_s24 + $0x60] sm:$0xff] }
  0x16   : > { %v447_v35 = vmax.f32 %v415_v24, 0.0  ;;  %v448_v36 = vmax.f32 %v416_v25, 0.0  ;;  %v419_v38 = vadd.f32 %v387_v20, %v355_v27  ;;  %v449_v42 = vmax.f32 %v417_v29, 0.0  ;;  %v286_v52 = vld [vmem:[%s737_s24 + $0x68] sm:$0xff]  ;;  %v391_v56 = vld [vmem:[%s743_s27 + $0x40] sm:$0xff]  ;;  %v393_v61 = vld [vmem:[%s743_s27 + $0x50] sm:$0xff] }
  0x17   : > { %v420_v43 = vadd.f32 %v388_v28, %v356_v30  ;;  %v358_v45 = vadd.f32 %v749_v2, %v319_v32  ;;  %v450_v48 = vmax.f32 %v418_v37, 0.0  ;;  %v320_v50 = vmul.f32 %v731_v0, %v281_v33  ;;  %v392_v57 = vld [vmem:[%s743_s27 + $0x48] sm:$0xff]  ;;  %v287_v1 = vld [vmem:[%s737_s24 + $0x70] sm:$0xff]  ;;  %v288_v3 = vld [vmem:[%s737_s24 + $0x78] sm:$0xff] }
  0x18   : > { %480 = vst.msk [vmem:[%s779_s6] sm:$0xff] %vm479_vm0, %v447_v35  ;;  %481 = vst.msk [vmem:[%s779_s6 + $0x8] sm:$0xff] %vm479_vm0, %v448_v36  ;;  %v451_v49 = vmax.f32 %v419_v38, 0.0  ;;  %v321_v51 = vmul.f32 %v731_v0, %v282_v34  ;;  %v421_v54 = vadd.f32 %v389_v39, %v357_v44  ;;  %v322_v58 = vmul.f32 %v731_v0, %v283_v41  ;;  %v394_v7 = vld [vmem:[%s743_s27 + $0x58] sm:$0xff]  ;;  %v395_v8 = vld [vmem:[%s743_s27 + $0x60] sm:$0xff] }
  0x19   : > { %482 = vst.msk [vmem:[%s779_s6 + $0x10] sm:$0xff] %vm479_vm0, %v449_v42  ;;  %v452_v53 = vmax.f32 %v420_v43, 0.0  ;;  %v422_v55 = vadd.f32 %v390_v40, %v358_v45  ;;  %483 = vst.msk [vmem:[%s779_s6 + $0x18] sm:$0xff] %vm479_vm0, %v450_v48  ;;  %v359_v59 = vadd.f32 %v749_v2, %v320_v50  ;;  %v323_v62 = vmul.f32 %v731_v0, %v284_v46  ;;  %v396_v14 = vld [vmem:[%s743_s27 + $0x68] sm:$0xff]  ;;  %v289_v19 = vld [vmem:[%s737_s24 + $0x80] sm:$0xff] }
  0x1a   : > { %484 = vst.msk [vmem:[%s779_s6 + $0x20] sm:$0xff] %vm479_vm0, %v451_v49  ;;  %v360_v60 = vadd.f32 %v749_v2, %v321_v51  ;;  %v324_v63 = vmul.f32 %v731_v0, %v285_v47  ;;  %v453_v4 = vmax.f32 %v421_v54, 0.0  ;;  %v361_v6 = vadd.f32 %v749_v2, %v322_v58  ;;  %v290_v20 = vld [vmem:[%s737_s24 + $0x88] sm:$0xff]  ;;  %v397_v25 = vld [vmem:[%s743_s27 + $0x70] sm:$0xff]  ;;  %v398_v26 = vld [vmem:[%s743_s27 + $0x78] sm:$0xff] }
  0x1b   : > { %485 = vst.msk [vmem:[%s779_s6 + $0x28] sm:$0xff] %vm479_vm0, %v452_v53  ;;  %v454_v5 = vmax.f32 %v422_v55, 0.0  ;;  %v325_v9 = vmul.f32 %v731_v0, %v286_v52  ;;  %v423_v10 = vadd.f32 %v391_v56, %v359_v59  ;;  %v362_v12 = vadd.f32 %v749_v2, %v323_v62  ;;  %v291_v27 = vld [vmem:[%s737_s24 + $0x90] sm:$0xff]  ;;  %v292_v32 = vld [vmem:[%s737_s24 + $0x98] sm:$0xff]  ;;  %v293_v33 = vld [vmem:[%s737_s24 + $0xa0] sm:$0xff] }
  0x1c   : > { %v424_v11 = vadd.f32 %v392_v57, %v360_v60  ;;  %v363_v13 = vadd.f32 %v749_v2, %v324_v63  ;;  %486 = vst.msk [vmem:[%s779_s6 + $0x30] sm:$0xff] %vm479_vm0, %v453_v4  ;;  %v425_v15 = vadd.f32 %v393_v61, %v361_v6  ;;  %v326_v17 = vmul.f32 %v731_v0, %v287_v1  ;;  %v294_v38 = vld [vmem:[%s737_s24 + $0xa8] sm:$0xff]  ;;  %v399_v42 = vld [vmem:[%s743_s27 + $0x80] sm:$0xff]  ;;  %v401_v47 = vld [vmem:[%s743_s27 + $0x90] sm:$0xff] }
  0x1d   : > { %487 = vst.msk [vmem:[%s779_s6 + $0x38] sm:$0xff] %vm479_vm0, %v454_v5  ;;  %v364_v16 = vadd.f32 %v749_v2, %v325_v9  ;;  %v327_v18 = vmul.f32 %v731_v0, %v288_v3  ;;  %v455_v21 = vmax.f32 %v423_v10, 0.0  ;;  %v426_v23 = vadd.f32 %v394_v7, %v362_v12  ;;  %v400_v43 = vld [vmem:[%s743_s27 + $0x88] sm:$0xff]  ;;  %v295_v50 = vld [vmem:[%s737_s24 + $0xb0] sm:$0xff]  ;;  %v296_v51 = vld [vmem:[%s737_s24 + $0xb8] sm:$0xff] }
  0x1e   : > { %v456_v22 = vmax.f32 %v424_v11, 0.0  ;;  %v427_v24 = vadd.f32 %v395_v8, %v363_v13  ;;  %v457_v28 = vmax.f32 %v425_v15, 0.0  ;;  %v365_v30 = vadd.f32 %v749_v2, %v326_v17  ;;  %v402_v55 = vld [vmem:[%s743_s27 + $0x98] sm:$0xff]  ;;  %v403_v56 = vld [vmem:[%s743_s27 + $0xa0] sm:$0xff]  ;;  %v404_v62 = vld [vmem:[%s743_s27 + $0xa8] sm:$0xff] }
  0x1f   : > { %v428_v29 = vadd.f32 %v396_v14, %v364_v16  ;;  %v366_v31 = vadd.f32 %v749_v2, %v327_v18  ;;  %488 = vst.msk [vmem:[%s779_s6 + $0x40] sm:$0xff] %vm479_vm0, %v455_v21  ;;  %v458_v34 = vmax.f32 %v426_v23, 0.0  ;;  %v328_v36 = vmul.f32 %v731_v0, %v289_v19  ;;  %v297_v5 = vld [vmem:[%s737_s24 + $0xc0] sm:$0xff]  ;;  %v298_v6 = vld [vmem:[%s737_s24 + $0xc8] sm:$0xff]  ;;  %v405_v11 = vld [vmem:[%s743_s27 + $0xb0] sm:$0xff] }
  0x20   : > { %489 = vst.msk [vmem:[%s779_s6 + $0x48] sm:$0xff] %vm479_vm0, %v456_v22  ;;  %v459_v35 = vmax.f32 %v427_v24, 0.0  ;;  %v329_v37 = vmul.f32 %v731_v0, %v290_v20  ;;  %490 = vst.msk [vmem:[%s779_s6 + $0x50] sm:$0xff] %vm479_vm0, %v457_v28  ;;  %v429_v40 = vadd.f32 %v397_v25, %v365_v30  ;;  %v330_v44 = vmul.f32 %v731_v0, %v291_v27  ;;  %v406_v12 = vld [vmem:[%s743_s27 + $0xb8] sm:$0xff]  ;;  %v299_v13 = vld [vmem:[%s737_s24 + $0xd0] sm:$0xff] }
  0x21   : > { %v460_v39 = vmax.f32 %v428_v29, 0.0  ;;  %v430_v41 = vadd.f32 %v398_v26, %v366_v31  ;;  %491 = vst.msk [vmem:[%s779_s6 + $0x58] sm:$0xff] %vm479_vm0, %v458_v34  ;;  %v367_v45 = vadd.f32 %v749_v2, %v328_v36  ;;  %v331_v48 = vmul.f32 %v731_v0, %v292_v32  ;;  %v300_v18 = vld [vmem:[%s737_s24 + $0xd8] sm:$0xff]  ;;  %v301_v19 = vld [vmem:[%s737_s24 + $0xe0] sm:$0xff]  ;;  %v302_v24 = vld [vmem:[%s737_s24 + $0xe8] sm:$0xff] }
  0x22   : > { %492 = vst.msk [vmem:[%s779_s6 + $0x60] sm:$0xff] %vm479_vm0, %v459_v35  ;;  %v368_v46 = vadd.f32 %v749_v2, %v329_v37  ;;  %v332_v49 = vmul.f32 %v731_v0, %v293_v33  ;;  %v461_v52 = vmax.f32 %v429_v40, 0.0  ;;  %v369_v54 = vadd.f32 %v749_v2, %v330_v44  ;;  %v407_v28 = vld [vmem:[%s743_s27 + $0xc0] sm:$0xff]  ;;  %v408_v29 = vld [vmem:[%s743_s27 + $0xc8] sm:$0xff]  ;;  %v409_v33 = vld [vmem:[%s743_s27 + $0xd0] sm:$0xff] }
  0x23   : > { %493 = vst.msk [vmem:[%s779_s6 + $0x68] sm:$0xff] %vm479_vm0, %v460_v39  ;;  %v462_v53 = vmax.f32 %v430_v41, 0.0  ;;  %v333_v57 = vmul.f32 %v731_v0, %v294_v38  ;;  %v431_v58 = vadd.f32 %v399_v42, %v367_v45  ;;  %v370_v60 = vadd.f32 %v749_v2, %v331_v48  ;;  %v303_v36 = vld [vmem:[%s737_s24 + $0xf0] sm:$0xff]  ;;  %v304_v37 = vld [vmem:[%s737_s24 + $0xf8] sm:$0xff]  ;;  %v411_v42 = vld [vmem:[%s743_s27 + $0xe0] sm:$0xff] }
  0x24   : > { %v432_v59 = vadd.f32 %v400_v43, %v368_v46  ;;  %v371_v61 = vadd.f32 %v749_v2, %v332_v49  ;;  %494 = vst.msk [vmem:[%s779_s6 + $0x70] sm:$0xff] %vm479_vm0, %v461_v52  ;;  %v433_v63 = vadd.f32 %v401_v47, %v369_v54  ;;  %v334_v3 = vmul.f32 %v731_v0, %v295_v50  ;;  %v410_v41 = vld [vmem:[%s743_s27 + $0xd8] sm:$0xff]  ;;  %v412_v48 = vld [vmem:[%s743_s27 + $0xe8] sm:$0xff] }
  0x25   : > { %495 = vst.msk [vmem:[%s779_s6 + $0x78] sm:$0xff] %vm479_vm0, %v462_v53  ;;  %v372_v1 = vadd.f32 %v749_v2, %v333_v57  ;;  %v335_v4 = vmul.f32 %v731_v0, %v296_v51  ;;  %v463_v7 = vmax.f32 %v431_v58, 0.0  ;;  %v434_v9 = vadd.f32 %v402_v55, %v370_v60  ;;  %v413_v57 = vld [vmem:[%s743_s27 + $0xf0] sm:$0xff]  ;;  %v414_v58 = vld [vmem:[%s743_s27 + $0xf8] sm:$0xff] }
  0x26   : > { %v464_v8 = vmax.f32 %v432_v59, 0.0  ;;  %v435_v10 = vadd.f32 %v403_v56, %v371_v61  ;;  %v465_v14 = vmax.f32 %v433_v63, 0.0  ;;  %v373_v16 = vadd.f32 %v749_v2, %v334_v3 }
  0x27   : > { %v436_v15 = vadd.f32 %v404_v62, %v372_v1  ;;  %v374_v17 = vadd.f32 %v749_v2, %v335_v4  ;;  %496 = vst.msk [vmem:[%s779_s6 + $0x80] sm:$0xff] %vm479_vm0, %v463_v7  ;;  %v466_v20 = vmax.f32 %v434_v9, 0.0  ;;  %v336_v22 = vmul.f32 %v731_v0, %v297_v5 }
  0x28   : > { %497 = vst.msk [vmem:[%s779_s6 + $0x88] sm:$0xff] %vm479_vm0, %v464_v8  ;;  %v467_v21 = vmax.f32 %v435_v10, 0.0  ;;  %v337_v23 = vmul.f32 %v731_v0, %v298_v6  ;;  %498 = vst.msk [vmem:[%s779_s6 + $0x90] sm:$0xff] %vm479_vm0, %v465_v14  ;;  %v437_v26 = vadd.f32 %v405_v11, %v373_v16  ;;  %v338_v30 = vmul.f32 %v731_v0, %v299_v13 }
  0x29   : > { %v468_v25 = vmax.f32 %v436_v15, 0.0  ;;  %v438_v27 = vadd.f32 %v406_v12, %v374_v17  ;;  %499 = vst.msk [vmem:[%s779_s6 + $0x98] sm:$0xff] %vm479_vm0, %v466_v20  ;;  %v375_v31 = vadd.f32 %v749_v2, %v336_v22  ;;  %v339_v34 = vmul.f32 %v731_v0, %v300_v18 }
  0x2a   : > { %500 = vst.msk [vmem:[%s779_s6 + $0xa0] sm:$0xff] %vm479_vm0, %v467_v21  ;;  %v376_v32 = vadd.f32 %v749_v2, %v337_v23  ;;  %v340_v35 = vmul.f32 %v731_v0, %v301_v19  ;;  %v469_v38 = vmax.f32 %v437_v26, 0.0  ;;  %v377_v40 = vadd.f32 %v749_v2, %v338_v30 }
  0x2b   : > { %501 = vst.msk [vmem:[%s779_s6 + $0xa8] sm:$0xff] %vm479_vm0, %v468_v25  ;;  %v470_v39 = vmax.f32 %v438_v27, 0.0  ;;  %v341_v43 = vmul.f32 %v731_v0, %v302_v24  ;;  %v439_v44 = vadd.f32 %v407_v28, %v375_v31  ;;  %v378_v46 = vadd.f32 %v749_v2, %v339_v34 }
  0x2c   : > { %v440_v45 = vadd.f32 %v408_v29, %v376_v32  ;;  %v379_v47 = vadd.f32 %v749_v2, %v340_v35  ;;  %502 = vst.msk [vmem:[%s779_s6 + $0xb0] sm:$0xff] %vm479_vm0, %v469_v38  ;;  %v441_v49 = vadd.f32 %v409_v33, %v377_v40  ;;  %v342_v51 = vmul.f32 %v731_v0, %v303_v36 }
  0x2d   : > { %503 = vst.msk [vmem:[%s779_s6 + $0xb8] sm:$0xff] %vm479_vm0, %v470_v39  ;;  %v380_v50 = vadd.f32 %v749_v2, %v341_v43  ;;  %v343_v52 = vmul.f32 %v731_v0, %v304_v37  ;;  %v471_v53 = vmax.f32 %v439_v44, 0.0  ;;  %v442_v55 = vadd.f32 %v410_v41, %v378_v46 }
  0x2e   : > { %v472_v54 = vmax.f32 %v440_v45, 0.0  ;;  %v443_v56 = vadd.f32 %v411_v42, %v379_v47  ;;  %v473_v59 = vmax.f32 %v441_v49, 0.0  ;;  %v381_v61 = vadd.f32 %v749_v2, %v342_v51 }
  0x2f   : > { %v444_v60 = vadd.f32 %v412_v48, %v380_v50  ;;  %v382_v62 = vadd.f32 %v749_v2, %v343_v52  ;;  %504 = vst.msk [vmem:[%s779_s6 + $0xc0] sm:$0xff] %vm479_vm0, %v471_v53  ;;  %v474_v0 = vmax.f32 %v442_v55, 0.0 }
  0x30   : > { %505 = vst.msk [vmem:[%s779_s6 + $0xc8] sm:$0xff] %vm479_vm0, %v472_v54  ;;  %v475_v63 = vmax.f32 %v443_v56, 0.0  ;;  %506 = vst.msk [vmem:[%s779_s6 + $0xd0] sm:$0xff] %vm479_vm0, %v473_v59  ;;  %v445_v3 = vadd.f32 %v413_v57, %v381_v61 }
  0x31   : > { %v476_v1 = vmax.f32 %v444_v60, 0.0  ;;  %v446_v4 = vadd.f32 %v414_v58, %v382_v62  ;;  %507 = vst.msk [vmem:[%s779_s6 + $0xd8] sm:$0xff] %vm479_vm0, %v474_v0 }
  0x32   : > { %508 = vst.msk [vmem:[%s779_s6 + $0xe0] sm:$0xff] %vm479_vm0, %v475_v63  ;;  %v477_v5 = vmax.f32 %v445_v3, 0.0 }
  0x33   : > { %509 = vst.msk [vmem:[%s779_s6 + $0xe8] sm:$0xff] %vm479_vm0, %v476_v1  ;;  %v478_v6 = vmax.f32 %v446_v4, 0.0 }
  0x34   : > { %510 = vst.msk [vmem:[%s779_s6 + $0xf0] sm:$0xff] %vm479_vm0, %v477_v5 }
  0x35   : > { %511 = vst.msk [vmem:[%s779_s6 + $0xf8] sm:$0xff] %vm479_vm0, %v478_v6 }
  0x36 PF: > { %s14_s17 = sadd.s32 1, %s681_s17   ;;  %s962_s15 = smov %s677_s16 }
  0x37   : > { %p11_p5 = scmp.ge.s32.totalorder %s14_s17, 4   ;;  %s963_s16 = smov %s965_s18 }
  0x39   :  { %13 = sbr.rel (!%p11_p5) target bundleno = 2 (0x2), region = 69 }

// kernel: bottleneck_block2d_s.5
= control target key start
LH: loop header
LB: loop body
LE: loop exit
PB: predicated region body
PF: predicated region fallthrough
CT: control target
= control target key end

     0   :  { %s747_s12 = smov 0   ;;  %s749_s13 = smov 0   ;;  %s958_s0 = inlined_call_operand.vmem [shape: f32[2,256,4], index: 0, kind: input, shape index: {}]   ;;  %s959_s1 = inlined_call_operand.vmem [shape: f32[1,4], index: 1, kind: input, shape index: {}]   ;;  %s960_s2 = inlined_call_operand.vmem [shape: f32[1,4], index: 2, kind: input, shape index: {}]   ;;  %s961_s3 = inlined_call_operand.vmem [shape: bf16[2,256,4], index: 3, kind: output, shape index: {}]  }
   0x1   :  { %s751_s14 = smov 0  }
   0x2 LB: > { %s25_s15 = sadd.s32 1, %s721_s13  ;;  %p604_p0 = scmp.ge.s32.totalorder %s725_s14, 1  ;;  %s725_s14 = sphi %s751_s14, %s13_s14   ;;  %s721_s13 = sphi %s749_s13, %s963_s13   ;;  %s717_s12 = sphi %s747_s12, %s962_s12  }
   0x3   : > { %p27_p1 = scmp.ge.s32.totalorder %s25_s15, 2  ;;  %p158_p2 = scmp.lt.s32.totalorder %s725_s14, 3 }
   0x5   : > { %s965_s15 = smov (%p27_p1, %s25_s15), 0  ;;  %p159_p3 = pnand %p604_p0, %p158_p2 }
   0x6   : > { %p191_p4 = scmp.lt.s32.totalorder (!%p159_p3), %s717_s12, 1 }
   0x7   : > { %162 = sbr.rel (%p159_p3) target bundleno = 55 (0x37), region = 32 }
   0xc   : > { %s967_s12 = smov (!%p191_p4, %s717_s12), 1  ;;  %v771_v0 = vld [vmem:[%s959_s1] ss:$0 sm:$0xff]  ;;  %vm480_vm0 = vcmask 27648  }
   0xd   : > { %s645_s16 = sshll.u32 %s967_s12, 8  ;;  %v781_v1 = vld [vmem:[%s960_s2] ss:$0 sm:$0xff]  ;;  %s646_s24 = sshll.u32 %s967_s12, 7 }
   0xe   : > { %s776_s21 = scalar_lea.vmem %s958_s0, %s645_s16  ;;  %s810_s27 = scalar_lea.vmem %s961_s3, %s646_s24 }
   0xf   : > { %v210_v2 = vld [vmem:[%s776_s21] sm:$0xff]  ;;  %v211_v3 = vld [vmem:[%s776_s21 + $0x8] sm:$0xff]  ;;  %v212_v4 = vld [vmem:[%s776_s21 + $0x10] sm:$0xff] }
  0x10   : > { %v249_v5 = vmul.f32 %v771_v0, %v210_v2  ;;  %v250_v6 = vmul.f32 %v771_v0, %v211_v3  ;;  %v251_v7 = vmul.f32 %v771_v0, %v212_v4  ;;  %v213_v8 = vld [vmem:[%s776_s21 + $0x18] sm:$0xff]  ;;  %v214_v9 = vld [vmem:[%s776_s21 + $0x20] sm:$0xff]  ;;  %v215_v10 = vld [vmem:[%s776_s21 + $0x28] sm:$0xff] }
  0x11   : > { %v252_v11 = vmul.f32 %v771_v0, %v213_v8  ;;  %v253_v12 = vmul.f32 %v771_v0, %v214_v9  ;;  %v254_v13 = vmul.f32 %v771_v0, %v215_v10  ;;  %v216_v14 = vld [vmem:[%s776_s21 + $0x30] sm:$0xff]  ;;  %v217_v15 = vld [vmem:[%s776_s21 + $0x38] sm:$0xff]  ;;  %v218_v32 = vld [vmem:[%s776_s21 + $0x40] sm:$0xff] }
  0x12   : > { %v288_v16 = vadd.f32 %v781_v1, %v249_v5  ;;  %v289_v17 = vadd.f32 %v781_v1, %v250_v6  ;;  %v290_v18 = vadd.f32 %v781_v1, %v251_v7  ;;  %v255_v19 = vmul.f32 %v771_v0, %v216_v14  ;;  %v219_v33 = vld [vmem:[%s776_s21 + $0x48] sm:$0xff]  ;;  %v220_v34 = vld [vmem:[%s776_s21 + $0x50] sm:$0xff]  ;;  %v221_v39 = vld [vmem:[%s776_s21 + $0x58] sm:$0xff] }
  0x13   : > { %v291_v20 = vadd.f32 %v781_v1, %v252_v11  ;;  %v292_v21 = vadd.f32 %v781_v1, %v253_v12  ;;  %v293_v22 = vadd.f32 %v781_v1, %v254_v13  ;;  %v256_v23 = vmul.f32 %v771_v0, %v217_v15  ;;  %v222_v40 = vld [vmem:[%s776_s21 + $0x60] sm:$0xff]  ;;  %v223_v41 = vld [vmem:[%s776_s21 + $0x68] sm:$0xff]  ;;  %v224_v46 = vld [vmem:[%s776_s21 + $0x70] sm:$0xff] }
  0x14   : > { %v320_v24 = vmax.f32 %v288_v16, 0.0  ;;  %v321_v25 = vmax.f32 %v289_v17, 0.0  ;;  %v322_v26 = vmax.f32 %v290_v18, 0.0  ;;  %v294_v27 = vadd.f32 %v781_v1, %v255_v19  ;;  %v225_v51 = vld [vmem:[%s776_s21 + $0x78] sm:$0xff]  ;;  %v226_v10 = vld [vmem:[%s776_s21 + $0x80] sm:$0xff]  ;;  %v227_v11 = vld [vmem:[%s776_s21 + $0x88] sm:$0xff] }
  0x15   : > { %v323_v28 = vmax.f32 %v291_v20, 0.0  ;;  %v324_v29 = vmax.f32 %v292_v21, 0.0  ;;  %v325_v30 = vmax.f32 %v293_v22, 0.0  ;;  %v295_v31 = vadd.f32 %v781_v1, %v256_v23  ;;  %v228_v12 = vld [vmem:[%s776_s21 + $0x90] sm:$0xff]  ;;  %v229_v17 = vld [vmem:[%s776_s21 + $0x98] sm:$0xff]  ;;  %v230_v18 = vld [vmem:[%s776_s21 + $0xa0] sm:$0xff] }
  0x16   : > { %v647_v35 = vpack.c.bf16 %v320_v24, %v320_v24  ;;  %v648_v36 = vpack.c.bf16 %v321_v25, %v321_v25  ;;  %v649_v37 = vpack.c.bf16 %v322_v26, %v322_v26  ;;  %v326_v38 = vmax.f32 %v294_v27, 0.0  ;;  %v231_v19 = vld [vmem:[%s776_s21 + $0xa8] sm:$0xff]  ;;  %v232_v24 = vld [vmem:[%s776_s21 + $0xb0] sm:$0xff] }
  0x17   : > { %v650_v42 = vpack.c.bf16 %v323_v28, %v323_v28  ;;  %v651_v43 = vpack.c.bf16 %v324_v29, %v324_v29  ;;  %v652_v44 = vpack.c.bf16 %v325_v30, %v325_v30  ;;  %v327_v45 = vmax.f32 %v295_v31, 0.0  ;;  %v233_v29 = vld [vmem:[%s776_s21 + $0xb8] sm:$0xff] }
  0x18   : > { %481 = vst.msk [vmem:[%s810_s27] sm:$0xf] %vm480_vm0, %v647_v35  ;;  %482 = vst.msk [vmem:[%s810_s27 + $0x4] sm:$0xf] %vm480_vm0, %v648_v36  ;;  %v653_v47 = vpack.c.bf16 %v326_v38, %v326_v38  ;;  %v257_v48 = vmul.f32 %v771_v0, %v218_v32  ;;  %v258_v49 = vmul.f32 %v771_v0, %v219_v33 }
  0x19   : > { %483 = vst.msk [vmem:[%s810_s27 + $0x8] sm:$0xf] %vm480_vm0, %v649_v37  ;;  %v259_v50 = vmul.f32 %v771_v0, %v220_v34  ;;  %484 = vst.msk [vmem:[%s810_s27 + $0xc] sm:$0xf] %vm480_vm0, %v650_v42  ;;  %v654_v52 = vpack.c.bf16 %v327_v45, %v327_v45  ;;  %v260_v53 = vmul.f32 %v771_v0, %v221_v39 }
  0x1a   : > { %485 = vst.msk [vmem:[%s810_s27 + $0x10] sm:$0xf] %vm480_vm0, %v651_v43  ;;  %486 = vst.msk [vmem:[%s810_s27 + $0x14] sm:$0xf] %vm480_vm0, %v652_v44  ;;  %v261_v54 = vmul.f32 %v771_v0, %v222_v40  ;;  %v262_v55 = vmul.f32 %v771_v0, %v223_v41  ;;  %v296_v56 = vadd.f32 %v781_v1, %v257_v48 }
  0x1b   : > { %487 = vst.msk [vmem:[%s810_s27 + $0x18] sm:$0xf] %vm480_vm0, %v653_v47  ;;  %v297_v57 = vadd.f32 %v781_v1, %v258_v49  ;;  %v298_v58 = vadd.f32 %v781_v1, %v259_v50  ;;  %v263_v59 = vmul.f32 %v771_v0, %v224_v46  ;;  %488 = vst.msk [vmem:[%s810_s27 + $0x1c] sm:$0xf] %vm480_vm0, %v654_v52  ;;  %v234_v50 = vld [vmem:[%s776_s21 + $0xc0] sm:$0xff]  ;;  %v236_v52 = vld [vmem:[%s776_s21 + $0xd0] sm:$0xff] }
  0x1c   : > { %v299_v60 = vadd.f32 %v781_v1, %v260_v53  ;;  %v300_v61 = vadd.f32 %v781_v1, %v261_v54  ;;  %v301_v62 = vadd.f32 %v781_v1, %v262_v55  ;;  %v264_v63 = vmul.f32 %v771_v0, %v225_v51  ;;  %v235_v51 = vld [vmem:[%s776_s21 + $0xc8] sm:$0xff] }
  0x1d   : > { %v328_v2 = vmax.f32 %v296_v56, 0.0  ;;  %v329_v3 = vmax.f32 %v297_v57, 0.0  ;;  %v330_v4 = vmax.f32 %v298_v58, 0.0  ;;  %v302_v5 = vadd.f32 %v781_v1, %v263_v59  ;;  %v237_v57 = vld [vmem:[%s776_s21 + $0xd8] sm:$0xff]  ;;  %v238_v58 = vld [vmem:[%s776_s21 + $0xe0] sm:$0xff]  ;;  %v239_v59 = vld [vmem:[%s776_s21 + $0xe8] sm:$0xff] }
  0x1e   : > { %v331_v6 = vmax.f32 %v299_v60, 0.0  ;;  %v332_v7 = vmax.f32 %v300_v61, 0.0  ;;  %v333_v8 = vmax.f32 %v301_v62, 0.0  ;;  %v303_v9 = vadd.f32 %v781_v1, %v264_v63 }
  0x1f   : > { %v655_v13 = vpack.c.bf16 %v328_v2, %v328_v2  ;;  %v656_v14 = vpack.c.bf16 %v329_v3, %v329_v3  ;;  %v657_v15 = vpack.c.bf16 %v330_v4, %v330_v4  ;;  %v334_v16 = vmax.f32 %v302_v5, 0.0  ;;  %v240_v2 = vld [vmem:[%s776_s21 + $0xf0] sm:$0xff] }
  0x20   : > { %v658_v20 = vpack.c.bf16 %v331_v6, %v331_v6  ;;  %v659_v21 = vpack.c.bf16 %v332_v7, %v332_v7  ;;  %v660_v22 = vpack.c.bf16 %v333_v8, %v333_v8  ;;  %v335_v23 = vmax.f32 %v303_v9, 0.0  ;;  %v241_v7 = vld [vmem:[%s776_s21 + $0xf8] sm:$0xff] }
  0x21   : > { %489 = vst.msk [vmem:[%s810_s27 + $0x20] sm:$0xf] %vm480_vm0, %v655_v13  ;;  %490 = vst.msk [vmem:[%s810_s27 + $0x24] sm:$0xf] %vm480_vm0, %v656_v14  ;;  %v661_v25 = vpack.c.bf16 %v334_v16, %v334_v16  ;;  %v265_v26 = vmul.f32 %v771_v0, %v226_v10  ;;  %v266_v27 = vmul.f32 %v771_v0, %v227_v11 }
  0x22   : > { %491 = vst.msk [vmem:[%s810_s27 + $0x28] sm:$0xf] %vm480_vm0, %v657_v15  ;;  %v267_v28 = vmul.f32 %v771_v0, %v228_v12  ;;  %492 = vst.msk [vmem:[%s810_s27 + $0x2c] sm:$0xf] %vm480_vm0, %v658_v20  ;;  %v662_v30 = vpack.c.bf16 %v335_v23, %v335_v23  ;;  %v268_v31 = vmul.f32 %v771_v0, %v229_v17 }
  0x23   : > { %493 = vst.msk [vmem:[%s810_s27 + $0x30] sm:$0xf] %vm480_vm0, %v659_v21  ;;  %494 = vst.msk [vmem:[%s810_s27 + $0x34] sm:$0xf] %vm480_vm0, %v660_v22  ;;  %v269_v32 = vmul.f32 %v771_v0, %v230_v18  ;;  %v270_v33 = vmul.f32 %v771_v0, %v231_v19  ;;  %v304_v34 = vadd.f32 %v781_v1, %v265_v26 }
  0x24   : > { %495 = vst.msk [vmem:[%s810_s27 + $0x38] sm:$0xf] %vm480_vm0, %v661_v25  ;;  %v305_v35 = vadd.f32 %v781_v1, %v266_v27  ;;  %v306_v36 = vadd.f32 %v781_v1, %v267_v28  ;;  %v271_v37 = vmul.f32 %v771_v0, %v232_v24  ;;  %496 = vst.msk [vmem:[%s810_s27 + $0x3c] sm:$0xf] %vm480_vm0, %v662_v30 }
  0x25   : > { %v307_v38 = vadd.f32 %v781_v1, %v268_v31  ;;  %v308_v39 = vadd.f32 %v781_v1, %v269_v32  ;;  %v309_v40 = vadd.f32 %v781_v1, %v270_v33  ;;  %v272_v41 = vmul.f32 %v771_v0, %v233_v29 }
  0x26   : > { %v336_v42 = vmax.f32 %v304_v34, 0.0  ;;  %v337_v43 = vmax.f32 %v305_v35, 0.0  ;;  %v338_v44 = vmax.f32 %v306_v36, 0.0  ;;  %v310_v45 = vadd.f32 %v781_v1, %v271_v37 }
  0x27   : > { %v339_v46 = vmax.f32 %v307_v38, 0.0  ;;  %v340_v47 = vmax.f32 %v308_v39, 0.0  ;;  %v341_v48 = vmax.f32 %v309_v40, 0.0  ;;  %v311_v49 = vadd.f32 %v781_v1, %v272_v41 }
  0x28   : > { %v663_v53 = vpack.c.bf16 %v336_v42, %v336_v42  ;;  %v664_v54 = vpack.c.bf16 %v337_v43, %v337_v43  ;;  %v665_v55 = vpack.c.bf16 %v338_v44, %v338_v44  ;;  %v342_v56 = vmax.f32 %v310_v45, 0.0 }
  0x29   : > { %v666_v60 = vpack.c.bf16 %v339_v46, %v339_v46  ;;  %v667_v61 = vpack.c.bf16 %v340_v47, %v340_v47  ;;  %v668_v62 = vpack.c.bf16 %v341_v48, %v341_v48  ;;  %v343_v63 = vmax.f32 %v311_v49, 0.0 }
  0x2a   : > { %497 = vst.msk [vmem:[%s810_s27 + $0x40] sm:$0xf] %vm480_vm0, %v663_v53  ;;  %498 = vst.msk [vmem:[%s810_s27 + $0x44] sm:$0xf] %vm480_vm0, %v664_v54  ;;  %v669_v3 = vpack.c.bf16 %v342_v56, %v342_v56  ;;  %v273_v4 = vmul.f32 %v771_v0, %v234_v50  ;;  %v274_v5 = vmul.f32 %v771_v0, %v235_v51 }
  0x2b   : > { %499 = vst.msk [vmem:[%s810_s27 + $0x48] sm:$0xf] %vm480_vm0, %v665_v55  ;;  %v275_v6 = vmul.f32 %v771_v0, %v236_v52  ;;  %500 = vst.msk [vmem:[%s810_s27 + $0x4c] sm:$0xf] %vm480_vm0, %v666_v60  ;;  %v670_v8 = vpack.c.bf16 %v343_v63, %v343_v63  ;;  %v276_v9 = vmul.f32 %v771_v0, %v237_v57 }
  0x2c   : > { %501 = vst.msk [vmem:[%s810_s27 + $0x50] sm:$0xf] %vm480_vm0, %v667_v61  ;;  %502 = vst.msk [vmem:[%s810_s27 + $0x54] sm:$0xf] %vm480_vm0, %v668_v62  ;;  %v277_v10 = vmul.f32 %v771_v0, %v238_v58  ;;  %v278_v11 = vmul.f32 %v771_v0, %v239_v59  ;;  %v312_v12 = vadd.f32 %v781_v1, %v273_v4 }
  0x2d   : > { %503 = vst.msk [vmem:[%s810_s27 + $0x58] sm:$0xf] %vm480_vm0, %v669_v3  ;;  %v313_v13 = vadd.f32 %v781_v1, %v274_v5  ;;  %v314_v14 = vadd.f32 %v781_v1, %v275_v6  ;;  %v279_v15 = vmul.f32 %v771_v0, %v240_v2  ;;  %504 = vst.msk [vmem:[%s810_s27 + $0x5c] sm:$0xf] %vm480_vm0, %v670_v8 }
  0x2e   : > { %v315_v16 = vadd.f32 %v781_v1, %v276_v9  ;;  %v316_v17 = vadd.f32 %v781_v1, %v277_v10  ;;  %v317_v18 = vadd.f32 %v781_v1, %v278_v11  ;;  %v280_v19 = vmul.f32 %v771_v0, %v241_v7 }
  0x2f   : > { %v344_v20 = vmax.f32 %v312_v12, 0.0  ;;  %v345_v21 = vmax.f32 %v313_v13, 0.0  ;;  %v346_v22 = vmax.f32 %v314_v14, 0.0  ;;  %v318_v23 = vadd.f32 %v781_v1, %v279_v15 }
  0x30   : > { %v347_v24 = vmax.f32 %v315_v16, 0.0  ;;  %v348_v25 = vmax.f32 %v316_v17, 0.0  ;;  %v349_v26 = vmax.f32 %v317_v18, 0.0  ;;  %v319_v27 = vadd.f32 %v781_v1, %v280_v19 }
  0x31   : > { %v671_v28 = vpack.c.bf16 %v344_v20, %v344_v20  ;;  %v672_v29 = vpack.c.bf16 %v345_v21, %v345_v21  ;;  %v673_v0 = vpack.c.bf16 %v346_v22, %v346_v22  ;;  %v350_v30 = vmax.f32 %v318_v23, 0.0 }
  0x32   : > { %v674_v31 = vpack.c.bf16 %v347_v24, %v347_v24  ;;  %v675_v32 = vpack.c.bf16 %v348_v25, %v348_v25  ;;  %v676_v33 = vpack.c.bf16 %v349_v26, %v349_v26  ;;  %v351_v34 = vmax.f32 %v319_v27, 0.0 }
  0x33   : > { %505 = vst.msk [vmem:[%s810_s27 + $0x60] sm:$0xf] %vm480_vm0, %v671_v28  ;;  %506 = vst.msk [vmem:[%s810_s27 + $0x64] sm:$0xf] %vm480_vm0, %v672_v29  ;;  %v677_v35 = vpack.c.bf16 %v350_v30, %v350_v30 }
  0x34   : > { %507 = vst.msk [vmem:[%s810_s27 + $0x68] sm:$0xf] %vm480_vm0, %v673_v0  ;;  %508 = vst.msk [vmem:[%s810_s27 + $0x6c] sm:$0xf] %vm480_vm0, %v674_v31  ;;  %v678_v1 = vpack.c.bf16 %v351_v34, %v351_v34 }
  0x35   : > { %509 = vst.msk [vmem:[%s810_s27 + $0x70] sm:$0xf] %vm480_vm0, %v675_v32  ;;  %510 = vst.msk [vmem:[%s810_s27 + $0x74] sm:$0xf] %vm480_vm0, %v676_v33 }
  0x36   : > { %511 = vst.msk [vmem:[%s810_s27 + $0x78] sm:$0xf] %vm480_vm0, %v677_v35  ;;  %512 = vst.msk [vmem:[%s810_s27 + $0x7c] sm:$0xf] %vm480_vm0, %v678_v1 }
  0x37 PF: > { %s13_s14 = sadd.s32 1, %s725_s14   ;;  %s962_s12 = smov %s721_s13 }
  0x38   : > { %p10_p5 = scmp.ge.s32.totalorder %s13_s14, 4   ;;  %s963_s13 = smov %s965_s15 }
  0x3a   :  { %12 = sbr.rel (!%p10_p5) target bundleno = 2 (0x2), region = 62 }

// kernel: bottleneck_block2d_s.4
= control target key start
LH: loop header
LB: loop body
LE: loop exit
PB: predicated region body
PF: predicated region fallthrough
CT: control target
= control target key end

     0   :  { %s4144_s15 = smov 0   ;;  %s5890_s0 = inlined_call_operand.vmem [shape: bf16[2,18,18,4], index: 0, kind: input, shape index: {}]   ;;  %s5891_s1 = inlined_call_operand.vmem [shape: bf16[36,4], index: 1, kind: input, shape index: {}]   ;;  %s5892_s2 = inlined_call_operand.vmem [shape: f32[2,256,4], index: 2, kind: output, shape index: {0}]   ;;  %s5893_s3 = inlined_call_operand.vmem [shape: f32[2,1,4], index: 3, kind: output, shape index: {1}]   ;;  %s5894_s4 = inlined_call_operand.vmem [shape: f32[2,1,4], index: 4, kind: output, shape index: {2}]  }
   0x1 LB: > { %s3592_s16 = sadd.s32 4294967295, %s4109_s15   ;;  %p3596_p0 = scmp.ge.s32.totalorder %s4109_s15, 1  ;;  %s4109_s15 = sphi %s4144_s15, %s15_s15  }
   0x2   : > { %p167_p1 = scmp.lt.s32.totalorder %s4109_s15, 3 }
   0x4   : > { %p168_p2 = pnand %p3596_p0, %p167_p1 }
   0x5   : > { %p199_p3 = scmp.lt.s32.totalorder (!%p168_p2), %s3592_s16, 1  ;;  %s4111_s21 = smov (!%p168_p2), 12  }
   0x6   : > { %171 = sbr.rel (%p168_p2) target bundleno = 676 (0x2a4), region = 28  ;;  %s4112_s22 = smov (!%p168_p2), 20  }
   0x7   : > { %s4113_s23 = smov (!%p168_p2), 8   ;;  %s4114_s24 = smov (!%p168_p2), 4  }
   0x8   : > { %s4115_s25 = smov (!%p168_p2), 16   ;;  %s4116_s26 = smov (!%p168_p2), 24  }
   0x9   : > { %s4117_s27 = smov (!%p168_p2), 28   ;;  %s4118_s28 = smov (!%p168_p2), 32  }
   0xb   : > { %s5900_s16 = smov (!%p199_p3, %s3592_s16), 1  ;;  %vm715_vm0 = vcmask 1042432   ;;  %vm716_vm1 = vcmask 1046532   ;;  %vm264_vm3 = vsmask.f32 3328  ;;  %vm2784_vm6 = vcmask 31744  }
   0xc   : > { %s4007_s17 = smul.u32 216, %s5900_s16  ;;  %vm4182_vm2 = vmor %vm715_vm0, %vm716_vm1  ;;  %vm265_vm4 = vsmask.f32 7440  ;;  %vm2833_vm7 = vcmask 64512   ;;  %vm2866_vm8 = vcmask 97280   ;;  %vm2899_vm9 = vcmask 130048  }
   0xd   : > { %vm4226_vm5 = vmor %vm264_vm3, %vm265_vm4  ;;  %vm2932_vm10 = vcmask 162816   ;;  %vm2965_vm11 = vcmask 195584   ;;  %vm3117_vm12 = vcmask 1041408   ;;  %vm2998_vm13 = vcmask 228352   ;;  %s3941_s9 = sshll.u32 %s5900_s16, 8 }
   0xe   : > { %s4158_s20 = scalar_lea.vmem %s5890_s0, %s4007_s17  ;;  %vm3031_vm14 = vcmask 261120   ;;  %vm3084_vm15 = vcmask 293888   ;;  %s5703_s12 = scalar_lea.vmem %s5892_s2, %s3941_s9  ;;  %vm3383_vm0 = vcmask 24576  }
   0xf   : > { %v3618_v0 = vld [vmem:[%s4158_s20 + $0x18] sm:$0xf]  ;;  %v4162_v1 = vld [vmem:[%s4158_s20 + $0x1c] sm:$0xf]  ;;  %v3616_v2 = vld [vmem:[%s4158_s20 + $0xc] sm:$0xf]  ;;  %s211_s17 = scalar_lea.vmem %s5893_s3, %s5900_s16 }
  0x10   : > { %v913_v3 = vshll.u32 %v4162_v1, 16  ;;  %v917_v4 = vshrl.u32 %v4162_v1, 16  ;;  %v3825_v5 = vcombine.low %v3618_v0, %v4162_v1  ;;  %v904_v6 = vshrl.u32 %v3618_v0, 16  ;;  %v4169_v7 = vld [vmem:[%s4158_s20 + $0x10] sm:$0xf] }
  0x11   : > { %v907_v8 = vshll.u32 %v3618_v0, 16  ;;  %v889_v9 = vshll.u32 %v4169_v7, 16  ;;  %v893_v10 = vshrl.u32 %v4169_v7, 16  ;;  %v3824_v11 = vcombine.low %v3616_v2, %v4169_v7  ;;  %v4175_v12 = vld [vmem:[%s4158_s20 + $0x14] sm:$0x1] }
  0x12   : > { %v4177_v13 = vrot.slane %v917_v4, 4  ;;  %2338 = vrot.lane.b32.xlu1 %v3825_v5, %s4111_s21  ;;  %v906_v14 = vrot.slane %v904_v6, 4  ;;  %v880_v15 = vshrl.u32 %v3616_v2, 16  ;;  %v883_v16 = vshll.u32 %v3616_v2, 16  ;;  %v3664_v18 = vld [vmem:[%s4158_s20 + $0xc] sm:$0xe] }
  0x13   : > { %v909_v19 = vrot.slane %v907_v8, 5  ;;  %v4187_v20 = vrot.slane %v893_v10, 4  ;;  %2336 = vrot.lane.b32.xlu0 %v3824_v11, %s4111_s21  ;;  %v3680_v21 = vrot.slane %v3664_v18, 9  ;;  %v1329_v22 = vrot.slane %v4169_v7, 5  ;;  %v217_v23 = vld [vmem:[%s4158_s20 + $0x4] sm:$0xf] }
  0x14   : > { %v882_v24 = vrot.slane %v880_v15, 4  ;;  %v885_v25 = vrot.slane %v883_v16, 5  ;;  %v1332_v26 = vrot.slane %v4175_v12, 5  ;;  %v248_v27 = vld [vmem:[%s4158_s20 + $0x8] sm:$0x1]  ;;  %v720_v28 = vrot.slane %v217_v23, 5 }
  0x15   : > { %v910_v29 = vor.u32 %v909_v19, %v906_v14  ;;  %v1330_v30 = vsel %vm4182_vm2, %v3680_v21, %v1329_v22  ;;  %v1331_v31 = vrot.slane %v1329_v22, 4  ;;  %v651_v32 = vld [vmem:[%s4158_s20] sm:$0xe]  ;;  %v723_v33 = vrot.slane %v248_v27, 5  ;;  %v219_v34 = vld [vmem:[%s4158_s20 + $0x10] sm:$0xf] }
  0x16   : > { %v886_v35 = vor.u32 %v885_v25, %v882_v24  ;;  %v3600_v36 = vrot.slane %v651_v32, 9  ;;  %v722_v37 = vrot.slane %v720_v28, 4  ;;  %v249_v38 = vld [vmem:[%s4158_s20 + $0x14] sm:$0x1]  ;;  %v652_v39 = vld [vmem:[%s4158_s20 + $0xc] sm:$0xe] }
  0x17   : > { %v4200_v40 = vrot.slane %v910_v29, 4  ;;  %v1333_v41 = vsel %vm4182_vm2, %v1331_v31, %v1332_v26  ;;  %v3601_v42 = vrot.slane %v652_v39, 9  ;;  %v727_v43 = vrot.slane %v219_v34, 5  ;;  %v216_v44 = vld [vmem:[%s4158_s20] sm:$0xf] }
  0x18   : > { %v4205_v45 = vrot.slane %v886_v35, 4  ;;  %v3856_v46 = vcombine.low %v1330_v30, %v1333_v41  ;;  %v721_v47 = vsel %vm4182_vm2, %v3600_v36, %v720_v28  ;;  %v724_v48 = vsel %vm4182_vm2, %v722_v37, %v723_v33  ;;  %v3665_v49 = vld [vmem:[%s4158_s20 + $0x18] sm:$0xe]  ;;  %v3649_v58 = vld [vmem:[%s4158_s20 + $0x20] sm:$0x1] }
  0x19   : > { %v3808_v50 = vcombine.low %v721_v47, %v724_v48  ;;  %v728_v51 = vsel %vm4182_vm2, %v3601_v42, %v727_v43  ;;  %v729_v52 = vrot.slane %v727_v43, 4  ;;  %v730_v53 = vrot.slane %v249_v38, 5  ;;  %v218_v63 = vld [vmem:[%s4158_s20 + $0xc] sm:$0xf]  ;;  %v3698_v42 = vld [vmem:[%s4158_s20 + $0x24] sm:$0xf] }
  0x1a   : > { %2496 = vrot.lane.b32.xlu0 %v3856_v46, %s4112_s22  ;;  %v268_v54 = vshrl.u32 %v216_v44, 16  ;;  %v271_v55 = vshll.u32 %v216_v44, 16  ;;  %v277_v56 = vshll.u32 %v217_v23, 16  ;;  %v281_v57 = vshrl.u32 %v217_v23, 16 }
  0x1b   : > { %2240 = vrot.lane.b32.xlu1 %v3808_v50, %s4113_s23  ;;  %v731_v59 = vsel %vm4182_vm2, %v729_v52, %v730_v53  ;;  %v287_v60 = vshll.u32 %v248_v27, 16  ;;  %v3681_v61 = vrot.slane %v3665_v49, 9  ;;  %v1336_v62 = vrot.slane %v4162_v1, 5 }
  0x1c   : > { %v3809_v0 = vcombine.low %v728_v51, %v731_v59  ;;  %v270_v2 = vrot.slane %v268_v54, 4  ;;  %v273_v4 = vrot.slane %v271_v55, 5  ;;  %v279_v5 = vrot.slane %v277_v56, 5  ;;  %v3696_v51 = vld [vmem:[%s4158_s20 + $0x18] sm:$0xf] }
  0x1d   : > { %v283_v6 = vrot.slane %v281_v57, 4  ;;  %v289_v8 = vrot.slane %v287_v60, 5  ;;  %v1337_v10 = vsel %vm4182_vm2, %v3681_v61, %v1336_v62  ;;  %v1338_v11 = vrot.slane %v1336_v62, 4  ;;  %v4268_v62 = vld [vmem:[%s4158_s20 + $0x2c] sm:$0x1] }
  0x1e   : > { %v274_v14 = vor.u32 %v273_v4, %v270_v2  ;;  %v1339_v15 = vrot.slane %v3649_v58, 5  ;;  %v292_v16 = vshrl.u32 %v218_v63, 16  ;;  %v295_v18 = vshll.u32 %v218_v63, 16 }
  0x1f   : > { %2242 = vrot.lane.b32.xlu1 %v3809_v0, %s4113_s23  ;;  %v284_v21 = vor.u32 %v283_v6, %v279_v5  ;;  %v301_v22 = vshll.u32 %v219_v34, 16  ;;  %v305_v23 = vshrl.u32 %v219_v34, 16  ;;  %v311_v24 = vshll.u32 %v249_v38, 16 }
  0x20   : > { %v275_v25 = vrot.slane %v274_v14, 4  ;;  %v1340_v26 = vsel %vm4182_vm2, %v1338_v11, %v1339_v15  ;;  %v294_v27 = vrot.slane %v292_v16, 4  ;;  %v297_v28 = vrot.slane %v295_v18, 5  ;;  %v220_v14 = vld [vmem:[%s4158_s20 + $0x18] sm:$0xf] }
  0x21   : > { %v285_v29 = vrot.slane %v284_v21, 4  ;;  %v3857_v30 = vcombine.low %v1337_v10, %v1340_v26  ;;  %v303_v31 = vrot.slane %v301_v22, 5  ;;  %v307_v32 = vrot.slane %v305_v23, 4  ;;  %v4285_v26 = vld [vmem:[%s4158_s20 + $0x1c] sm:$0xf] }
  0x22   : > { %v280_v33 = vsel %vm4226_vm5, %v275_v25, %v279_v5  ;;  %v298_v35 = vor.u32 %v297_v28, %v294_v27  ;;  %v313_v36 = vrot.slane %v311_v24, 5  ;;  %v915_v34 = vrot.slane %v913_v3, 5  ;;  %v4247_v3 = vld [vmem:[%s4158_s20 + $0x28] sm:$0xf]  ;;  %v4276_v5 = vld [vmem:[%s4158_s20 + $0x20] sm:$0x1] }
  0x23   : > { %v290_v37 = vsel %vm4226_vm5, %v285_v29, %v289_v8  ;;  %2498 = vrot.lane.b32.xlu1 %v3857_v30, %s4112_s22  ;;  %v308_v38 = vor.u32 %v307_v32, %v303_v31  ;;  %v923_v39 = vshll.u32 %v3649_v58, 16  ;;  %v891_v41 = vrot.slane %v889_v9, 5  ;;  %v4289_v30 = vld [vmem:[%s4158_s20 + $0x20] sm:$0x1] }
  0x24   : > { %v3792_v43 = vcombine.low %v280_v33, %v290_v37  ;;  %v299_v44 = vrot.slane %v298_v35, 4  ;;  %v916_v46 = vsel %vm4226_vm5, %v4200_v40, %v915_v34  ;;  %v920_v1 = vor.u32 %v4177_v13, %v915_v34  ;;  %v3744_v34 = vld [vmem:[%s4158_s20 + $0x18] sm:$0xe] }
  0x25   : > { %v309_v47 = vrot.slane %v308_v38, 4  ;;  %v925_v48 = vrot.slane %v923_v39, 5  ;;  %v892_v7 = vsel %vm4226_vm5, %v4205_v45, %v891_v41  ;;  %v896_v9 = vor.u32 %v4187_v20, %v891_v41  ;;  %v4262_v20 = vld [vmem:[%s4158_s20 + $0x1c] sm:$0xf] }
  0x26   : > { %2160 = vrot.lane.b32.xlu0 %v3792_v43, %s4114_s24  ;;  %v304_v49 = vsel %vm4226_vm5, %v299_v44, %v303_v31  ;;  %v921_v40 = vrot.slane %v920_v1, 4  ;;  %v899_v13 = vshll.u32 %v4175_v12, 16  ;;  %v1513_v50 = vshrl.u32 %v3698_v42, 16 }
  0x27   : > { %v314_v52 = vsel %vm4226_vm5, %v309_v47, %v313_v36  ;;  %v897_v53 = vrot.slane %v896_v9, 4  ;;  %v1516_v54 = vshll.u32 %v3698_v42, 16  ;;  %v1526_v45 = vshrl.u32 %v4247_v3, 16  ;;  %v222_v9 = vld [vmem:[%s4158_s20 + $0x24] sm:$0xf] }
  0x28   : > { %v3793_v55 = vcombine.low %v304_v49, %v314_v52  ;;  %v926_v56 = vsel %vm4226_vm5, %v921_v40, %v925_v48  ;;  %v901_v57 = vrot.slane %v899_v13, 5  ;;  %v1515_v58 = vrot.slane %v1513_v50, 4 }
  0x29   : > { %v3841_v12 = vcombine.low %v916_v46, %v926_v56  ;;  %v1518_v59 = vrot.slane %v1516_v54, 5  ;;  %v3873_v60 = vcombine.low %v3698_v42, %v4247_v3  ;;  %v1489_v61 = vshrl.u32 %v3696_v51, 16 }
  0x2a   : > { %2162 = vrot.lane.b32.xlu0 %v3793_v55, %s4114_s24  ;;  %v902_v63 = vsel %vm4226_vm5, %v897_v53, %v901_v57  ;;  %v1492_v0 = vshll.u32 %v3696_v51, 16  ;;  %v1502_v2 = vshrl.u32 %v4262_v20, 16  ;;  %v3872_v4 = vcombine.low %v3696_v51, %v4262_v20  ;;  %v223_v51 = vld [vmem:[%s4158_s20 + $0x28] sm:$0xf] }
  0x2b   : > { %2418 = vrot.lane.b32.xlu1 %v3841_v12, %s4115_s25  ;;  %v3840_v6 = vcombine.low %v892_v7, %v902_v63  ;;  %v1491_v8 = vrot.slane %v1489_v61, 4  ;;  %v1519_v10 = vor.u32 %v1518_v59, %v1515_v58  ;;  %v1522_v11 = vshll.u32 %v4247_v3, 16  ;;  %v251_v58 = vld [vmem:[%s4158_s20 + $0x2c] sm:$0x1] }
  0x2c   : > { %v1494_v15 = vrot.slane %v1492_v0, 5  ;;  %v1528_v16 = vrot.slane %v1526_v45, 4  ;;  %v1532_v18 = vshll.u32 %v4268_v62, 16  ;;  %v1498_v21 = vshll.u32 %v4262_v20, 16  ;;  %v3745_v0 = vld [vmem:[%s4158_s20 + $0x24] sm:$0xe] }
  0x2d   : > { %v1520_v22 = vrot.slane %v1519_v10, 4  ;;  %v1524_v23 = vrot.slane %v1522_v11, 5  ;;  %v1504_v24 = vrot.slane %v1502_v2, 4  ;;  %v1508_v25 = vshll.u32 %v4276_v5, 16 }
  0x2e   : > { %2416 = vrot.lane.b32.xlu0 %v3840_v6, %s4115_s25  ;;  %v1534_v27 = vrot.slane %v1532_v18, 5  ;;  %v1495_v28 = vor.u32 %v1494_v15, %v1491_v8  ;;  %v1500_v29 = vrot.slane %v1498_v21, 5  ;;  %v316_v31 = vshrl.u32 %v220_v14, 16 }
  0x2f   : > { %2594 = vrot.lane.b32.xlu1 %v3873_v60, %s4116_s26  ;;  %v1525_v32 = vsel %vm4226_vm5, %v1520_v22, %v1524_v23  ;;  %v1529_v33 = vor.u32 %v1528_v16, %v1524_v23  ;;  %v1510_v35 = vrot.slane %v1508_v25, 5  ;;  %v319_v36 = vshll.u32 %v220_v14, 16  ;;  %v654_v14 = vld [vmem:[%s4158_s20 + $0x24] sm:$0xe] }
  0x30   : > { %v1496_v37 = vrot.slane %v1495_v28, 4  ;;  %v1505_v38 = vor.u32 %v1504_v24, %v1500_v29  ;;  %v318_v39 = vrot.slane %v316_v31, 4  ;;  %v325_v41 = vshll.u32 %v4285_v26, 16 }
  0x31   : > { %v1530_v42 = vrot.slane %v1529_v33, 4  ;;  %v321_v43 = vrot.slane %v319_v36, 5  ;;  %v329_v44 = vshrl.u32 %v4285_v26, 16  ;;  %v335_v46 = vshll.u32 %v4289_v30, 16 }
  0x32   : > { %2592 = vrot.lane.b32.xlu0 %v3872_v4, %s4116_s26  ;;  %v1501_v1 = vsel %vm4226_vm5, %v1496_v37, %v1500_v29  ;;  %v1506_v47 = vrot.slane %v1505_v38, 4  ;;  %v327_v48 = vrot.slane %v325_v41, 5  ;;  %v3760_v7 = vrot.slane %v3744_v34, 9 }
  0x33   : > { %v1535_v49 = vsel %vm4226_vm5, %v1530_v42, %v1534_v27  ;;  %v322_v40 = vor.u32 %v321_v43, %v318_v39  ;;  %v331_v13 = vrot.slane %v329_v44, 4  ;;  %v337_v50 = vrot.slane %v335_v46, 5  ;;  %v653_v27 = vld [vmem:[%s4158_s20 + $0x18] sm:$0xe]  ;;  %v3623_v46 = vld [vmem:[%s4158_s20 + $0x34] sm:$0xf] }
  0x34   : > { %v3889_v52 = vcombine.low %v1525_v32, %v1535_v49  ;;  %v1511_v53 = vsel %vm4226_vm5, %v1506_v47, %v1510_v35  ;;  %v1938_v54 = vrot.slane %v4262_v20, 5  ;;  %v1941_v45 = vrot.slane %v4276_v5, 5  ;;  %v4348_v49 = vld [vmem:[%s4158_s20 + $0x28] sm:$0xf] }
  0x35   : > { %v3888_v55 = vcombine.low %v1501_v1, %v1511_v53  ;;  %v323_v56 = vrot.slane %v322_v40, 4  ;;  %v332_v57 = vor.u32 %v331_v13, %v327_v48  ;;  %v340_v12 = vshrl.u32 %v222_v9, 16 }
  0x36   : > { %2674 = vrot.lane.b32.xlu1 %v3889_v52, %s4117_s27  ;;  %v1939_v59 = vsel %vm4182_vm2, %v3760_v7, %v1938_v54  ;;  %v1940_v60 = vrot.slane %v1938_v54, 4  ;;  %v343_v61 = vshll.u32 %v222_v9, 16  ;;  %v349_v63 = vshll.u32 %v223_v51, 16  ;;  %v3620_v9 = vld [vmem:[%s4158_s20 + $0x24] sm:$0xf] }
  0x37   : > { %2672 = vrot.lane.b32.xlu0 %v3888_v55, %s4117_s27  ;;  %v328_v20 = vsel %vm4226_vm5, %v323_v56, %v327_v48  ;;  %v333_v2 = vrot.slane %v332_v57, 4  ;;  %v342_v4 = vrot.slane %v340_v12, 4  ;;  %v353_v5 = vshrl.u32 %v223_v51, 16  ;;  %v3651_v54 = vld [vmem:[%s4158_s20 + $0x38] sm:$0x1] }
  0x38   : > { %v1942_v6 = vsel %vm4182_vm2, %v1940_v60, %v1941_v45  ;;  %v345_v8 = vrot.slane %v343_v61, 5  ;;  %v351_v10 = vrot.slane %v349_v63, 5  ;;  %v359_v11 = vshll.u32 %v251_v58, 16  ;;  %v3650_v61 = vld [vmem:[%s4158_s20 + $0x2c] sm:$0x1] }
  0x39   : > { %v338_v15 = vsel %vm4226_vm5, %v333_v2, %v337_v50  ;;  %v3904_v16 = vcombine.low %v1939_v59, %v1942_v6  ;;  %v355_v18 = vrot.slane %v353_v5, 4  ;;  %v3761_v21 = vrot.slane %v3745_v0, 9  ;;  %v3667_v63 = vld [vmem:[%s4158_s20 + $0x30] sm:$0xe] }
  0x3a   : > { %v3794_v22 = vcombine.low %v328_v20, %v338_v15  ;;  %v346_v23 = vor.u32 %v345_v8, %v342_v4  ;;  %v361_v24 = vrot.slane %v359_v11, 5  ;;  %v1945_v25 = vrot.slane %v4247_v3, 5  ;;  %v4330_v3 = vld [vmem:[%s4158_s20 + $0x30] sm:$0xf]  ;;  %v3666_v11 = vld [vmem:[%s4158_s20 + $0x24] sm:$0xe] }
  0x3b   : > { %2752 = vrot.lane.b32.xlu0 %v3904_v16, %s4118_s28  ;;  %v356_v28 = vor.u32 %v355_v18, %v351_v10  ;;  %v1948_v29 = vrot.slane %v4268_v62, 5  ;;  %v3603_v31 = vrot.slane %v654_v14, 9  ;;  %v741_v32 = vrot.slane %v223_v51, 5 }
  0x3c   : > { %2164 = vrot.lane.b32.xlu1 %v3794_v22, %s4114_s24  ;;  %v347_v33 = vrot.slane %v346_v23, 4  ;;  %v1946_v35 = vsel %vm4182_vm2, %v3761_v21, %v1945_v25  ;;  %v1947_v36 = vrot.slane %v1945_v25, 4  ;;  %v744_v34 = vrot.slane %v251_v58, 5 }
  0x3d   : > { %v357_v37 = vrot.slane %v356_v28, 4  ;;  %v742_v38 = vsel %vm4182_vm2, %v3603_v31, %v741_v32  ;;  %v743_v62 = vrot.slane %v741_v32, 4  ;;  %v3602_v39 = vrot.slane %v653_v27, 9  ;;  %v4368_v31 = vld [vmem:[%s4158_s20 + $0x3c] sm:$0xf] }
  0x3e   : > { %v352_v41 = vsel %vm4226_vm5, %v347_v33, %v351_v10  ;;  %v1949_v42 = vsel %vm4182_vm2, %v1947_v36, %v1948_v29  ;;  %v734_v43 = vrot.slane %v4285_v26, 5  ;;  %v737_v44 = vrot.slane %v4289_v30, 5 }
  0x3f   : > { %v362_v1 = vsel %vm4226_vm5, %v357_v37, %v361_v24  ;;  %v3905_v47 = vcombine.low %v1946_v35, %v1949_v42  ;;  %v745_v48 = vsel %vm4182_vm2, %v743_v62, %v744_v34  ;;  %v952_v7 = vshrl.u32 %v4330_v3, 16 }
  0x40   : > { %v3795_v40 = vcombine.low %v352_v41, %v362_v1  ;;  %v3811_v13 = vcombine.low %v742_v38, %v745_v48  ;;  %v735_v26 = vsel %vm4182_vm2, %v3602_v39, %v734_v43  ;;  %v736_v30 = vrot.slane %v734_v43, 4  ;;  %v4382_v41 = vld [vmem:[%s4158_s20 + $0x40] sm:$0xf]  ;;  %v3700_v48 = vld [vmem:[%s4158_s20 + $0x30] sm:$0xf] }
  0x41   : > { %2754 = vrot.lane.b32.xlu0 %v3905_v47, %s4118_s28  ;;  %v954_v50 = vrot.slane %v952_v7, 4  ;;  %v955_v51 = vshll.u32 %v4330_v3, 16  ;;  %v965_v52 = vshrl.u32 %v3623_v46, 16  ;;  %v3827_v53 = vcombine.low %v4330_v3, %v3623_v46  ;;  %v4392_v7 = vld [vmem:[%s4158_s20 + $0x34] sm:$0xf] }
  0x42   : > { %2166 = vrot.lane.b32.xlu1 %v3795_v40, %s4114_s24  ;;  %v738_v45 = vsel %vm4182_vm2, %v736_v30, %v737_v44  ;;  %v928_v55 = vshrl.u32 %v3620_v9, 16  ;;  %v931_v56 = vshll.u32 %v3620_v9, 16  ;;  %v941_v57 = vshrl.u32 %v4348_v49, 16 }
  0x43   : > { %v3810_v58 = vcombine.low %v735_v26, %v738_v45  ;;  %v957_v12 = vrot.slane %v955_v51, 5  ;;  %v3826_v59 = vcombine.low %v3620_v9, %v4348_v49  ;;  %v961_v60 = vshll.u32 %v3623_v46, 16 }
  0x44   : > { %v930_v0 = vrot.slane %v928_v55, 4  ;;  %v933_v20 = vrot.slane %v931_v56, 5  ;;  %v967_v2 = vrot.slane %v965_v52, 4  ;;  %v971_v4 = vshll.u32 %v3651_v54, 16  ;;  %v4403_v52 = vld [vmem:[%s4158_s20 + $0x44] sm:$0x1] }
  0x45   : > { %2244 = vrot.lane.b32.xlu0 %v3810_v58, %s4113_s23  ;;  %v958_v5 = vor.u32 %v957_v12, %v954_v50  ;;  %v963_v6 = vrot.slane %v961_v60, 5  ;;  %v937_v8 = vshll.u32 %v4348_v49, 16  ;;  %v943_v10 = vrot.slane %v941_v57, 4  ;;  %v4407_v56 = vld [vmem:[%s4158_s20 + $0x38] sm:$0x1] }
  0x46   : > { %2246 = vrot.lane.b32.xlu1 %v3811_v13, %s4113_s23  ;;  %v973_v14 = vrot.slane %v971_v4, 5  ;;  %v934_v15 = vor.u32 %v933_v20, %v930_v0  ;;  %v947_v16 = vshll.u32 %v3650_v61, 16  ;;  %v3683_v18 = vrot.slane %v3667_v63, 9  ;;  %v224_v60 = vld [vmem:[%s4158_s20 + $0x30] sm:$0xf] }
  0x47   : > { %v959_v21 = vrot.slane %v958_v5, 4  ;;  %v968_v22 = vor.u32 %v967_v2, %v963_v6  ;;  %v939_v23 = vrot.slane %v937_v8, 5  ;;  %v1350_v24 = vrot.slane %v3623_v46, 5  ;;  %v4418_v8 = vld [vmem:[%s4158_s20 + $0x34] sm:$0xf] }
  0x48   : > { %v935_v25 = vrot.slane %v934_v15, 4  ;;  %v949_v27 = vrot.slane %v947_v16, 5  ;;  %v1353_v28 = vrot.slane %v3651_v54, 5  ;;  %v3682_v29 = vrot.slane %v3666_v11, 9  ;;  %v4421_v15 = vld [vmem:[%s4158_s20 + $0x38] sm:$0x1] }
  0x49   : > { %2340 = vrot.lane.b32.xlu0 %v3826_v59, %s4111_s21  ;;  %v964_v32 = vsel %vm4226_vm5, %v959_v21, %v963_v6  ;;  %v969_v33 = vrot.slane %v968_v22, 4  ;;  %v944_v35 = vor.u32 %v943_v10, %v939_v23  ;;  %v1351_v36 = vsel %vm4182_vm2, %v3683_v18, %v1350_v24 }
  0x4a   : > { %2342 = vrot.lane.b32.xlu1 %v3827_v53, %s4111_s21  ;;  %v940_v34 = vsel %vm4226_vm5, %v935_v25, %v939_v23  ;;  %v1352_v3 = vrot.slane %v1350_v24, 4  ;;  %v1343_v37 = vrot.slane %v4348_v49, 5  ;;  %v1346_v38 = vrot.slane %v3650_v61, 5  ;;  %v3746_v24 = vld [vmem:[%s4158_s20 + $0x30] sm:$0xe] }
  0x4b   : > { %v974_v62 = vsel %vm4226_vm5, %v969_v33, %v973_v14  ;;  %v945_v39 = vrot.slane %v944_v35, 4  ;;  %v1561_v42 = vshrl.u32 %v4368_v31, 16  ;;  %v1564_v43 = vshll.u32 %v4368_v31, 16 }
  0x4c   : > { %v3843_v44 = vcombine.low %v964_v32, %v974_v62  ;;  %v1354_v46 = vsel %vm4182_vm2, %v1352_v3, %v1353_v28  ;;  %v1344_v1 = vsel %vm4182_vm2, %v3682_v29, %v1343_v37  ;;  %v1345_v47 = vrot.slane %v1343_v37, 4 }
  0x4d   : > { %v950_v9 = vsel %vm4226_vm5, %v945_v39, %v949_v27  ;;  %v3859_v49 = vcombine.low %v1351_v36, %v1354_v46  ;;  %v1563_v40 = vrot.slane %v1561_v42, 4  ;;  %v1566_v13 = vrot.slane %v1564_v43, 5 }
  0x4e   : > { %2422 = vrot.lane.b32.xlu1 %v3843_v44, %s4115_s25  ;;  %v3842_v26 = vcombine.low %v940_v34, %v950_v9  ;;  %v1347_v30 = vsel %vm4182_vm2, %v1345_v47, %v1346_v38  ;;  %v1574_v50 = vshrl.u32 %v4382_v41, 16  ;;  %v3875_v51 = vcombine.low %v4368_v31, %v4382_v41  ;;  %v226_v38 = vld [vmem:[%s4158_s20 + $0x3c] sm:$0xf]  ;;  %v227_v44 = vld [vmem:[%s4158_s20 + $0x40] sm:$0xf] }
  0x4f   : > { %v3858_v53 = vcombine.low %v1344_v1, %v1347_v30  ;;  %v1537_v54 = vshrl.u32 %v3700_v48, 16  ;;  %v1540_v45 = vshll.u32 %v3700_v48, 16  ;;  %v1550_v55 = vshrl.u32 %v4392_v7, 16 }
  0x50   : > { %2420 = vrot.lane.b32.xlu0 %v3842_v26, %s4115_s25  ;;  %v3874_v57 = vcombine.low %v3700_v48, %v4392_v7  ;;  %v1567_v58 = vor.u32 %v1566_v13, %v1563_v40  ;;  %v1570_v12 = vshll.u32 %v4382_v41, 16  ;;  %v1576_v59 = vrot.slane %v1574_v50, 4  ;;  %v253_v13 = vld [vmem:[%s4158_s20 + $0x44] sm:$0x1] }
  0x51   : > { %v1539_v61 = vrot.slane %v1537_v54, 4  ;;  %v1542_v63 = vrot.slane %v1540_v45, 5  ;;  %v1580_v0 = vshll.u32 %v4403_v52, 16  ;;  %v1546_v20 = vshll.u32 %v4392_v7, 16  ;;  %v3747_v54 = vld [vmem:[%s4158_s20 + $0x3c] sm:$0xe] }
  0x52   : > { %2502 = vrot.lane.b32.xlu1 %v3859_v49, %s4112_s22  ;;  %v1568_v2 = vrot.slane %v1567_v58, 4  ;;  %v1572_v4 = vrot.slane %v1570_v12, 5  ;;  %v1552_v5 = vrot.slane %v1550_v55, 4  ;;  %v1556_v6 = vshll.u32 %v4407_v56, 16 }
  0x53   : > { %v1582_v10 = vrot.slane %v1580_v0, 5  ;;  %v1543_v11 = vor.u32 %v1542_v63, %v1539_v61  ;;  %v1548_v14 = vrot.slane %v1546_v20, 5  ;;  %v364_v16 = vshrl.u32 %v224_v60, 16 }
  0x54   : > { %2500 = vrot.lane.b32.xlu0 %v3858_v53, %s4112_s22  ;;  %v1573_v18 = vsel %vm4226_vm5, %v1568_v2, %v1572_v4  ;;  %v1577_v21 = vor.u32 %v1576_v59, %v1572_v4  ;;  %v1558_v22 = vrot.slane %v1556_v6, 5  ;;  %v367_v23 = vshll.u32 %v224_v60, 16  ;;  %v656_v60 = vld [vmem:[%s4158_s20 + $0x3c] sm:$0xe] }
  0x55   : > { %v1544_v25 = vrot.slane %v1543_v11, 4  ;;  %v1553_v27 = vor.u32 %v1552_v5, %v1548_v14  ;;  %v366_v28 = vrot.slane %v364_v16, 4  ;;  %v373_v29 = vshll.u32 %v4418_v8, 16 }
  0x56   : > { %2598 = vrot.lane.b32.xlu1 %v3875_v51, %s4116_s26  ;;  %v1578_v31 = vrot.slane %v1577_v21, 4  ;;  %v369_v32 = vrot.slane %v367_v23, 5  ;;  %v377_v33 = vshrl.u32 %v4418_v8, 16  ;;  %v383_v35 = vshll.u32 %v4421_v15, 16 }
  0x57   : > { %v1549_v36 = vsel %vm4226_vm5, %v1544_v25, %v1548_v14  ;;  %v1554_v34 = vrot.slane %v1553_v27, 4  ;;  %v375_v3 = vrot.slane %v373_v29, 5  ;;  %v3762_v37 = vrot.slane %v3746_v24, 9 }
  0x58   : > { %2596 = vrot.lane.b32.xlu0 %v3874_v57, %s4116_s26  ;;  %v1583_v62 = vsel %vm4226_vm5, %v1578_v31, %v1582_v10  ;;  %v370_v39 = vor.u32 %v369_v32, %v366_v28  ;;  %v379_v42 = vrot.slane %v377_v33, 4  ;;  %v385_v43 = vrot.slane %v383_v35, 5  ;;  %v655_v10 = vld [vmem:[%s4158_s20 + $0x30] sm:$0xe]  ;;  %v3627_v35 = vld [vmem:[%s4158_s20 + $0x4c] sm:$0xf] }
  0x59   : > { %v3891_v46 = vcombine.low %v1573_v18, %v1583_v62  ;;  %v1559_v1 = vsel %vm4226_vm5, %v1554_v34, %v1558_v22  ;;  %v1952_v47 = vrot.slane %v4392_v7, 5  ;;  %v1955_v48 = vrot.slane %v4407_v56, 5  ;;  %v4481_v62 = vld [vmem:[%s4158_s20 + $0x40] sm:$0xf] }
  0x5a   : > { %v3890_v9 = vcombine.low %v1549_v36, %v1559_v1  ;;  %v371_v49 = vrot.slane %v370_v39, 4  ;;  %v380_v40 = vor.u32 %v379_v42, %v375_v3  ;;  %v388_v26 = vshrl.u32 %v226_v38, 16 }
  0x5b   : > { %2678 = vrot.lane.b32.xlu1 %v3891_v46, %s4117_s27  ;;  %v1953_v30 = vsel %vm4182_vm2, %v3762_v37, %v1952_v47  ;;  %v1954_v50 = vrot.slane %v1952_v47, 4  ;;  %v391_v51 = vshll.u32 %v226_v38, 16  ;;  %v397_v53 = vshll.u32 %v227_v44, 16  ;;  %v3624_v38 = vld [vmem:[%s4158_s20 + $0x3c] sm:$0xf] }
  0x5c   : > { %2676 = vrot.lane.b32.xlu0 %v3890_v9, %s4117_s27  ;;  %v376_v7 = vsel %vm4226_vm5, %v371_v49, %v375_v3  ;;  %v381_v45 = vrot.slane %v380_v40, 4  ;;  %v390_v55 = vrot.slane %v388_v26, 4  ;;  %v401_v56 = vshrl.u32 %v227_v44, 16  ;;  %v3653_v47 = vld [vmem:[%s4158_s20 + $0x50] sm:$0x1] }
  0x5d   : > { %v1956_v57 = vsel %vm4182_vm2, %v1954_v50, %v1955_v48  ;;  %v393_v58 = vrot.slane %v391_v51, 5  ;;  %v399_v12 = vrot.slane %v397_v53, 5  ;;  %v407_v59 = vshll.u32 %v253_v13, 16  ;;  %v3652_v51 = vld [vmem:[%s4158_s20 + $0x44] sm:$0x1] }
  0x5e   : > { %v386_v61 = vsel %vm4226_vm5, %v381_v45, %v385_v43  ;;  %v3906_v63 = vcombine.low %v1953_v30, %v1956_v57  ;;  %v403_v0 = vrot.slane %v401_v56, 4  ;;  %v3763_v20 = vrot.slane %v3747_v54, 9  ;;  %v3669_v53 = vld [vmem:[%s4158_s20 + $0x48] sm:$0xe] }
  0x5f   : > { %v3796_v2 = vcombine.low %v376_v7, %v386_v61  ;;  %v394_v4 = vor.u32 %v393_v58, %v390_v55  ;;  %v409_v5 = vrot.slane %v407_v59, 5  ;;  %v1959_v6 = vrot.slane %v4382_v41, 5  ;;  %v4463_v41 = vld [vmem:[%s4158_s20 + $0x48] sm:$0xf]  ;;  %v3668_v59 = vld [vmem:[%s4158_s20 + $0x3c] sm:$0xe] }
  0x60   : > { %2756 = vrot.lane.b32.xlu0 %v3906_v63, %s4118_s28  ;;  %v404_v11 = vor.u32 %v403_v0, %v399_v12  ;;  %v1962_v14 = vrot.slane %v4403_v52, 5  ;;  %v3605_v16 = vrot.slane %v656_v60, 9  ;;  %v755_v18 = vrot.slane %v227_v44, 5 }
  0x61   : > { %2168 = vrot.lane.b32.xlu1 %v3796_v2, %s4114_s24  ;;  %v395_v21 = vrot.slane %v394_v4, 4  ;;  %v1960_v22 = vsel %vm4182_vm2, %v3763_v20, %v1959_v6  ;;  %v1961_v23 = vrot.slane %v1959_v6, 4  ;;  %v758_v24 = vrot.slane %v253_v13, 5 }
  0x62   : > { %v405_v25 = vrot.slane %v404_v11, 4  ;;  %v756_v27 = vsel %vm4182_vm2, %v3605_v16, %v755_v18  ;;  %v757_v52 = vrot.slane %v755_v18, 4  ;;  %v3604_v28 = vrot.slane %v655_v10, 9  ;;  %v4501_v16 = vld [vmem:[%s4158_s20 + $0x54] sm:$0xf] }
  0x63   : > { %v400_v29 = vsel %vm4226_vm5, %v395_v21, %v399_v12  ;;  %v1963_v31 = vsel %vm4182_vm2, %v1961_v23, %v1962_v14  ;;  %v748_v32 = vrot.slane %v4418_v8, 5  ;;  %v751_v33 = vrot.slane %v4421_v15, 5 }
  0x64   : > { %v410_v36 = vsel %vm4226_vm5, %v405_v25, %v409_v5  ;;  %v3907_v34 = vcombine.low %v1960_v22, %v1963_v31  ;;  %v759_v3 = vsel %vm4182_vm2, %v757_v52, %v758_v24  ;;  %v1000_v37 = vshrl.u32 %v4463_v41, 16 }
  0x65   : > { %v3797_v39 = vcombine.low %v400_v29, %v410_v36  ;;  %v3813_v42 = vcombine.low %v756_v27, %v759_v3  ;;  %v749_v8 = vsel %vm4182_vm2, %v3604_v28, %v748_v32  ;;  %v750_v15 = vrot.slane %v748_v32, 4  ;;  %v4515_v29 = vld [vmem:[%s4158_s20 + $0x58] sm:$0xf]  ;;  %v3704_v3 = vld [vmem:[%s4158_s20 + $0x48] sm:$0xf] }
  0x66   : > { %2758 = vrot.lane.b32.xlu0 %v3907_v34, %s4118_s28  ;;  %v1002_v43 = vrot.slane %v1000_v37, 4  ;;  %v1003_v44 = vshll.u32 %v4463_v41, 16  ;;  %v1013_v46 = vshrl.u32 %v3627_v35, 16  ;;  %v3829_v1 = vcombine.low %v4463_v41, %v3627_v35  ;;  %v4525_v37 = vld [vmem:[%s4158_s20 + $0x4c] sm:$0xf] }
  0x67   : > { %2170 = vrot.lane.b32.xlu1 %v3797_v39, %s4114_s24  ;;  %v752_v48 = vsel %vm4182_vm2, %v750_v15, %v751_v33  ;;  %v976_v9 = vshrl.u32 %v3624_v38, 16  ;;  %v979_v49 = vshll.u32 %v3624_v38, 16  ;;  %v989_v40 = vshrl.u32 %v4481_v62, 16 }
  0x68   : > { %v3812_v13 = vcombine.low %v749_v8, %v752_v48  ;;  %v1005_v26 = vrot.slane %v1003_v44, 5  ;;  %v3828_v30 = vcombine.low %v3624_v38, %v4481_v62  ;;  %v1009_v50 = vshll.u32 %v3627_v35, 16 }
  0x69   : > { %v978_v54 = vrot.slane %v976_v9, 4  ;;  %v981_v7 = vrot.slane %v979_v49, 5  ;;  %v1015_v45 = vrot.slane %v1013_v46, 4  ;;  %v1019_v55 = vshll.u32 %v3653_v47, 16  ;;  %v4536_v46 = vld [vmem:[%s4158_s20 + $0x5c] sm:$0x1] }
  0x6a   : > { %2248 = vrot.lane.b32.xlu0 %v3812_v13, %s4113_s23  ;;  %v1006_v56 = vor.u32 %v1005_v26, %v1002_v43  ;;  %v1011_v57 = vrot.slane %v1009_v50, 5  ;;  %v985_v58 = vshll.u32 %v4481_v62, 16  ;;  %v991_v12 = vrot.slane %v989_v40, 4  ;;  %v4540_v49 = vld [vmem:[%s4158_s20 + $0x50] sm:$0x1] }
  0x6b   : > { %2250 = vrot.lane.b32.xlu1 %v3813_v42, %s4113_s23  ;;  %v1021_v60 = vrot.slane %v1019_v55, 5  ;;  %v982_v61 = vor.u32 %v981_v7, %v978_v54  ;;  %v995_v63 = vshll.u32 %v3652_v51, 16  ;;  %v3685_v0 = vrot.slane %v3669_v53, 9  ;;  %v228_v50 = vld [vmem:[%s4158_s20 + $0x48] sm:$0xf] }
  0x6c   : > { %v1007_v20 = vrot.slane %v1006_v56, 4  ;;  %v1016_v2 = vor.u32 %v1015_v45, %v1011_v57  ;;  %v987_v4 = vrot.slane %v985_v58, 5  ;;  %v1364_v5 = vrot.slane %v3627_v35, 5  ;;  %v4551_v58 = vld [vmem:[%s4158_s20 + $0x4c] sm:$0xf] }
  0x6d   : > { %v983_v6 = vrot.slane %v982_v61, 4  ;;  %v997_v10 = vrot.slane %v995_v63, 5  ;;  %v1367_v11 = vrot.slane %v3653_v47, 5  ;;  %v3684_v14 = vrot.slane %v3668_v59, 9  ;;  %v4554_v61 = vld [vmem:[%s4158_s20 + $0x50] sm:$0x1] }
  0x6e   : > { %2344 = vrot.lane.b32.xlu0 %v3828_v30, %s4111_s21  ;;  %v1012_v18 = vsel %vm4226_vm5, %v1007_v20, %v1011_v57  ;;  %v1017_v21 = vrot.slane %v1016_v2, 4  ;;  %v992_v22 = vor.u32 %v991_v12, %v987_v4  ;;  %v1365_v23 = vsel %vm4182_vm2, %v3685_v0, %v1364_v5 }
  0x6f   : > { %2346 = vrot.lane.b32.xlu1 %v3829_v1, %s4111_s21  ;;  %v988_v24 = vsel %vm4226_vm5, %v983_v6, %v987_v4  ;;  %v1366_v41 = vrot.slane %v1364_v5, 4  ;;  %v1357_v25 = vrot.slane %v4481_v62, 5  ;;  %v1360_v27 = vrot.slane %v3652_v51, 5  ;;  %v3748_v5 = vld [vmem:[%s4158_s20 + $0x48] sm:$0xe] }
  0x70   : > { %v1022_v52 = vsel %vm4226_vm5, %v1017_v21, %v1021_v60  ;;  %v993_v28 = vrot.slane %v992_v22, 4  ;;  %v1609_v31 = vshrl.u32 %v4501_v16, 16  ;;  %v1612_v32 = vshll.u32 %v4501_v16, 16 }
  0x71   : > { %v3845_v33 = vcombine.low %v1012_v18, %v1022_v52  ;;  %v1368_v35 = vsel %vm4182_vm2, %v1366_v41, %v1367_v11  ;;  %v1358_v36 = vsel %vm4182_vm2, %v3684_v14, %v1357_v25  ;;  %v1359_v34 = vrot.slane %v1357_v25, 4 }
  0x72   : > { %v998_v38 = vsel %vm4226_vm5, %v993_v28, %v997_v10  ;;  %v3861_v62 = vcombine.low %v1365_v23, %v1368_v35  ;;  %v1611_v39 = vrot.slane %v1609_v31, 4  ;;  %v1614_v42 = vrot.slane %v1612_v32, 5 }
  0x73   : > { %2426 = vrot.lane.b32.xlu1 %v3845_v33, %s4115_s25  ;;  %v3844_v8 = vcombine.low %v988_v24, %v998_v38  ;;  %v1361_v15 = vsel %vm4182_vm2, %v1359_v34, %v1360_v27  ;;  %v1622_v43 = vshrl.u32 %v4515_v29, 16  ;;  %v3877_v44 = vcombine.low %v4501_v16, %v4515_v29  ;;  %v230_v27 = vld [vmem:[%s4158_s20 + $0x54] sm:$0xf]  ;;  %v231_v33 = vld [vmem:[%s4158_s20 + $0x58] sm:$0xf] }
  0x74   : > { %v3860_v1 = vcombine.low %v1358_v36, %v1361_v15  ;;  %v1585_v47 = vshrl.u32 %v3704_v3, 16  ;;  %v1588_v48 = vshll.u32 %v3704_v3, 16  ;;  %v1598_v9 = vshrl.u32 %v4525_v37, 16 }
  0x75   : > { %2424 = vrot.lane.b32.xlu0 %v3844_v8, %s4115_s25  ;;  %v3876_v40 = vcombine.low %v3704_v3, %v4525_v37  ;;  %v1615_v13 = vor.u32 %v1614_v42, %v1611_v39  ;;  %v1618_v26 = vshll.u32 %v4515_v29, 16  ;;  %v1624_v30 = vrot.slane %v1622_v43, 4  ;;  %v255_v42 = vld [vmem:[%s4158_s20 + $0x5c] sm:$0x1] }
  0x76   : > { %v1587_v51 = vrot.slane %v1585_v47, 4  ;;  %v1590_v53 = vrot.slane %v1588_v48, 5  ;;  %v1628_v54 = vshll.u32 %v4536_v46, 16  ;;  %v1594_v7 = vshll.u32 %v4525_v37, 16  ;;  %v3749_v47 = vld [vmem:[%s4158_s20 + $0x54] sm:$0xe] }
  0x77   : > { %2506 = vrot.lane.b32.xlu1 %v3861_v62, %s4112_s22  ;;  %v1616_v45 = vrot.slane %v1615_v13, 4  ;;  %v1620_v55 = vrot.slane %v1618_v26, 5  ;;  %v1600_v56 = vrot.slane %v1598_v9, 4  ;;  %v1604_v57 = vshll.u32 %v4540_v49, 16 }
  0x78   : > { %v1630_v12 = vrot.slane %v1628_v54, 5  ;;  %v1591_v59 = vor.u32 %v1590_v53, %v1587_v51  ;;  %v1596_v60 = vrot.slane %v1594_v7, 5  ;;  %v412_v63 = vshrl.u32 %v228_v50, 16 }
  0x79   : > { %2504 = vrot.lane.b32.xlu0 %v3860_v1, %s4112_s22  ;;  %v1621_v0 = vsel %vm4226_vm5, %v1616_v45, %v1620_v55  ;;  %v1625_v20 = vor.u32 %v1624_v30, %v1620_v55  ;;  %v1606_v2 = vrot.slane %v1604_v57, 5  ;;  %v415_v4 = vshll.u32 %v228_v50, 16  ;;  %v658_v50 = vld [vmem:[%s4158_s20 + $0x54] sm:$0xe] }
  0x7a   : > { %v1592_v6 = vrot.slane %v1591_v59, 4  ;;  %v1601_v10 = vor.u32 %v1600_v56, %v1596_v60  ;;  %v414_v11 = vrot.slane %v412_v63, 4  ;;  %v421_v14 = vshll.u32 %v4551_v58, 16 }
  0x7b   : > { %2602 = vrot.lane.b32.xlu1 %v3877_v44, %s4116_s26  ;;  %v1626_v16 = vrot.slane %v1625_v20, 4  ;;  %v417_v18 = vrot.slane %v415_v4, 5  ;;  %v425_v21 = vshrl.u32 %v4551_v58, 16  ;;  %v431_v22 = vshll.u32 %v4554_v61, 16 }
  0x7c   : > { %v1597_v23 = vsel %vm4226_vm5, %v1592_v6, %v1596_v60  ;;  %v1602_v24 = vrot.slane %v1601_v10, 4  ;;  %v423_v41 = vrot.slane %v421_v14, 5  ;;  %v3764_v25 = vrot.slane %v3748_v5, 9  ;;  %v4596_v6 = vld [vmem:[%s4158_s20 + $0x60] sm:$0xf] }
  0x7d   : > { %2600 = vrot.lane.b32.xlu0 %v3876_v40, %s4116_s26  ;;  %v1631_v52 = vsel %vm4226_vm5, %v1626_v16, %v1630_v12  ;;  %v418_v28 = vor.u32 %v417_v18, %v414_v11  ;;  %v427_v31 = vrot.slane %v425_v21, 4  ;;  %v433_v32 = vrot.slane %v431_v22, 5  ;;  %v657_v12 = vld [vmem:[%s4158_s20 + $0x48] sm:$0xe] }
  0x7e   : > { %v3893_v35 = vcombine.low %v1621_v0, %v1631_v52  ;;  %v1607_v36 = vsel %vm4226_vm5, %v1602_v24, %v1606_v2  ;;  %v1966_v34 = vrot.slane %v4525_v37, 5  ;;  %v1969_v3 = vrot.slane %v4540_v49, 5  ;;  %v3628_v52 = vld [vmem:[%s4158_s20 + $0x54] sm:$0xf] }
  0x7f   : > { %v3892_v38 = vcombine.low %v1597_v23, %v1607_v36  ;;  %v419_v62 = vrot.slane %v418_v28, 4  ;;  %v428_v39 = vor.u32 %v427_v31, %v423_v41  ;;  %v436_v8 = vshrl.u32 %v230_v27, 16  ;;  %v4609_v23 = vld [vmem:[%s4158_s20 + $0x64] sm:$0xf]  ;;  %v4618_v28 = vld [vmem:[%s4158_s20 + $0x58] sm:$0xf] }
  0x80   : > { %2682 = vrot.lane.b32.xlu1 %v3893_v35, %s4117_s27  ;;  %v1967_v15 = vsel %vm4182_vm2, %v3764_v25, %v1966_v34  ;;  %v1968_v43 = vrot.slane %v1966_v34, 4  ;;  %v439_v44 = vshll.u32 %v230_v27, 16  ;;  %v445_v1 = vshll.u32 %v231_v33, 16 }
  0x81   : > { %2680 = vrot.lane.b32.xlu0 %v3892_v38, %s4117_s27  ;;  %v424_v37 = vsel %vm4226_vm5, %v419_v62, %v423_v41  ;;  %v429_v48 = vrot.slane %v428_v39, 4  ;;  %v438_v9 = vrot.slane %v436_v8, 4  ;;  %v449_v49 = vshrl.u32 %v231_v33, 16 }
  0x82   : > { %v1970_v40 = vsel %vm4182_vm2, %v1968_v43, %v1969_v3  ;;  %v441_v13 = vrot.slane %v439_v44, 5  ;;  %v447_v26 = vrot.slane %v445_v1, 5  ;;  %v455_v30 = vshll.u32 %v255_v42, 16  ;;  %v3655_v3 = vld [vmem:[%s4158_s20 + $0x68] sm:$0x1] }
  0x83   : > { %v434_v51 = vsel %vm4226_vm5, %v429_v48, %v433_v32  ;;  %v3908_v53 = vcombine.low %v1967_v15, %v1970_v40  ;;  %v451_v54 = vrot.slane %v449_v49, 4  ;;  %v3765_v7 = vrot.slane %v3749_v47, 9  ;;  %v3654_v47 = vld [vmem:[%s4158_s20 + $0x5c] sm:$0x1] }
  0x84   : > { %v3798_v45 = vcombine.low %v424_v37, %v434_v51  ;;  %v442_v55 = vor.u32 %v441_v13, %v438_v9  ;;  %v457_v56 = vrot.slane %v455_v30, 5  ;;  %v1973_v57 = vrot.slane %v4515_v29, 5  ;;  %v4600_v14 = vpop.permute.xlu1 %2338  ;;  %v3671_v37 = vld [vmem:[%s4158_s20 + $0x60] sm:$0xe] }
  0x85   : > { %2760 = vrot.lane.b32.xlu0 %v3908_v53, %s4118_s28  ;;  %v452_v59 = vor.u32 %v451_v54, %v447_v26  ;;  %v1976_v60 = vrot.slane %v4536_v46, 5  ;;  %v3607_v63 = vrot.slane %v658_v50, 9  ;;  %v769_v0 = vrot.slane %v231_v33, 5  ;;  %v4632_v8 = vpop.permute.xlu0 %2336  ;;  %v3670_v53 = vld [vmem:[%s4158_s20 + $0x54] sm:$0xe] }
  0x86   : > { %2172 = vrot.lane.b32.xlu1 %v3798_v45, %s4114_s24  ;;  %v443_v20 = vrot.slane %v442_v55, 4  ;;  %v1974_v2 = vsel %vm4182_vm2, %v3765_v7, %v1973_v57  ;;  %v1975_v4 = vrot.slane %v1973_v57, 4  ;;  %v772_v5 = vrot.slane %v255_v42, 5 }
  0x87   : > { %v453_v29 = vrot.slane %v452_v59, 4  ;;  %v770_v10 = vsel %vm4182_vm2, %v3607_v63, %v769_v0  ;;  %v771_v46 = vrot.slane %v769_v0, 4  ;;  %v3606_v11 = vrot.slane %v657_v12, 9 }
  0x88   : > { %v448_v16 = vsel %vm4226_vm5, %v443_v20, %v447_v26  ;;  %v1977_v18 = vsel %vm4182_vm2, %v1975_v4, %v1976_v60  ;;  %v762_v21 = vrot.slane %v4551_v58, 5  ;;  %v765_v22 = vrot.slane %v4554_v61, 5  ;;  %v4648_v4 = vld [vmem:[%s4158_s20 + $0x6c] sm:$0xf] }
  0x89   : > { %v458_v24 = vsel %vm4226_vm5, %v453_v29, %v457_v56  ;;  %v3909_v41 = vcombine.low %v1974_v2, %v1977_v18  ;;  %v773_v25 = vsel %vm4182_vm2, %v771_v46, %v772_v5  ;;  %v1048_v27 = vshrl.u32 %v4596_v6, 16 }
  0x8a   : > { %v3799_v31 = vcombine.low %v448_v16, %v458_v24  ;;  %v3815_v32 = vcombine.low %v770_v10, %v773_v25  ;;  %v763_v58 = vsel %vm4182_vm2, %v3606_v11, %v762_v21  ;;  %v764_v61 = vrot.slane %v762_v21, 4  ;;  %v4664_v24 = vld [vmem:[%s4158_s20 + $0x70] sm:$0xf] }
  0x8b   : > { %2762 = vrot.lane.b32.xlu0 %v3909_v41, %s4118_s28  ;;  %v1050_v33 = vrot.slane %v1048_v27, 4  ;;  %v1051_v35 = vshll.u32 %v4596_v6, 16  ;;  %v1061_v36 = vshrl.u32 %v4609_v23, 16  ;;  %v3831_v34 = vcombine.low %v4596_v6, %v4609_v23 }
  0x8c   : > { %2174 = vrot.lane.b32.xlu1 %v3799_v31, %s4114_s24  ;;  %v766_v38 = vsel %vm4182_vm2, %v764_v61, %v765_v22  ;;  %v1024_v62 = vshrl.u32 %v3628_v52, 16  ;;  %v1027_v39 = vshll.u32 %v3628_v52, 16  ;;  %v1037_v42 = vshrl.u32 %v4618_v28, 16  ;;  %v4650_v5 = vpop.permute.xlu0 %2496 }
  0x8d   : > { %v3814_v15 = vcombine.low %v763_v58, %v766_v38  ;;  %v1053_v43 = vrot.slane %v1051_v35, 5  ;;  %v3830_v44 = vcombine.low %v3628_v52, %v4618_v28  ;;  %v1057_v1 = vshll.u32 %v4609_v23, 16  ;;  %v4638_v48 = vpop.permute.xlu1 %2240  ;;  %v4676_v58 = vld [vmem:[%s4158_s20 + $0x64] sm:$0xf] }
  0x8e   : > { %v1026_v9 = vrot.slane %v1024_v62, 4  ;;  %v1029_v49 = vrot.slane %v1027_v39, 5  ;;  %v1063_v40 = vrot.slane %v1061_v36, 4  ;;  %v1067_v13 = vshll.u32 %v3655_v3, 16 }
  0x8f   : > { %2252 = vrot.lane.b32.xlu0 %v3814_v15, %s4113_s23  ;;  %v1054_v26 = vor.u32 %v1053_v43, %v1050_v33  ;;  %v1059_v30 = vrot.slane %v1057_v1, 5  ;;  %v1033_v50 = vshll.u32 %v4618_v28, 16  ;;  %v1039_v51 = vrot.slane %v1037_v42, 4  ;;  %v4689_v42 = vld [vmem:[%s4158_s20 + $0x74] sm:$0x1] }
  0x90   : > { %2254 = vrot.lane.b32.xlu1 %v3815_v32, %s4113_s23  ;;  %v1069_v54 = vrot.slane %v1067_v13, 5  ;;  %v1030_v7 = vor.u32 %v1029_v49, %v1026_v9  ;;  %v1043_v45 = vshll.u32 %v3654_v47, 16  ;;  %v3687_v55 = vrot.slane %v3671_v37, 9  ;;  %v4673_v32 = vld [vmem:[%s4158_s20 + $0x60] sm:$0xf] }
  0x91   : > { %v1055_v56 = vrot.slane %v1054_v26, 4  ;;  %v1064_v57 = vor.u32 %v1063_v40, %v1059_v30  ;;  %v1035_v12 = vrot.slane %v1033_v50, 5  ;;  %v1378_v59 = vrot.slane %v4609_v23, 5  ;;  %v4645_v60 = vpop.permute.xlu1 %2242  ;;  %v4695_v37 = vld [vmem:[%s4158_s20 + $0x68] sm:$0x1] }
  0x92   : > { %v1031_v63 = vrot.slane %v1030_v7, 4  ;;  %v1045_v0 = vrot.slane %v1043_v45, 5  ;;  %v1381_v20 = vrot.slane %v3655_v3, 5  ;;  %v3686_v2 = vrot.slane %v3670_v53, 9 }
  0x93   : > { %2348 = vrot.lane.b32.xlu0 %v3830_v44, %s4111_s21  ;;  %v1060_v6 = vsel %vm4226_vm5, %v1055_v56, %v1059_v30  ;;  %v1065_v29 = vrot.slane %v1064_v57, 4  ;;  %v1040_v10 = vor.u32 %v1039_v51, %v1035_v12  ;;  %v1379_v46 = vsel %vm4182_vm2, %v3687_v55, %v1378_v59 }
  0x94   : > { %2350 = vrot.lane.b32.xlu1 %v3831_v34, %s4111_s21  ;;  %v1036_v11 = vsel %vm4226_vm5, %v1031_v63, %v1035_v12  ;;  %v1380_v16 = vrot.slane %v1378_v59, 4  ;;  %v1371_v18 = vrot.slane %v4618_v28, 5  ;;  %v1374_v21 = vrot.slane %v3654_v47, 5  ;;  %v4075_v59 = vld [vmem:[%s4158_s20 + $0x4] sm:$0xf] }
  0x95   : > { %v1070_v22 = vsel %vm4226_vm5, %v1065_v29, %v1069_v54  ;;  %v1041_v23 = vrot.slane %v1040_v10, 4  ;;  %v1657_v41 = vshrl.u32 %v4648_v4, 16  ;;  %v1660_v25 = vshll.u32 %v4648_v4, 16  ;;  %v4680_v34 = vpop.permute.xlu1 %2498  ;;  %v4076_v63 = vld [vmem:[%s4158_s20] sm:$0xf] }
  0x96   : > { %v3847_v27 = vcombine.low %v1060_v6, %v1070_v22  ;;  %v1382_v52 = vsel %vm4182_vm2, %v1380_v16, %v1381_v20  ;;  %v1372_v31 = vsel %vm4182_vm2, %v3686_v2, %v1371_v18  ;;  %v1373_v28 = vrot.slane %v1371_v18, 4  ;;  %v232_v20 = vld [vmem:[%s4158_s20 + $0x60] sm:$0xf]  ;;  %v4716_v10 = vld [vmem:[%s4158_s20 + $0x64] sm:$0xf] }
  0x97   : > { %v1046_v61 = vsel %vm4226_vm5, %v1041_v23, %v1045_v0  ;;  %v3863_v33 = vcombine.low %v1379_v46, %v1382_v52  ;;  %v1659_v35 = vrot.slane %v1657_v41, 4  ;;  %v1662_v36 = vrot.slane %v1660_v25, 5  ;;  %v4720_v18 = vld [vmem:[%s4158_s20 + $0x68] sm:$0x1] }
  0x98   : > { %2430 = vrot.lane.b32.xlu1 %v3847_v27, %s4115_s25  ;;  %v3846_v3 = vcombine.low %v1036_v11, %v1046_v61  ;;  %v1375_v38 = vsel %vm4182_vm2, %v1373_v28, %v1374_v21  ;;  %v1670_v62 = vshrl.u32 %v4664_v24, 16  ;;  %v3879_v39 = vcombine.low %v4648_v4, %v4664_v24  ;;  %v2161_v15 = vpop.permute.xlu0 %2160 }
  0x99   : > { %v3862_v43 = vcombine.low %v1372_v31, %v1375_v38  ;;  %v1633_v44 = vshrl.u32 %v4673_v32, 16  ;;  %v1636_v1 = vshll.u32 %v4673_v32, 16  ;;  %v1646_v47 = vshrl.u32 %v4676_v58, 16 }
  0x9a   : > { %2428 = vrot.lane.b32.xlu0 %v3846_v3, %s4115_s25  ;;  %v3878_v9 = vcombine.low %v4673_v32, %v4676_v58  ;;  %v1663_v49 = vor.u32 %v1662_v36, %v1659_v35  ;;  %v1666_v40 = vshll.u32 %v4664_v24, 16  ;;  %v1672_v13 = vrot.slane %v1670_v62, 4  ;;  %v3750_v32 = vld [vmem:[%s4158_s20 + $0x60] sm:$0xe] }
  0x9b   : > { %v1635_v26 = vrot.slane %v1633_v44, 4  ;;  %v1638_v30 = vrot.slane %v1636_v1, 5  ;;  %v1676_v50 = vshll.u32 %v4689_v42, 16  ;;  %v1642_v51 = vshll.u32 %v4676_v58, 16 }
  0x9c   : > { %2510 = vrot.lane.b32.xlu1 %v3863_v33, %s4112_s22  ;;  %v1664_v53 = vrot.slane %v1663_v49, 4  ;;  %v1668_v54 = vrot.slane %v1666_v40, 5  ;;  %v1648_v7 = vrot.slane %v1646_v47, 4  ;;  %v1652_v45 = vshll.u32 %v4695_v37, 16  ;;  %v4705_v55 = vpop.permute.xlu0 %2162 }
  0x9d   : > { %v1678_v56 = vrot.slane %v1676_v50, 5  ;;  %v1639_v57 = vor.u32 %v1638_v30, %v1635_v26  ;;  %v1644_v12 = vrot.slane %v1642_v51, 5  ;;  %v3776_v0 = vcombine.low %v4076_v63, %v4075_v59  ;;  %v4710_v2 = vpop.permute.xlu1 %2418  ;;  %v4077_v30 = vld [vmem:[%s4158_s20 + $0x10] sm:$0xf]  ;;  %v4078_v50 = vld [vmem:[%s4158_s20 + $0xc] sm:$0xf] }
  0x9e   : > { %2508 = vrot.lane.b32.xlu0 %v3862_v43, %s4112_s22  ;;  %v1669_v4 = vsel %vm4226_vm5, %v1664_v53, %v1668_v54  ;;  %v1673_v6 = vor.u32 %v1672_v13, %v1668_v54  ;;  %v1654_v29 = vrot.slane %v1652_v45, 5  ;;  %v460_v23 = vshrl.u32 %v232_v20, 16  ;;  %v4744_v43 = vld [vmem:[%s4158_s20 + $0x70] sm:$0xf] }
  0x9f   : > { %v1640_v46 = vrot.slane %v1639_v57, 4  ;;  %v1649_v11 = vor.u32 %v1648_v7, %v1644_v12  ;;  %v2787_v16 = vsel %vm2784_vm6, %v3776_v0, %v2161_v15  ;;  %v463_v41 = vshll.u32 %v232_v20, 16  ;;  %v234_v15 = vld [vmem:[%s4158_s20 + $0x6c] sm:$0xf] }
  0xa0   : > { %2606 = vrot.lane.b32.xlu1 %v3879_v39, %s4116_s26  ;;  %v1674_v21 = vrot.slane %v1673_v6, 4  ;;  %v4725_v22 = vsel %vm2833_vm7, %v2787_v16, %v4638_v48  ;;  %v4727_v25 = vpop.permute.xlu0 %2416  ;;  %v469_v31 = vshll.u32 %v4716_v10, 16  ;;  %v473_v28 = vshrl.u32 %v4716_v10, 16 }
  0xa1   : > { %v1645_v27 = vsel %vm4226_vm5, %v1640_v46, %v1644_v12  ;;  %v1650_v52 = vrot.slane %v1649_v11, 4  ;;  %v462_v61 = vrot.slane %v460_v23, 4  ;;  %v465_v33 = vrot.slane %v463_v41, 5  ;;  %v4738_v36 = vpop.permute.xlu1 %2594 }
  0xa2   : > { %2604 = vrot.lane.b32.xlu0 %v3878_v9, %s4116_s26  ;;  %v1679_v48 = vsel %vm4226_vm5, %v1674_v21, %v1678_v56  ;;  %v479_v35 = vshll.u32 %v4720_v18, 16  ;;  %v471_v62 = vrot.slane %v469_v31, 5  ;;  %v475_v39 = vrot.slane %v473_v28, 4 }
  0xa3   : > { %v3895_v3 = vcombine.low %v1669_v4, %v1679_v48  ;;  %v1655_v38 = vsel %vm4226_vm5, %v1650_v52, %v1654_v29  ;;  %v466_v1 = vor.u32 %v465_v33, %v462_v61  ;;  %v3766_v9 = vrot.slane %v3750_v32, 9  ;;  %v3751_v4 = vld [vmem:[%s4158_s20 + $0x6c] sm:$0xe] }
  0xa4   : > { %v3894_v44 = vcombine.low %v1645_v27, %v1655_v38  ;;  %v481_v47 = vrot.slane %v479_v35, 5  ;;  %v4746_v49 = vpop.permute.xlu0 %2592  ;;  %v476_v40 = vor.u32 %v475_v39, %v471_v62  ;;  %v1980_v13 = vrot.slane %v4676_v58, 5  ;;  %v660_v32 = vld [vmem:[%s4158_s20 + $0x6c] sm:$0xe] }
  0xa5   : > { %2686 = vrot.lane.b32.xlu1 %v3895_v3, %s4117_s27  ;;  %v1983_v26 = vrot.slane %v4695_v37, 5  ;;  %v3777_v51 = vcombine.low %v4078_v50, %v4077_v30  ;;  %v467_v53 = vrot.slane %v466_v1, 4  ;;  %v484_v54 = vshrl.u32 %v234_v15, 16  ;;  %v257_v37 = vld [vmem:[%s4158_s20 + $0x74] sm:$0x1] }
  0xa6   : > { %2684 = vrot.lane.b32.xlu0 %v3894_v44, %s4117_s27  ;;  %v487_v7 = vshll.u32 %v234_v15, 16  ;;  %v493_v45 = vshll.u32 %v4744_v43, 16  ;;  %v477_v56 = vrot.slane %v476_v40, 4  ;;  %v1981_v57 = vsel %vm4182_vm2, %v3766_v9, %v1980_v13 }
  0xa7   : > { %v1982_v12 = vrot.slane %v1980_v13, 4  ;;  %v2790_v58 = vsel %vm2784_vm6, %v3777_v51, %v4705_v55  ;;  %v472_v59 = vsel %vm4226_vm5, %v467_v53, %v471_v62  ;;  %v486_v0 = vrot.slane %v484_v54, 4  ;;  %v4807_v53 = vld [vmem:[%s4158_s20 + $0x78] sm:$0xf] }
  0xa8   : > { %v2837_v63 = vsel %vm2833_vm7, %v2790_v58, %v4645_v60  ;;  %v489_v20 = vrot.slane %v487_v7, 5  ;;  %v4765_v6 = vpop.permute.xlu1 %2674  ;;  %v482_v29 = vsel %vm4226_vm5, %v477_v56, %v481_v47  ;;  %v495_v55 = vrot.slane %v493_v45, 5  ;;  %v4042_v54 = vld [vmem:[%s5891_s1 + $0x10] ss:$0 sps:$4 sm:$0x33]  }
  0xa9   : > { %v1984_v46 = vsel %vm4182_vm2, %v1982_v12, %v1983_v26  ;;  %v497_v11 = vshrl.u32 %v4744_v43, 16  ;;  %v4772_v16 = vpop.permute.xlu0 %2672  ;;  %v3800_v21 = vcombine.low %v472_v59, %v482_v29  ;;  %v503_v41 = vshll.u32 %v257_v37, 16  ;;  %v4820_v45 = vld [vmem:[%s4158_s20 + $0x7c] sm:$0xf]  ;;  %v3632_v56 = vld [vmem:[%s4158_s20 + $0x6c] sm:$0xf]  ;;  %4005 = vmatprep.subr.msk.bf16.mxu0 %vm3117_vm12, %v4042_v54  ;;  %4006 = vmatprep.subr.msk.bf16.mxu1 %vm3117_vm12, %v4042_v54 }
  0xaa   : > { %v3910_v23 = vcombine.low %v1981_v57, %v1984_v46  ;;  %v490_v60 = vor.u32 %v489_v20, %v486_v0  ;;  %v3767_v52 = vrot.slane %v3751_v4, 9  ;;  %v1987_v31 = vrot.slane %v4664_v24, 5  ;;  %v659_v24 = vld [vmem:[%s4158_s20 + $0x60] sm:$0xe] }
  0xab   : > { %v499_v27 = vrot.slane %v497_v11, 4  ;;  %v1990_v28 = vrot.slane %v4689_v42, 5  ;;  %2176 = vrot.lane.b32.xlu1 %v3800_v21, %s4114_s24  ;;  %v505_v61 = vrot.slane %v503_v41, 5  ;;  %v2870_v38 = vsel %vm2866_vm8, %v2837_v63, %v4600_v14  ;;  %v4833_v63 = vld [vmem:[%s4158_s20 + $0x70] sm:$0xf] }
  0xac   : > { %2764 = vrot.lane.b32.xlu0 %v3910_v23, %s4118_s28  ;;  %v491_v48 = vrot.slane %v490_v60, 4  ;;  %v1988_v35 = vsel %vm4182_vm2, %v3767_v52, %v1987_v31  ;;  %v1989_v3 = vrot.slane %v1987_v31, 4  ;;  %v2903_v39 = vsel %vm2899_vm9, %v2870_v38, %v4710_v2  ;;  %v4851_v41 = vld [vmem:[%s4158_s20 + $0x80] sm:$0x1] }
  0xad   : > { %v500_v33 = vor.u32 %v499_v27, %v495_v55  ;;  %v4784_v62 = vpop.permute.xlu0 %2752  ;;  %v2868_v15 = vsel %vm2866_vm8, %v4725_v22, %v4632_v8  ;;  %v3609_v44 = vrot.slane %v660_v32, 9  ;;  %v783_v40 = vrot.slane %v4744_v43, 5  ;;  %v4858_v32 = vld [vmem:[%s4158_s20 + $0x74] sm:$0x1] }
  0xae   : > { %v496_v42 = vsel %vm4226_vm5, %v491_v48, %v495_v55  ;;  %v4793_v1 = vpop.permute.xlu1 %2164  ;;  %v1991_v14 = vsel %vm4182_vm2, %v1989_v3, %v1990_v28  ;;  %v2901_v9 = vsel %vm2899_vm9, %v2868_v15, %v4727_v25  ;;  %v786_v26 = vrot.slane %v257_v37, 5  ;;  %v4045_v55 = vld [vmem:[%s5891_s1 + $0x8] sm:$0xff]   ;;  %v3673_v15 = vld [vmem:[%s4158_s20 + $0x78] sm:$0xe] }
  0xaf   : > { %v501_v47 = vrot.slane %v500_v33, 4  ;;  %v3911_v13 = vcombine.low %v1988_v35, %v1991_v14  ;;  %v3608_v2 = vrot.slane %v659_v24, 9  ;;  %v776_v30 = vrot.slane %v4716_v10, 5 }
  0xb0   : > { %v784_v22 = vsel %vm4182_vm2, %v3609_v44, %v783_v40  ;;  %v785_v50 = vrot.slane %v783_v40, 4  ;;  %v779_v51 = vrot.slane %v4720_v18, 5  ;;  %v2936_v18 = vsel %vm2932_vm10, %v2903_v39, %v4680_v34 }
  0xb1   : > { %v506_v8 = vsel %vm4226_vm5, %v501_v47, %v505_v61  ;;  %2766 = vrot.lane.b32.xlu0 %v3911_v13, %s4118_s28  ;;  %v777_v43 = vsel %vm4182_vm2, %v3608_v2, %v776_v30  ;;  %v778_v10 = vrot.slane %v776_v30, 4  ;;  %v2969_v37 = vsel %vm2965_vm11, %v2936_v18, %v4738_v36  ;;  %v3672_v2 = vld [vmem:[%s4158_s20 + $0x6c] sm:$0xe] }
  0xb2   : > { %v3801_v25 = vcombine.low %v496_v42, %v506_v8  ;;  %v787_v7 = vsel %vm4182_vm2, %v785_v50, %v786_v26  ;;  %v2934_v59 = vsel %vm2932_vm10, %v2901_v9, %v4650_v5  ;;  %v1096_v20 = vshrl.u32 %v4807_v53, 16 }
  0xb3   : > { %v4823_v57 = vpop.permute.xlu0 %2754  ;;  %v3817_v12 = vcombine.low %v784_v22, %v787_v7  ;;  %v780_v58 = vsel %vm4182_vm2, %v778_v10, %v779_v51  ;;  %v1099_v4 = vshll.u32 %v4807_v53, 16  ;;  %v1109_v29 = vshrl.u32 %v4820_v45, 16  ;;  %v4079_v51 = vld [vmem:[%s4158_s20 + $0x18] sm:$0xf] }
  0xb4   : > { %2178 = vrot.lane.b32.xlu1 %v3801_v25, %s4114_s24  ;;  %v4835_v34 = vpop.permute.xlu1 %2166  ;;  %v3816_v0 = vcombine.low %v777_v43, %v780_v58  ;;  %v3833_v36 = vcombine.low %v4807_v53, %v4820_v45  ;;  %v1072_v46 = vshrl.u32 %v3632_v56, 16  ;;  %v1075_v5 = vshll.u32 %v3632_v56, 16  ;;  %v4080_v53 = vld [vmem:[%s4158_s20 + $0x1c] sm:$0xf] }
  0xb5   : > { %v1098_v11 = vrot.slane %v1096_v20, 4  ;;  %v1101_v21 = vrot.slane %v1099_v4, 5  ;;  %v1085_v23 = vshrl.u32 %v4833_v63, 16  ;;  %v3832_v60 = vcombine.low %v3632_v56, %v4833_v63 }
  0xb6   : > { %2256 = vrot.lane.b32.xlu0 %v3816_v0, %s4113_s23  ;;  %v1074_v52 = vrot.slane %v1072_v46, 4  ;;  %v1077_v31 = vrot.slane %v1075_v5, 5  ;;  %v3119_v28 = vsel %vm3117_vm12, %v4042_v54, 0  ;;  %v2967_v61 = vsel %vm2965_vm11, %v2934_v59, %v4746_v49  ;;  %v4047_v49 = vld [vmem:[%s5891_s1] sm:$0xff]  }
  0xb7   : > { %v4853_v27 = vpop.permute.xlu0 %2244  ;;  %3962 = vmatpush3.bf16.msra.mxu0 %v3119_v28  ;;  %v4866_v33 = vsel %vm2998_vm13, %v2969_v37, %v4765_v6  ;;  %v1102_v35 = vor.u32 %v1101_v21, %v1098_v11  ;;  %v1105_v3 = vshll.u32 %v4820_v45, 16  ;;  %4002 = vmatpush3.bf16.msra.mxu1 %v3119_v28  ;;  %v1111_v38 = vrot.slane %v1109_v29, 4  ;;  %v4913_v21 = vld [vmem:[%s4158_s20 + $0x88] sm:$0xf]  ;;  %v4923_v28 = vld [vmem:[%s4158_s20 + $0x7c] sm:$0xf] }
  0xb8   : > { %2258 = vrot.lane.b32.xlu1 %v3817_v12, %s4113_s23  ;;  %v4860_v48 = vpop.permute.xlu1 %2246  ;;  %3963 = vmatprep.subr.bf16.mxu0 %v4045_v55  ;;  %v1115_v24 = vshll.u32 %v4851_v41, 16  ;;  %v1078_v42 = vor.u32 %v1077_v31, %v1074_v52  ;;  %v1081_v39 = vshll.u32 %v4833_v63, 16  ;;  %v1087_v47 = vrot.slane %v1085_v23, 4  ;;  %v3712_v23 = vld [vmem:[%s4158_s20 + $0x78] sm:$0xf] }
  0xb9   : > { %4000 = vmatprep.subr.bf16.mxu1 %v4045_v55  ;;  %v1103_v6 = vrot.slane %v1102_v35, 4  ;;  %v1107_v44 = vrot.slane %v1105_v3, 5  ;;  %v1091_v14 = vshll.u32 %v4858_v32, 16  ;;  %v3000_v9 = vsel %vm2998_vm13, %v2967_v61, %v4772_v16  ;;  %v4082_v61 = vld [vmem:[%s4158_s20 + $0x28] sm:$0xf] }
  0xba   : > { %2352 = vrot.lane.b32.xlu0 %v3832_v60, %s4111_s21  ;;  %v1117_v40 = vrot.slane %v1115_v24, 5  ;;  %v1079_v13 = vrot.slane %v1078_v42, 4  ;;  %v1083_v26 = vrot.slane %v1081_v39, 5  ;;  %v3778_v25 = vcombine.low %v4079_v51, %v4080_v53 }
  0xbb   : > { %v4883_v8 = vpop.permute.xlu0 %2340  ;;  %v1108_v22 = vsel %vm4226_vm5, %v1103_v6, %v1107_v44  ;;  %v1112_v50 = vor.u32 %v1111_v38, %v1107_v44  ;;  %3964 = vmatpush3.bf16.msra.mxu0 %v4045_v55  ;;  %v3689_v43 = vrot.slane %v3673_v15, 9  ;;  %4003 = vmatpush3.bf16.msra.mxu1 %v4045_v55  ;;  %v1093_v54 = vrot.slane %v1091_v14, 5  ;;  %v4943_v44 = vld [vmem:[%s4158_s20 + $0x8c] sm:$0x1] }
  0xbc   : > { %2354 = vrot.lane.b32.xlu1 %v3833_v36, %s4111_s21  ;;  %v4881_v30 = vpop.permute.xlu1 %2342  ;;  %v1084_v16 = vsel %vm4226_vm5, %v1079_v13, %v1083_v26  ;;  %v1088_v10 = vor.u32 %v1087_v47, %v1083_v26  ;;  %3965 = vmatprep.subr.bf16.mxu0 %v4047_v49  ;;  %v1392_v7 = vrot.slane %v4820_v45, 5  ;;  %v1395_v56 = vrot.slane %v4851_v41, 5  ;;  %v4951_v26 = vld [vmem:[%s4158_s20 + $0x80] sm:$0x1] }
  0xbd   : > { %4001 = vmatprep.subr.bf16.mxu1 %v4047_v49  ;;  %v1113_v18 = vrot.slane %v1112_v50, 4  ;;  %v3688_v12 = vrot.slane %v3672_v2, 9  ;;  %v1385_v58 = vrot.slane %v4833_v63, 5  ;;  %v1388_v20 = vrot.slane %v4858_v32, 5  ;;  %v4904_v63 = vld [vmem:[%s4158_s20 + $0x84] sm:$0xf] }
  0xbe   : > { %v1089_v37 = vrot.slane %v1088_v10, 4  ;;  %v1393_v59 = vsel %vm4182_vm2, %v3689_v43, %v1392_v7  ;;  %v1394_v0 = vrot.slane %v1392_v7, 4  ;;  %v3033_v11 = vsel %vm3031_vm14, %v3000_v9, %v4784_v62  ;;  %v4081_v62 = vld [vmem:[%s4158_s20 + $0x24] sm:$0xf]  ;;  %v236_v10 = vld [vmem:[%s4158_s20 + $0x78] sm:$0xf] }
  0xbf   : > { %v1118_v45 = vsel %vm4226_vm5, %v1113_v18, %v1117_v40  ;;  %v1386_v29 = vsel %vm4182_vm2, %v3688_v12, %v1385_v58  ;;  %v1387_v36 = vrot.slane %v1385_v58, 4  ;;  %3966 = vmatpush3.bf16.msra.mxu0 %v4047_v49  ;;  %4004 = vmatpush3.bf16.msra.mxu1 %v4047_v49  ;;  %v2793_v52 = vsel %vm2784_vm6, %v3778_v25, %v4793_v1 }
  0xc0   : > { %v4897_v4 = vpop.permute.xlu1 %2422  ;;  %v3849_v46 = vcombine.low %v1108_v22, %v1118_v45  ;;  %v1094_v5 = vsel %vm4226_vm5, %v1089_v37, %v1093_v54  ;;  %v1396_v55 = vsel %vm4182_vm2, %v1394_v0, %v1395_v56  ;;  %3967 = vmatprep.mubr.msk.bf16.mxu0 %vm3084_vm15, %v3033_v11  ;;  %v3779_v35 = vcombine.low %v4081_v62, %v4082_v61  ;;  %v4967_v56 = vld [vmem:[%s4158_s20 + $0x7c] sm:$0xf]  ;;  %v3752_v11 = vld [vmem:[%s4158_s20 + $0x78] sm:$0xe] }
  0xc1   : > { %v3848_v41 = vcombine.low %v1084_v16, %v1094_v5  ;;  %v1389_v31 = vsel %vm4182_vm2, %v1387_v36, %v1388_v20  ;;  %v3865_v32 = vcombine.low %v1393_v59, %v1396_v55  ;;  %v3035_v3 = vsel %vm3031_vm14, %v4866_v33, %v4823_v57 }
  0xc2   : > { %v4916_v60 = vpop.permute.xlu0 %2420  ;;  %2434 = vrot.lane.b32.xlu1 %v3849_v46, %s4115_s25  ;;  %v1705_v1 = vshrl.u32 %v4904_v63, 16  ;;  %v3864_v24 = vcombine.low %v1386_v29, %v1389_v31  ;;  %v1708_v42 = vshll.u32 %v4904_v63, 16  ;;  %v1718_v39 = vshrl.u32 %v4913_v21, 16  ;;  %3968 = vmatmul.mubr.msk.bf16.vlgmr.msra.gmra.mxu0 %vm3084_vm15, %v3035_v3  ;;  %v4975_v29 = vld [vmem:[%s4158_s20 + $0x80] sm:$0x1] }
  0xc3   : > { %2432 = vrot.lane.b32.xlu0 %v3848_v41, %s4115_s25  ;;  %v1681_v49 = vshrl.u32 %v3712_v23, 16  ;;  %v3881_v6 = vcombine.low %v4904_v63, %v4913_v21  ;;  %v1684_v57 = vshll.u32 %v3712_v23, 16  ;;  %v1694_v33 = vshrl.u32 %v4923_v28, 16 }
  0xc4   : > { %v4933_v38 = vpop.permute.xlu1 %2502  ;;  %v1707_v15 = vrot.slane %v1705_v1, 4  ;;  %v2796_v14 = vsel %vm2784_vm6, %v3779_v35, %v4835_v34  ;;  %v1710_v9 = vrot.slane %v1708_v42, 5  ;;  %v3880_v13 = vcombine.low %v3712_v23, %v4923_v28 }
  0xc5   : > { %v1683_v40 = vrot.slane %v1681_v49, 4  ;;  %v1686_v2 = vrot.slane %v1684_v57, 5  ;;  %v2841_v22 = vsel %vm2833_vm7, %v2796_v14, %v4860_v48  ;;  %v1714_v50 = vshll.u32 %v4913_v21, 16  ;;  %v239_v14 = vld [vmem:[%s4158_s20 + $0x88] sm:$0xf] }
  0xc6   : > { %v4945_v47 = vpop.permute.xlu0 %2500  ;;  %2514 = vrot.lane.b32.xlu1 %v3865_v32, %s4112_s22  ;;  %v1720_v51 = vrot.slane %v1718_v39, 4  ;;  %v1711_v34 = vor.u32 %v1710_v9, %v1707_v15  ;;  %v1724_v25 = vshll.u32 %v4943_v44, 16  ;;  %v1690_v43 = vshll.u32 %v4923_v28, 16 }
  0xc7   : > { %2512 = vrot.lane.b32.xlu0 %v3864_v24, %s4112_s22  ;;  %v1696_v16 = vrot.slane %v1694_v33, 4  ;;  %v2839_v54 = vsel %vm2833_vm7, %v2793_v52, %v4853_v27  ;;  %v1716_v7 = vrot.slane %v1714_v50, 5  ;;  %v1687_v48 = vor.u32 %v1686_v2, %v1683_v40  ;;  %v238_v33 = vld [vmem:[%s4158_s20 + $0x84] sm:$0xf] }
  0xc8   : > { %v4957_v53 = vpop.permute.xlu1 %2598  ;;  %v1700_v18 = vshll.u32 %v4951_v26, 16  ;;  %v1712_v58 = vrot.slane %v1711_v34, 4  ;;  %v1726_v37 = vrot.slane %v1724_v25, 5  ;;  %v1692_v59 = vrot.slane %v1690_v43, 5 }
  0xc9   : > { %v2874_v0 = vsel %vm2866_vm8, %v2841_v22, %v4881_v30  ;;  %v1721_v20 = vor.u32 %v1720_v51, %v1716_v7  ;;  %v1688_v45 = vrot.slane %v1687_v48, 4  ;;  %v508_v36 = vshrl.u32 %v236_v10, 16  ;;  %v5000_v22 = vld [vmem:[%s4158_s20 + $0x8c] sm:$0x1] }
  0xca   : > { %v4969_v12 = vpop.permute.xlu0 %2596  ;;  %2610 = vrot.lane.b32.xlu1 %v3881_v6, %s4116_s26  ;;  %v1702_v27 = vrot.slane %v1700_v18, 5  ;;  %v1717_v63 = vsel %vm4226_vm5, %v1712_v58, %v1716_v7  ;;  %v1697_v46 = vor.u32 %v1696_v16, %v1692_v59  ;;  %v511_v5 = vshll.u32 %v236_v10, 16 }
  0xcb   : > { %2608 = vrot.lane.b32.xlu0 %v3880_v13, %s4116_s26  ;;  %v517_v55 = vshll.u32 %v4967_v56, 16  ;;  %v1722_v30 = vrot.slane %v1721_v20, 4  ;;  %v1693_v41 = vsel %vm4226_vm5, %v1688_v45, %v1692_v59  ;;  %v510_v52 = vrot.slane %v508_v36, 4  ;;  %v662_v20 = vld [vmem:[%s4158_s20 + $0x84] sm:$0xe] }
  0xcc   : > { %v521_v31 = vshrl.u32 %v4967_v56, 16  ;;  %v1698_v62 = vrot.slane %v1697_v46, 4  ;;  %v513_v61 = vrot.slane %v511_v5, 5  ;;  %v527_v3 = vshll.u32 %v4975_v29, 16 }
  0xcd   : > { %v4982_v23 = vpop.permute.xlu1 %2678  ;;  %v519_v35 = vrot.slane %v517_v55, 5  ;;  %v1727_v1 = vsel %vm4226_vm5, %v1722_v30, %v1726_v37  ;;  %v3768_v42 = vrot.slane %v3752_v11, 9  ;;  %v1994_v39 = vrot.slane %v4923_v28, 5  ;;  %v661_v30 = vld [vmem:[%s4158_s20 + $0x78] sm:$0xe] }
  0xce   : > { %v4987_v32 = vpop.permute.xlu0 %2676  ;;  %v523_v24 = vrot.slane %v521_v31, 4  ;;  %v3897_v49 = vcombine.low %v1717_v63, %v1727_v1  ;;  %v1703_v15 = vsel %vm4226_vm5, %v1698_v62, %v1702_v27  ;;  %v2872_v6 = vsel %vm2866_vm8, %v2839_v54, %v4883_v8 }
  0xcf   : > { %v514_v57 = vor.u32 %v513_v61, %v510_v52  ;;  %v3896_v9 = vcombine.low %v1693_v41, %v1703_v15  ;;  %v529_v13 = vrot.slane %v527_v3, 5  ;;  %v1996_v2 = vrot.slane %v1994_v39, 4 }
  0xd0   : > { %v524_v40 = vor.u32 %v523_v24, %v519_v35  ;;  %2690 = vrot.lane.b32.xlu1 %v3897_v49, %s4117_s27  ;;  %v1995_v51 = vsel %vm4182_vm2, %v3768_v42, %v1994_v39  ;;  %v1997_v8 = vrot.slane %v4951_v26, 5  ;;  %v2907_v34 = vsel %vm2899_vm9, %v2874_v0, %v4897_v4  ;;  %v3753_v4 = vld [vmem:[%s4158_s20 + $0x84] sm:$0xe] }
  0xd1   : > { %v515_v28 = vrot.slane %v514_v57, 4  ;;  %2688 = vrot.lane.b32.xlu0 %v3896_v9, %s4117_s27  ;;  %v532_v16 = vshrl.u32 %v238_v33, 16  ;;  %v535_v10 = vshll.u32 %v238_v33, 16  ;;  %v541_v54 = vshll.u32 %v239_v14, 16  ;;  %v5046_v57 = vld [vmem:[%s4158_s20 + $0x90] sm:$0xf] }
  0xd2   : > { %v5002_v50 = vpop.permute.xlu0 %2756  ;;  %v525_v43 = vrot.slane %v524_v40, 4  ;;  %v1998_v48 = vsel %vm4182_vm2, %v1996_v2, %v1997_v8  ;;  %v545_v18 = vshrl.u32 %v239_v14, 16  ;;  %v551_v26 = vshll.u32 %v5000_v22, 16  ;;  %v3636_v2 = vld [vmem:[%s4158_s20 + $0x84] sm:$0xf] }
  0xd3   : > { %v5010_v25 = vpop.permute.xlu1 %2168  ;;  %v520_v7 = vsel %vm4226_vm5, %v515_v28, %v519_v35  ;;  %v3912_v37 = vcombine.low %v1995_v51, %v1998_v48  ;;  %v534_v59 = vrot.slane %v532_v16, 4  ;;  %v537_v0 = vrot.slane %v535_v10, 5 }
  0xd4   : > { %v530_v58 = vsel %vm4226_vm5, %v525_v43, %v529_v13  ;;  %v2905_v27 = vsel %vm2899_vm9, %v2872_v6, %v4916_v60  ;;  %v543_v36 = vrot.slane %v541_v54, 5  ;;  %v547_v63 = vrot.slane %v545_v18, 4  ;;  %v5055_v13 = vld [vmem:[%s4158_s20 + $0x94] sm:$0xf]  ;;  %v5071_v54 = vld [vmem:[%s4158_s20 + $0x88] sm:$0xf] }
  0xd5   : > { %v3802_v45 = vcombine.low %v520_v7, %v530_v58  ;;  %2768 = vrot.lane.b32.xlu0 %v3912_v37, %s4118_s28  ;;  %v538_v46 = vor.u32 %v537_v0, %v534_v59  ;;  %v3769_v5 = vrot.slane %v3753_v4, 9  ;;  %v2001_v55 = vrot.slane %v4913_v21, 5  ;;  %v5080_v37 = vld [vmem:[%s4158_s20 + $0x98] sm:$0x1] }
  0xd6   : > { %v2004_v11 = vrot.slane %v4943_v44, 5  ;;  %v548_v52 = vor.u32 %v547_v63, %v543_v36  ;;  %v553_v31 = vrot.slane %v551_v26, 5  ;;  %v2940_v60 = vsel %vm2932_vm10, %v2907_v34, %v4933_v38 }
  0xd7   : > { %2180 = vrot.lane.b32.xlu1 %v3802_v45, %s4114_s24  ;;  %v3611_v62 = vrot.slane %v662_v20, 9  ;;  %v539_v35 = vrot.slane %v538_v46, 4  ;;  %v2002_v21 = vsel %vm4182_vm2, %v3769_v5, %v2001_v55  ;;  %v2003_v3 = vrot.slane %v2001_v55, 4 }
  0xd8   : > { %v5028_v41 = vpop.permute.xlu0 %2758  ;;  %v797_v44 = vrot.slane %v239_v14, 5  ;;  %v549_v1 = vrot.slane %v548_v52, 4  ;;  %v800_v24 = vrot.slane %v5000_v22, 5  ;;  %v3610_v42 = vrot.slane %v661_v30, 9 }
  0xd9   : > { %v5033_v61 = vpop.permute.xlu1 %2170  ;;  %v790_v39 = vrot.slane %v4967_v56, 5  ;;  %v544_v38 = vsel %vm4226_vm5, %v539_v35, %v543_v36  ;;  %v2005_v49 = vsel %vm4182_vm2, %v2003_v3, %v2004_v11  ;;  %v2938_v56 = vsel %vm2932_vm10, %v2905_v27, %v4945_v47  ;;  %v5091_v36 = vld [vmem:[%s4158_s20 + $0x8c] sm:$0x1] }
  0xda   : > { %v798_v15 = vsel %vm4182_vm2, %v3611_v62, %v797_v44  ;;  %v799_v6 = vrot.slane %v797_v44, 4  ;;  %v554_v14 = vsel %vm4226_vm5, %v549_v1, %v553_v31  ;;  %v3913_v9 = vcombine.low %v2002_v21, %v2005_v49 }
  0xdb   : > { %v792_v40 = vrot.slane %v790_v39, 4  ;;  %v3803_v28 = vcombine.low %v544_v38, %v554_v14  ;;  %v791_v8 = vsel %vm4182_vm2, %v3610_v42, %v790_v39  ;;  %v793_v34 = vrot.slane %v4975_v29, 5  ;;  %v3674_v39 = vld [vmem:[%s4158_s20 + $0x84] sm:$0xe] }
  0xdc   : > { %v5048_v33 = vpop.permute.xlu0 %2248  ;;  %v801_v51 = vsel %vm4182_vm2, %v799_v6, %v800_v24  ;;  %2770 = vrot.lane.b32.xlu0 %v3913_v9, %s4118_s28  ;;  %v2973_v47 = vsel %vm2965_vm11, %v2940_v60, %v4957_v53  ;;  %v1144_v16 = vshrl.u32 %v5046_v57, 16  ;;  %v1147_v10 = vshll.u32 %v5046_v57, 16  ;;  %v4083_v6 = vld [vmem:[%s4158_s20 + $0x30] sm:$0xf] }
  0xdd   : > { %v5058_v22 = vpop.permute.xlu1 %2250  ;;  %v3819_v43 = vcombine.low %v798_v15, %v801_v51  ;;  %2182 = vrot.lane.b32.xlu1 %v3803_v28, %s4114_s24  ;;  %v794_v7 = vsel %vm4182_vm2, %v792_v40, %v793_v34  ;;  %v2971_v29 = vsel %vm2965_vm11, %v2938_v56, %v4969_v12  ;;  %v1157_v48 = vshrl.u32 %v5055_v13, 16 }
  0xde   : > { %v1120_v18 = vshrl.u32 %v3636_v2, 16  ;;  %v3818_v26 = vcombine.low %v791_v8, %v794_v7  ;;  %v1146_v53 = vrot.slane %v1144_v16, 4  ;;  %v1149_v4 = vrot.slane %v1147_v10, 5 }
  0xdf   : > { %v1123_v58 = vshll.u32 %v3636_v2, 16  ;;  %v3835_v20 = vcombine.low %v5046_v57, %v5055_v13  ;;  %v1133_v27 = vshrl.u32 %v5071_v54, 16  ;;  %v3834_v12 = vcombine.low %v3636_v2, %v5071_v54  ;;  %v4084_v57 = vld [vmem:[%s4158_s20 + $0x34] sm:$0xf] }
  0xe0   : > { %v5084_v0 = vpop.permute.xlu0 %2344  ;;  %v1122_v45 = vrot.slane %v1120_v18, 4  ;;  %2260 = vrot.lane.b32.xlu0 %v3818_v26, %s4113_s23  ;;  %v3004_v46 = vsel %vm2998_vm13, %v2971_v29, %v4987_v32  ;;  %v1150_v5 = vor.u32 %v1149_v4, %v1146_v53  ;;  %v1153_v55 = vshll.u32 %v5055_v13, 16  ;;  %v3675_v32 = vld [vmem:[%s4158_s20 + $0x90] sm:$0xe]  ;;  %v4085_v29 = vld [vmem:[%s4158_s20 + $0x3c] sm:$0xf] }
  0xe1   : > { %v5082_v59 = vpop.permute.xlu1 %2346  ;;  %v1125_v63 = vrot.slane %v1123_v58, 5  ;;  %2262 = vrot.lane.b32.xlu1 %v3819_v43, %s4113_s23  ;;  %v1159_v11 = vrot.slane %v1157_v48, 4  ;;  %v1163_v30 = vshll.u32 %v5080_v37, 16  ;;  %v1129_v52 = vshll.u32 %v5071_v54, 16  ;;  %v4086_v48 = vld [vmem:[%s4158_s20 + $0x40] sm:$0xf] }
  0xe2   : > { %v1135_v31 = vrot.slane %v1133_v27, 4  ;;  %v1151_v60 = vrot.slane %v1150_v5, 4  ;;  %v1155_v62 = vrot.slane %v1153_v55, 5  ;;  %v1139_v21 = vshll.u32 %v5091_v36, 16  ;;  %v3718_v53 = vld [vmem:[%s4158_s20 + $0x9c] sm:$0xf] }
  0xe3   : > { %v1126_v35 = vor.u32 %v1125_v63, %v1122_v45  ;;  %v3006_v44 = vsel %vm2998_vm13, %v2973_v47, %v4982_v23  ;;  %v1165_v1 = vrot.slane %v1163_v30, 5  ;;  %v1131_v24 = vrot.slane %v1129_v52, 5  ;;  %v5136_v4 = vld [vmem:[%s4158_s20 + $0xa0] sm:$0xf]  ;;  %v3716_v27 = vld [vmem:[%s4158_s20 + $0x90] sm:$0xf] }
  0xe4   : > { %v3037_v42 = vsel %vm3031_vm14, %v3004_v46, %v5002_v50  ;;  %2356 = vrot.lane.b32.xlu0 %v3834_v12, %s4111_s21  ;;  %v1156_v38 = vsel %vm4226_vm5, %v1151_v60, %v1155_v62  ;;  %v1160_v49 = vor.u32 %v1159_v11, %v1155_v62  ;;  %v3780_v14 = vcombine.low %v4083_v6, %v4084_v57  ;;  %v5148_v12 = vld [vmem:[%s4158_s20 + $0x94] sm:$0xf] }
  0xe5   : > { %v5102_v3 = vpop.permute.xlu1 %2426  ;;  %v1127_v15 = vrot.slane %v1126_v35, 4  ;;  %3971 = vmatprep.mubr.msk.bf16.mxu0 %vm3084_vm15, %v3037_v42  ;;  %2358 = vrot.lane.b32.xlu1 %v3835_v20, %s4111_s21  ;;  %v1136_v23 = vor.u32 %v1135_v31, %v1131_v24  ;;  %v1141_v50 = vrot.slane %v1139_v21, 5  ;;  %v3691_v56 = vrot.slane %v3675_v32, 9  ;;  %v5164_v35 = vld [vmem:[%s4158_s20 + $0xa4] sm:$0x1] }
  0xe6   : > { %v1406_v40 = vrot.slane %v5055_v13, 5  ;;  %v1161_v2 = vrot.slane %v1160_v49, 4  ;;  %v1409_v51 = vrot.slane %v5080_v37, 5  ;;  %v3690_v8 = vrot.slane %v3674_v39, 9 }
  0xe7   : > { %v5115_v9 = vpop.permute.xlu0 %2424  ;;  %v1132_v28 = vsel %vm4226_vm5, %v1127_v15, %v1131_v24  ;;  %v1137_v43 = vrot.slane %v1136_v23, 4  ;;  %v1399_v13 = vrot.slane %v5071_v54, 5  ;;  %v1402_v7 = vrot.slane %v5091_v36, 5  ;;  %v5170_v24 = vld [vmem:[%s4158_s20 + $0x98] sm:$0x1] }
  0xe8   : > { %v1407_v47 = vsel %vm4182_vm2, %v3691_v56, %v1406_v40  ;;  %v1408_v16 = vrot.slane %v1406_v40, 4  ;;  %v1166_v10 = vsel %vm4226_vm5, %v1161_v2, %v1165_v1  ;;  %v3781_v18 = vcombine.low %v4085_v29, %v4086_v48  ;;  %v240_v2 = vld [vmem:[%s4158_s20 + $0x90] sm:$0xf]  ;;  %v5194_v48 = vld [vmem:[%s4158_s20 + $0x98] sm:$0x1] }
  0xe9   : > { %v5122_v34 = vpop.permute.xlu1 %2506  ;;  %v3039_v26 = vsel %vm3031_vm14, %v3006_v44, %v5028_v41  ;;  %v3851_v37 = vcombine.low %v1156_v38, %v1166_v10  ;;  %v1142_v54 = vsel %vm4226_vm5, %v1137_v43, %v1141_v50  ;;  %v2799_v20 = vsel %vm2784_vm6, %v3780_v14, %v5010_v25 }
  0xea   : > { %v1410_v45 = vsel %vm4182_vm2, %v1408_v16, %v1409_v51  ;;  %3972 = vmatmul.mubr.msk.bf16.gmra.mxu0 %vm3084_vm15, %v3039_v26  ;;  %v3850_v41 = vcombine.low %v1132_v28, %v1142_v54  ;;  %v1400_v63 = vsel %vm4182_vm2, %v3690_v8, %v1399_v13  ;;  %v1401_v46 = vrot.slane %v1399_v13, 4  ;;  %v5189_v16 = vld [vmem:[%s4158_s20 + $0x94] sm:$0xf] }
  0xeb   : > { %v5138_v58 = vpop.permute.xlu0 %2504  ;;  %v3867_v36 = vcombine.low %v1407_v47, %v1410_v45  ;;  %2438 = vrot.lane.b32.xlu1 %v3851_v37, %s4115_s25  ;;  %v2802_v25 = vsel %vm2784_vm6, %v3781_v18, %v5033_v61  ;;  %v1753_v55 = vshrl.u32 %v3718_v53, 16  ;;  %v1756_v11 = vshll.u32 %v3718_v53, 16  ;;  %v3754_v45 = vld [vmem:[%s4158_s20 + $0x90] sm:$0xe] }
  0xec   : > { %v1766_v30 = vshrl.u32 %v5136_v4, 16  ;;  %2436 = vrot.lane.b32.xlu0 %v3850_v41, %s4115_s25  ;;  %v1403_v52 = vsel %vm4182_vm2, %v1401_v46, %v1402_v7  ;;  %v1729_v31 = vshrl.u32 %v3716_v27, 16  ;;  %v1732_v60 = vshll.u32 %v3716_v27, 16 }
  0xed   : > { %v5153_v5 = vpop.permute.xlu1 %2602  ;;  %v1742_v62 = vshrl.u32 %v5148_v12, 16  ;;  %v3866_v32 = vcombine.low %v1400_v63, %v1403_v52  ;;  %v1755_v44 = vrot.slane %v1753_v55, 4  ;;  %v1758_v61 = vrot.slane %v1756_v11, 5 }
  0xee   : > { %v3883_v1 = vcombine.low %v3718_v53, %v5136_v4  ;;  %v1731_v42 = vrot.slane %v1729_v31, 4  ;;  %v1734_v39 = vrot.slane %v1732_v60, 5  ;;  %v3882_v38 = vcombine.low %v3716_v27, %v5148_v12 }
  0xef   : > { %v5166_v21 = vpop.permute.xlu0 %2600  ;;  %v2845_v49 = vsel %vm2833_vm7, %v2802_v25, %v5058_v22  ;;  %2518 = vrot.lane.b32.xlu1 %v3867_v36, %s4112_s22  ;;  %v1759_v15 = vor.u32 %v1758_v61, %v1755_v44  ;;  %v1762_v6 = vshll.u32 %v5136_v4, 16  ;;  %v1768_v57 = vrot.slane %v1766_v30, 4 }
  0xf0   : > { %v1772_v14 = vshll.u32 %v5164_v35, 16  ;;  %2516 = vrot.lane.b32.xlu0 %v3866_v32, %s4112_s22  ;;  %v1735_v50 = vor.u32 %v1734_v39, %v1731_v42  ;;  %v1738_v56 = vshll.u32 %v5148_v12, 16  ;;  %v1744_v40 = vrot.slane %v1742_v62, 4  ;;  %v242_v42 = vld [vmem:[%s4158_s20 + $0x9c] sm:$0xf] }
  0xf1   : > { %v1748_v22 = vshll.u32 %v5170_v24, 16  ;;  %v2843_v51 = vsel %vm2833_vm7, %v2799_v20, %v5048_v33  ;;  %v1760_v8 = vrot.slane %v1759_v15, 4  ;;  %v1764_v43 = vrot.slane %v1762_v6, 5  ;;  %v243_v39 = vld [vmem:[%s4158_s20 + $0xa0] sm:$0xf] }
  0xf2   : > { %v5178_v23 = vpop.permute.xlu1 %2682  ;;  %v1774_v47 = vrot.slane %v1772_v14, 5  ;;  %v1736_v13 = vrot.slane %v1735_v50, 4  ;;  %v1740_v10 = vrot.slane %v1738_v56, 5  ;;  %v2878_v29 = vsel %vm2866_vm8, %v2845_v49, %v5082_v59 }
  0xf3   : > { %v5184_v28 = vpop.permute.xlu0 %2680  ;;  %v1750_v7 = vrot.slane %v1748_v22, 5  ;;  %2614 = vrot.lane.b32.xlu1 %v3883_v1, %s4116_s26  ;;  %v1769_v18 = vor.u32 %v1768_v57, %v1764_v43  ;;  %v2876_v33 = vsel %vm2866_vm8, %v2843_v51, %v5084_v0  ;;  %v556_v26 = vshrl.u32 %v240_v2, 16  ;;  %v5222_v57 = vld [vmem:[%s4158_s20 + $0xa4] sm:$0x1] }
  0xf4   : > { %v559_v53 = vshll.u32 %v240_v2, 16  ;;  %2612 = vrot.lane.b32.xlu0 %v3882_v38, %s4116_s26  ;;  %v1765_v37 = vsel %vm4226_vm5, %v1760_v8, %v1764_v43  ;;  %v1745_v54 = vor.u32 %v1744_v40, %v1740_v10  ;;  %v565_v20 = vshll.u32 %v5189_v16, 16 }
  0xf5   : > { %v569_v59 = vshrl.u32 %v5189_v16, 16  ;;  %v1770_v41 = vrot.slane %v1769_v18, 4  ;;  %v558_v36 = vrot.slane %v556_v26, 4  ;;  %v575_v0 = vshll.u32 %v5194_v48, 16 }
  0xf6   : > { %v561_v63 = vrot.slane %v559_v53, 5  ;;  %v1741_v25 = vsel %vm4226_vm5, %v1736_v13, %v1740_v10  ;;  %v1746_v55 = vrot.slane %v1745_v54, 4  ;;  %v567_v11 = vrot.slane %v565_v20, 5  ;;  %v3755_v10 = vld [vmem:[%s4158_s20 + $0x9c] sm:$0xe] }
  0xf7   : > { %v5205_v27 = vpop.permute.xlu0 %2760  ;;  %v571_v30 = vrot.slane %v569_v59, 4  ;;  %v1775_v52 = vsel %vm4226_vm5, %v1770_v41, %v1774_v47  ;;  %v577_v60 = vrot.slane %v575_v0, 5  ;;  %v3770_v62 = vrot.slane %v3754_v45, 9  ;;  %v664_v53 = vld [vmem:[%s4158_s20 + $0x9c] sm:$0xe] }
  0xf8   : > { %v5208_v46 = vpop.permute.xlu1 %2172  ;;  %v562_v31 = vor.u32 %v561_v63, %v558_v36  ;;  %v3899_v32 = vcombine.low %v1765_v37, %v1775_v52  ;;  %v1751_v44 = vsel %vm4226_vm5, %v1746_v55, %v1750_v7  ;;  %v2008_v1 = vrot.slane %v5148_v12, 5 }
  0xf9   : > { %v572_v61 = vor.u32 %v571_v30, %v567_v11  ;;  %v3898_v38 = vcombine.low %v1741_v25, %v1751_v44  ;;  %v807_v15 = vrot.slane %v5194_v48, 5  ;;  %v2011_v6 = vrot.slane %v5170_v24, 5  ;;  %v663_v25 = vld [vmem:[%s4158_s20 + $0x90] sm:$0xe] }
  0xfa   : > { %v563_v49 = vrot.slane %v562_v31, 4  ;;  %2694 = vrot.lane.b32.xlu1 %v3899_v32, %s4117_s27  ;;  %v2009_v50 = vsel %vm4182_vm2, %v3770_v62, %v2008_v1  ;;  %v2010_v56 = vrot.slane %v2008_v1, 4  ;;  %v2911_v12 = vsel %vm2899_vm9, %v2878_v29, %v5102_v3 }
  0xfb   : > { %v573_v14 = vrot.slane %v572_v61, 4  ;;  %2692 = vrot.lane.b32.xlu0 %v3898_v38, %s4117_s27  ;;  %v580_v22 = vshrl.u32 %v242_v42, 16  ;;  %v583_v2 = vshll.u32 %v242_v42, 16  ;;  %v589_v51 = vshll.u32 %v243_v39, 16  ;;  %v5263_v61 = vld [vmem:[%s4158_s20 + $0xa8] sm:$0xf] }
  0xfc   : > { %v568_v24 = vsel %vm4226_vm5, %v563_v49, %v567_v11  ;;  %v2012_v47 = vsel %vm4182_vm2, %v2010_v56, %v2011_v6  ;;  %v593_v3 = vshrl.u32 %v243_v39, 16  ;;  %v599_v13 = vshll.u32 %v5222_v57, 16  ;;  %v5272_v38 = vld [vmem:[%s4158_s20 + $0xac] sm:$0xf] }
  0xfd   : > { %v5229_v40 = vpop.permute.xlu0 %2762  ;;  %v578_v43 = vsel %vm4226_vm5, %v573_v14, %v577_v60  ;;  %v3914_v29 = vcombine.low %v2009_v50, %v2012_v47  ;;  %v582_v18 = vrot.slane %v580_v22, 4  ;;  %v585_v26 = vrot.slane %v583_v2, 5  ;;  %v3640_v50 = vld [vmem:[%s4158_s20 + $0x9c] sm:$0xf]  ;;  %v5289_v2 = vld [vmem:[%s4158_s20 + $0xa0] sm:$0xf] }
  0xfe   : > { %v5234_v8 = vpop.permute.xlu1 %2174  ;;  %v3804_v7 = vcombine.low %v568_v24, %v578_v43  ;;  %v2909_v37 = vsel %vm2899_vm9, %v2876_v33, %v5115_v9  ;;  %v591_v54 = vrot.slane %v589_v51, 5  ;;  %v595_v20 = vrot.slane %v593_v3, 4 }
  0xff   : > { %v601_v59 = vrot.slane %v599_v13, 5  ;;  %2772 = vrot.lane.b32.xlu0 %v3914_v29, %s4118_s28  ;;  %v586_v41 = vor.u32 %v585_v26, %v582_v18  ;;  %v3771_v36 = vrot.slane %v3755_v10, 9  ;;  %v2015_v63 = vrot.slane %v5136_v4, 5  ;;  %v5302_v29 = vld [vmem:[%s4158_s20 + $0xb0] sm:$0x1] }
 0x100   : > { %2184 = vrot.lane.b32.xlu1 %v3804_v7, %s4114_s24  ;;  %v2018_v0 = vrot.slane %v5164_v35, 5  ;;  %v596_v9 = vor.u32 %v595_v20, %v591_v54  ;;  %v814_v33 = vrot.slane %v5222_v57, 5  ;;  %v2944_v11 = vsel %vm2932_vm10, %v2911_v12, %v5122_v34 }
 0x101   : > { %v5245_v45 = vpop.permute.xlu0 %2252  ;;  %v3613_v30 = vrot.slane %v664_v53, 9  ;;  %v587_v52 = vrot.slane %v586_v41, 4  ;;  %v2016_v31 = vsel %vm4182_vm2, %v3771_v36, %v2015_v63  ;;  %v2017_v60 = vrot.slane %v2015_v63, 4  ;;  %v5310_v53 = vld [vmem:[%s4158_s20 + $0xa4] sm:$0x1] }
 0x102   : > { %v5252_v55 = vpop.permute.xlu1 %2254  ;;  %v811_v4 = vrot.slane %v243_v39, 5  ;;  %v597_v62 = vrot.slane %v596_v9, 4  ;;  %v2942_v35 = vsel %vm2932_vm10, %v2909_v37, %v5138_v58  ;;  %v3612_v32 = vrot.slane %v663_v25, 9 }
 0x103   : > { %v804_v44 = vrot.slane %v5189_v16, 5  ;;  %v592_v34 = vsel %vm4226_vm5, %v587_v52, %v591_v54  ;;  %v2019_v1 = vsel %vm4182_vm2, %v2017_v60, %v2018_v0  ;;  %v2977_v24 = vsel %vm2965_vm11, %v2944_v11, %v5153_v5 }
 0x104   : > { %v812_v42 = vsel %vm4182_vm2, %v3613_v30, %v811_v4  ;;  %v813_v39 = vrot.slane %v811_v4, 4  ;;  %v602_v16 = vsel %vm4226_vm5, %v597_v62, %v601_v59  ;;  %v3915_v6 = vcombine.low %v2016_v31, %v2019_v1  ;;  %v3677_v30 = vld [vmem:[%s4158_s20 + $0xa8] sm:$0xe] }
 0x105   : > { %v5276_v58 = vpop.permute.xlu0 %2348  ;;  %v805_v57 = vsel %vm4182_vm2, %v3612_v32, %v804_v44  ;;  %v806_v14 = vrot.slane %v804_v44, 4  ;;  %v3805_v56 = vcombine.low %v592_v34, %v602_v16  ;;  %v1192_v22 = vshrl.u32 %v5263_v61, 16  ;;  %v4087_v44 = vld [vmem:[%s4158_s20 + $0x48] sm:$0xf] }
 0x106   : > { %v5274_v49 = vpop.permute.xlu1 %2350  ;;  %v815_v12 = vsel %vm4182_vm2, %v813_v39, %v814_v33  ;;  %2774 = vrot.lane.b32.xlu0 %v3915_v6, %s4118_s28  ;;  %v2975_v43 = vsel %vm2965_vm11, %v2942_v35, %v5166_v21  ;;  %v1195_v47 = vshll.u32 %v5263_v61, 16  ;;  %v1205_v3 = vshrl.u32 %v5272_v38, 16 }
 0x107   : > { %v808_v51 = vsel %vm4182_vm2, %v806_v14, %v807_v15  ;;  %2186 = vrot.lane.b32.xlu1 %v3805_v56, %s4114_s24  ;;  %v3821_v5 = vcombine.low %v812_v42, %v815_v12  ;;  %v1194_v10 = vrot.slane %v1192_v22, 4  ;;  %v1168_v7 = vshrl.u32 %v3640_v50, 16  ;;  %v3676_v42 = vld [vmem:[%s4158_s20 + $0x9c] sm:$0xe] }
 0x108   : > { %v3820_v13 = vcombine.low %v805_v57, %v808_v51  ;;  %v1197_v18 = vrot.slane %v1195_v47, 5  ;;  %v3837_v15 = vcombine.low %v5263_v61, %v5272_v38  ;;  %v1171_v26 = vshll.u32 %v3640_v50, 16  ;;  %v4088_v61 = vld [vmem:[%s4158_s20 + $0x4c] sm:$0xf] }
 0x109   : > { %v1181_v21 = vshrl.u32 %v5289_v2, 16  ;;  %v1170_v37 = vrot.slane %v1168_v7, 4  ;;  %v3836_v54 = vcombine.low %v3640_v50, %v5289_v2  ;;  %v3010_v20 = vsel %vm2998_vm13, %v2977_v24, %v5178_v23 }
 0x10a   : > { %v5304_v48 = vpop.permute.xlu1 %2430  ;;  %v1201_v59 = vshll.u32 %v5272_v38, 16  ;;  %2264 = vrot.lane.b32.xlu0 %v3820_v13, %s4113_s23  ;;  %v1173_v36 = vrot.slane %v1171_v26, 5  ;;  %v1198_v63 = vor.u32 %v1197_v18, %v1194_v10  ;;  %v1207_v0 = vrot.slane %v1205_v3, 4  ;;  %v4089_v18 = vld [vmem:[%s4158_s20 + $0x54] sm:$0xf] }
 0x10b   : > { %v1211_v25 = vshll.u32 %v5302_v29, 16  ;;  %2266 = vrot.lane.b32.xlu1 %v3821_v5, %s4113_s23  ;;  %v1177_v33 = vshll.u32 %v5289_v2, 16  ;;  %v1183_v23 = vrot.slane %v1181_v21, 4  ;;  %v1187_v11 = vshll.u32 %v5310_v53, 16  ;;  %v5362_v21 = vld [vmem:[%s4158_s20 + $0xb8] sm:$0xf] }
 0x10c   : > { %v5316_v41 = vpop.permute.xlu0 %2428  ;;  %v1203_v9 = vrot.slane %v1201_v59, 5  ;;  %v3008_v31 = vsel %vm2998_vm13, %v2975_v43, %v5184_v28  ;;  %v1199_v60 = vrot.slane %v1198_v63, 4  ;;  %v1174_v62 = vor.u32 %v1173_v36, %v1170_v37  ;;  %v5347_v43 = vld [vmem:[%s4158_s20 + $0xb4] sm:$0xf]  ;;  %v3720_v36 = vld [vmem:[%s4158_s20 + $0xa8] sm:$0xf] }
 0x10d   : > { %v1213_v4 = vrot.slane %v1211_v25, 5  ;;  %v1179_v32 = vrot.slane %v1177_v33, 5  ;;  %v3782_v34 = vcombine.low %v4087_v44, %v4088_v61  ;;  %v3041_v1 = vsel %vm3031_vm14, %v3008_v31, %v5205_v27  ;;  %v5373_v63 = vld [vmem:[%s4158_s20 + $0xac] sm:$0xf]  ;;  %v5398_v61 = vld [vmem:[%s4158_s20 + $0xb0] sm:$0x1] }
 0x10e   : > { %v5324_v52 = vpop.permute.xlu1 %2510  ;;  %v1208_v35 = vor.u32 %v1207_v0, %v1203_v9  ;;  %2360 = vrot.lane.b32.xlu0 %v3836_v54, %s4111_s21  ;;  %v1204_v28 = vsel %vm4226_vm5, %v1199_v60, %v1203_v9  ;;  %v1175_v16 = vrot.slane %v1174_v62, 4  ;;  %v1189_v6 = vrot.slane %v1187_v11, 5  ;;  %3975 = vmatprep.mubr.msk.bf16.mxu0 %vm3084_vm15, %v3041_v1 }
 0x10f   : > { %v3693_v57 = vrot.slane %v3677_v30, 9  ;;  %2362 = vrot.lane.b32.xlu1 %v3837_v15, %s4111_s21  ;;  %v1184_v50 = vor.u32 %v1183_v23, %v1179_v32  ;;  %v1420_v27 = vrot.slane %v5272_v38, 5  ;;  %v1423_v56 = vrot.slane %v5302_v29, 5  ;;  %v4090_v15 = vld [vmem:[%s4158_s20 + $0x58] sm:$0xf] }
 0x110   : > { %v5333_v39 = vpop.permute.xlu0 %2508  ;;  %v1209_v14 = vrot.slane %v1208_v35, 4  ;;  %v1180_v12 = vsel %vm4226_vm5, %v1175_v16, %v1179_v32  ;;  %v3692_v24 = vrot.slane %v3676_v42, 9  ;;  %v1413_v22 = vrot.slane %v5289_v2, 5 }
 0x111   : > { %v1416_v51 = vrot.slane %v5310_v53, 5  ;;  %v1185_v3 = vrot.slane %v1184_v50, 4  ;;  %v1421_v38 = vsel %vm4182_vm2, %v3693_v57, %v1420_v27  ;;  %v1422_v5 = vrot.slane %v1420_v27, 4 }
 0x112   : > { %v1214_v47 = vsel %vm4226_vm5, %v1209_v14, %v1213_v4  ;;  %v5353_v13 = vpop.permute.xlu1 %2606  ;;  %v1414_v2 = vsel %vm4182_vm2, %v3692_v24, %v1413_v22  ;;  %v1415_v29 = vrot.slane %v1413_v22, 4  ;;  %v3783_v26 = vcombine.low %v4089_v18, %v4090_v15  ;;  %v5388_v4 = vld [vmem:[%s4158_s20 + $0xbc] sm:$0x1]  ;;  %v5414_v22 = vld [vmem:[%s4158_s20 + $0xac] sm:$0xf] }
 0x113   : > { %v3853_v7 = vcombine.low %v1204_v28, %v1214_v47  ;;  %v1190_v53 = vsel %vm4226_vm5, %v1185_v3, %v1189_v6  ;;  %v1424_v37 = vsel %vm4182_vm2, %v1422_v5, %v1423_v56  ;;  %v3043_v54 = vsel %vm3031_vm14, %v3010_v20, %v5229_v40 }
 0x114   : > { %v5355_v10 = vpop.permute.xlu0 %2604  ;;  %v1801_v59 = vshrl.u32 %v5347_v43, 16  ;;  %v3852_v0 = vcombine.low %v1180_v12, %v1190_v53  ;;  %v2805_v25 = vsel %vm2784_vm6, %v3782_v34, %v5208_v46  ;;  %v3869_v9 = vcombine.low %v1421_v38, %v1424_v37  ;;  %3976 = vmatmul.mubr.msk.bf16.gmra.mxu0 %vm3084_vm15, %v3043_v54 }
 0x115   : > { %2442 = vrot.lane.b32.xlu1 %v3853_v7, %s4115_s25  ;;  %v1417_v33 = vsel %vm4182_vm2, %v1415_v29, %v1416_v51  ;;  %v2808_v23 = vsel %vm2784_vm6, %v3783_v26, %v5234_v8  ;;  %v1804_v20 = vshll.u32 %v5347_v43, 16  ;;  %v1814_v11 = vshrl.u32 %v5362_v21, 16 }
 0x116   : > { %v1803_v40 = vrot.slane %v1801_v59, 4  ;;  %2440 = vrot.lane.b32.xlu0 %v3852_v0, %s4115_s25  ;;  %v3868_v30 = vcombine.low %v1414_v2, %v1417_v33  ;;  %v1777_v31 = vshrl.u32 %v3720_v36, 16  ;;  %v1780_v46 = vshll.u32 %v3720_v36, 16  ;;  %v5420_v2 = vld [vmem:[%s4158_s20 + $0xb0] sm:$0x1] }
 0x117   : > { %v1790_v60 = vshrl.u32 %v5373_v63, 16  ;;  %v1806_v8 = vrot.slane %v1804_v20, 5  ;;  %v3885_v35 = vcombine.low %v5347_v43, %v5362_v21  ;;  %v3884_v32 = vcombine.low %v3720_v36, %v5373_v63  ;;  %v5400_v34 = vpop.permute.xlu1 %2686 }
 0x118   : > { %v5390_v62 = vpop.permute.xlu0 %2684  ;;  %v2849_v44 = vsel %vm2833_vm7, %v2808_v23, %v5252_v55  ;;  %v1779_v1 = vrot.slane %v1777_v31, 4  ;;  %v1782_v42 = vrot.slane %v1780_v46, 5  ;;  %v1810_v28 = vshll.u32 %v5362_v21, 16  ;;  %v5407_v55 = vld [vmem:[%s4158_s20 + $0xa8] sm:$0xf] }
 0x119   : > { %2522 = vrot.lane.b32.xlu1 %v3869_v9, %s4112_s22  ;;  %v1816_v16 = vrot.slane %v1814_v11, 4  ;;  %v1807_v6 = vor.u32 %v1806_v8, %v1803_v40  ;;  %v1820_v57 = vshll.u32 %v5388_v4, 16  ;;  %v1786_v14 = vshll.u32 %v5373_v63, 16 }
 0x11a   : > { %v1792_v50 = vrot.slane %v1790_v60, 4  ;;  %2520 = vrot.lane.b32.xlu0 %v3868_v30, %s4112_s22  ;;  %v2847_v27 = vsel %vm2833_vm7, %v2805_v25, %v5245_v45  ;;  %v1812_v56 = vrot.slane %v1810_v28, 5  ;;  %v1783_v12 = vor.u32 %v1782_v42, %v1779_v1 }
 0x11b   : > { %v1796_v24 = vshll.u32 %v5398_v61, 16  ;;  %v1808_v51 = vrot.slane %v1807_v6, 4  ;;  %v1822_v43 = vrot.slane %v1820_v57, 5  ;;  %v1788_v47 = vrot.slane %v1786_v14, 5 }
 0x11c   : > { %v2882_v3 = vsel %vm2866_vm8, %v2849_v44, %v5274_v49  ;;  %v1817_v38 = vor.u32 %v1816_v16, %v1812_v56  ;;  %v1784_v5 = vrot.slane %v1783_v12, 4  ;;  %v604_v45 = vshrl.u32 %v5407_v55, 16  ;;  %v3756_v49 = vld [vmem:[%s4158_s20 + $0xa8] sm:$0xe]  ;;  %v5451_v16 = vld [vmem:[%s4158_s20 + $0xbc] sm:$0x1] }
 0x11d   : > { %2618 = vrot.lane.b32.xlu1 %v3885_v35, %s4116_s26  ;;  %v1798_v7 = vrot.slane %v1796_v24, 5  ;;  %v1813_v18 = vsel %vm4226_vm5, %v1808_v51, %v1812_v56  ;;  %v1793_v15 = vor.u32 %v1792_v50, %v1788_v47  ;;  %v607_v26 = vshll.u32 %v5407_v55, 16  ;;  %v5430_v37 = vpop.permute.xlu1 %2176  ;;  %v5445_v35 = vld [vmem:[%s4158_s20 + $0xb4] sm:$0xf] }
 0x11e   : > { %v5423_v29 = vpop.permute.xlu0 %2764  ;;  %v613_v53 = vshll.u32 %v5414_v22, 16  ;;  %2616 = vrot.lane.b32.xlu0 %v3884_v32, %s4116_s26  ;;  %v1818_v54 = vrot.slane %v1817_v38, 4  ;;  %v1789_v59 = vsel %vm4226_vm5, %v1784_v5, %v1788_v47  ;;  %v606_v36 = vrot.slane %v604_v45, 4  ;;  %v5448_v32 = vld [vmem:[%s4158_s20 + $0xb8] sm:$0xf] }
 0x11f   : > { %v617_v0 = vshrl.u32 %v5414_v22, 16  ;;  %v1794_v25 = vrot.slane %v1793_v15, 4  ;;  %v609_v9 = vrot.slane %v607_v26, 5  ;;  %v623_v23 = vshll.u32 %v5420_v2, 16  ;;  %v3757_v47 = vld [vmem:[%s4158_s20 + $0xb4] sm:$0xe] }
 0x120   : > { %v615_v33 = vrot.slane %v613_v53, 5  ;;  %v1823_v40 = vsel %vm4226_vm5, %v1818_v54, %v1822_v43  ;;  %v3772_v11 = vrot.slane %v3756_v49, 9  ;;  %v2022_v30 = vrot.slane %v5373_v63, 5  ;;  %v666_v45 = vld [vmem:[%s4158_s20 + $0xb4] sm:$0xe] }
 0x121   : > { %v619_v20 = vrot.slane %v617_v0, 4  ;;  %v3901_v31 = vcombine.low %v1813_v18, %v1823_v40  ;;  %v1799_v46 = vsel %vm4226_vm5, %v1794_v25, %v1798_v7  ;;  %v2880_v60 = vsel %vm2866_vm8, %v2847_v27, %v5276_v58  ;;  %v665_v25 = vld [vmem:[%s4158_s20 + $0xa8] sm:$0xe] }
 0x122   : > { %v610_v8 = vor.u32 %v609_v9, %v606_v36  ;;  %v3900_v44 = vcombine.low %v1789_v59, %v1799_v46  ;;  %v625_v42 = vrot.slane %v623_v23, 5  ;;  %v2024_v28 = vrot.slane %v2022_v30, 4 }
 0x123   : > { %v620_v1 = vor.u32 %v619_v20, %v615_v33  ;;  %v5453_v6 = vpop.permute.xlu0 %2766  ;;  %2698 = vrot.lane.b32.xlu1 %v3901_v31, %s4117_s27  ;;  %v2023_v58 = vsel %vm4182_vm2, %v3772_v11, %v2022_v30  ;;  %v2025_v57 = vrot.slane %v5398_v61, 5  ;;  %v2915_v14 = vsel %vm2899_vm9, %v2882_v3, %v5304_v48 }
 0x124   : > { %v611_v63 = vrot.slane %v610_v8, 4  ;;  %2696 = vrot.lane.b32.xlu0 %v3900_v44, %s4117_s27  ;;  %v628_v56 = vshrl.u32 %v5445_v35, 16  ;;  %v631_v12 = vshll.u32 %v5445_v35, 16  ;;  %v637_v24 = vshll.u32 %v5448_v32, 16 }
 0x125   : > { %v621_v27 = vrot.slane %v620_v1, 4  ;;  %v2026_v61 = vsel %vm4182_vm2, %v2024_v28, %v2025_v57  ;;  %v641_v48 = vshrl.u32 %v5448_v32, 16  ;;  %v647_v43 = vshll.u32 %v5451_v16, 16  ;;  %v5509_v57 = vld [vmem:[%s4158_s20 + $0xc4] sm:$0xf] }
 0x126   : > { %v5461_v50 = vpop.permute.xlu1 %2178  ;;  %v616_v51 = vsel %vm4226_vm5, %v611_v63, %v615_v33  ;;  %v3916_v38 = vcombine.low %v2023_v58, %v2026_v61  ;;  %v630_v5 = vrot.slane %v628_v56, 4  ;;  %v633_v7 = vrot.slane %v631_v12, 5 }
 0x127   : > { %v626_v3 = vsel %vm4226_vm5, %v621_v27, %v625_v42  ;;  %v2913_v15 = vsel %vm2899_vm9, %v2880_v60, %v5316_v41  ;;  %v639_v26 = vrot.slane %v637_v24, 5  ;;  %v643_v53 = vrot.slane %v641_v48, 4  ;;  %v5502_v42 = vld [vmem:[%s4158_s20 + $0xc0] sm:$0xf] }
 0x128   : > { %v3806_v18 = vcombine.low %v616_v51, %v626_v3  ;;  %2776 = vrot.lane.b32.xlu0 %v3916_v38, %s4118_s28  ;;  %v634_v54 = vor.u32 %v633_v7, %v630_v5  ;;  %v3773_v59 = vrot.slane %v3757_v47, 9  ;;  %v2029_v36 = vrot.slane %v5362_v21, 5  ;;  %v5485_v9 = vpop.permute.xlu0 %2256  ;;  %v5527_v3 = vld [vmem:[%s4158_s20 + $0xb8] sm:$0xf] }
 0x129   : > { %v2032_v0 = vrot.slane %v5388_v4, 5  ;;  %v644_v33 = vor.u32 %v643_v53, %v639_v26  ;;  %v649_v41 = vrot.slane %v647_v43, 5  ;;  %v2948_v23 = vsel %vm2932_vm10, %v2915_v14, %v5324_v52  ;;  %v3644_v14 = vld [vmem:[%s4158_s20 + $0xb4] sm:$0xf] }
 0x12a   : > { %v5479_v49 = vpop.permute.xlu1 %2258  ;;  %2188 = vrot.lane.b32.xlu1 %v3806_v18, %s4114_s24  ;;  %v3615_v40 = vrot.slane %v666_v45, 9  ;;  %v635_v20 = vrot.slane %v634_v54, 4  ;;  %v2030_v11 = vsel %vm4182_vm2, %v3773_v59, %v2029_v36  ;;  %v2031_v21 = vrot.slane %v2029_v36, 4 }
 0x12b   : > { %v825_v4 = vrot.slane %v5448_v32, 5  ;;  %v645_v30 = vrot.slane %v644_v33, 4  ;;  %v828_v31 = vrot.slane %v5451_v16, 5  ;;  %v3614_v46 = vrot.slane %v665_v25, 9 }
 0x12c   : > { %v818_v60 = vrot.slane %v5414_v22, 5  ;;  %v640_v8 = vsel %vm4226_vm5, %v635_v20, %v639_v26  ;;  %v2033_v52 = vsel %vm4182_vm2, %v2031_v21, %v2032_v0  ;;  %v2946_v16 = vsel %vm2932_vm10, %v2913_v15, %v5333_v39  ;;  %v5519_v61 = vpop.permute.xlu0 %2352  ;;  %v3663_v26 = vld [vmem:[%s4158_s20 + $0xc8] sm:$0x1]  ;;  %v5541_v0 = vld [vmem:[%s4158_s20 + $0xbc] sm:$0x1] }
 0x12d   : > { %v826_v44 = vsel %vm4182_vm2, %v3615_v40, %v825_v4  ;;  %v827_v1 = vrot.slane %v825_v4, 4  ;;  %v650_v28 = vsel %vm4226_vm5, %v645_v30, %v649_v41  ;;  %v3917_v63 = vcombine.low %v2030_v11, %v2033_v52 }
 0x12e   : > { %v820_v58 = vrot.slane %v818_v60, 4  ;;  %v5512_v27 = vpop.permute.xlu1 %2354  ;;  %v3807_v56 = vcombine.low %v640_v8, %v650_v28  ;;  %v819_v24 = vsel %vm4182_vm2, %v3614_v46, %v818_v60  ;;  %v821_v51 = vrot.slane %v5420_v2, 5  ;;  %v3679_v60 = vld [vmem:[%s4158_s20 + $0xc0] sm:$0xe] }
 0x12f   : > { %v829_v12 = vsel %vm4182_vm2, %v827_v1, %v828_v31  ;;  %2778 = vrot.lane.b32.xlu0 %v3917_v63, %s4118_s28  ;;  %v2981_v48 = vsel %vm2965_vm11, %v2948_v23, %v5353_v13  ;;  %v1240_v43 = vshrl.u32 %v5502_v42, 16  ;;  %v1243_v47 = vshll.u32 %v5502_v42, 16  ;;  %v3678_v1 = vld [vmem:[%s4158_s20 + $0xb4] sm:$0xe] }
 0x130   : > { %v3823_v39 = vcombine.low %v826_v44, %v829_v12  ;;  %2190 = vrot.lane.b32.xlu1 %v3807_v56, %s4114_s24  ;;  %v822_v2 = vsel %vm4182_vm2, %v820_v58, %v821_v51  ;;  %v2979_v38 = vsel %vm2965_vm11, %v2946_v16, %v5355_v10  ;;  %v1253_v5 = vshrl.u32 %v5509_v57, 16  ;;  %v4091_v16 = vld [vmem:[%s4158_s20 + $0x60] sm:$0xf]  ;;  %v4092_v58 = vld [vmem:[%s4158_s20 + $0x64] sm:$0xf] }
 0x131   : > { %v1216_v7 = vshrl.u32 %v3644_v14, 16  ;;  %v3822_v45 = vcombine.low %v819_v24, %v822_v2  ;;  %v1242_v13 = vrot.slane %v1240_v43, 4  ;;  %v1245_v18 = vrot.slane %v1243_v47, 5 }
 0x132   : > { %v1219_v15 = vshll.u32 %v3644_v14, 16  ;;  %v3839_v53 = vcombine.low %v5502_v42, %v5509_v57  ;;  %v1229_v59 = vshrl.u32 %v5527_v3, 16  ;;  %v3838_v36 = vcombine.low %v3644_v14, %v5527_v3 }
 0x133   : > { %v1218_v54 = vrot.slane %v1216_v7, 4  ;;  %2268 = vrot.lane.b32.xlu0 %v3822_v45, %s4113_s23  ;;  %v3012_v25 = vsel %vm2998_vm13, %v2979_v38, %v5390_v62  ;;  %v1246_v33 = vor.u32 %v1245_v18, %v1242_v13  ;;  %v1249_v41 = vshll.u32 %v5509_v57, 16 }
 0x134   : > { %v1221_v10 = vrot.slane %v1219_v15, 5  ;;  %v5547_v23 = vpop.permute.xlu1 %2434  ;;  %2270 = vrot.lane.b32.xlu1 %v3823_v39, %s4113_s23  ;;  %v1255_v40 = vrot.slane %v1253_v5, 4  ;;  %v1259_v20 = vshll.u32 %v3663_v26, 16  ;;  %v1225_v11 = vshll.u32 %v5527_v3, 16  ;;  %v3726_v15 = vld [vmem:[%s4158_s20 + $0xcc] sm:$0xf] }
 0x135   : > { %v1231_v21 = vrot.slane %v1229_v59, 4  ;;  %v5551_v4 = vpop.permute.xlu0 %2432  ;;  %v1247_v30 = vrot.slane %v1246_v33, 4  ;;  %v1251_v31 = vrot.slane %v1249_v41, 5  ;;  %v1235_v46 = vshll.u32 %v5541_v0, 16  ;;  %v4093_v59 = vld [vmem:[%s4158_s20 + $0x6c] sm:$0xf] }
 0x136   : > { %v1222_v62 = vor.u32 %v1221_v10, %v1218_v54  ;;  %v3014_v8 = vsel %vm2998_vm13, %v2981_v48, %v5400_v34  ;;  %v1227_v52 = vrot.slane %v1225_v11, 5  ;;  %v3045_v44 = vsel %vm3031_vm14, %v3012_v25, %v5423_v29  ;;  %v3724_v25 = vld [vmem:[%s4158_s20 + $0xc0] sm:$0xf]  ;;  %v5594_v33 = vld [vmem:[%s4158_s20 + $0xc4] sm:$0xf] }
 0x137   : > { %2364 = vrot.lane.b32.xlu0 %v3838_v36, %s4111_s21  ;;  %v1256_v42 = vor.u32 %v1255_v40, %v1251_v31  ;;  %v1261_v28 = vrot.slane %v1259_v20, 5  ;;  %v3784_v14 = vcombine.low %v4091_v16, %v4092_v58  ;;  %3979 = vmatprep.mubr.msk.bf16.mxu0 %vm3084_vm15, %v3045_v44  ;;  %v1237_v12 = vrot.slane %v1235_v46, 5  ;;  %v4094_v36 = vld [vmem:[%s4158_s20 + $0x70] sm:$0xf] }
 0x138   : > { %v1223_v63 = vrot.slane %v1222_v62, 4  ;;  %v5564_v56 = vpop.permute.xlu1 %2514  ;;  %2366 = vrot.lane.b32.xlu1 %v3839_v53, %s4111_s21  ;;  %v1232_v34 = vor.u32 %v1231_v21, %v1227_v52  ;;  %v3695_v24 = vrot.slane %v3679_v60, 9  ;;  %v1434_v29 = vrot.slane %v5509_v57, 5 }
 0x139   : > { %v5568_v51 = vpop.permute.xlu0 %2512  ;;  %v1252_v39 = vsel %vm4226_vm5, %v1247_v30, %v1251_v31  ;;  %v1257_v48 = vrot.slane %v1256_v42, 4  ;;  %v1437_v43 = vrot.slane %v3663_v26, 5  ;;  %v3694_v47 = vrot.slane %v3678_v1, 9  ;;  %v5584_v26 = vld [vmem:[%s4158_s20 + $0xd0] sm:$0xf] }
 0x13a   : > { %v1228_v2 = vsel %vm4226_vm5, %v1223_v63, %v1227_v52  ;;  %v1233_v38 = vrot.slane %v1232_v34, 4  ;;  %v1436_v5 = vrot.slane %v1434_v29, 4  ;;  %v1427_v7 = vrot.slane %v5527_v3, 5  ;;  %v3743_v52 = vld [vmem:[%s4158_s20 + $0xd4] sm:$0x1] }
 0x13b   : > { %v1262_v57 = vsel %vm4226_vm5, %v1257_v48, %v1261_v28  ;;  %v1435_v45 = vsel %vm4182_vm2, %v3695_v24, %v1434_v29  ;;  %v1430_v13 = vrot.slane %v5541_v0, 5  ;;  %v3047_v18 = vsel %vm3031_vm14, %v3014_v8, %v5453_v6  ;;  %v3742_v63 = vld [vmem:[%s4158_s20 + $0xc8] sm:$0x1] }
 0x13c   : > { %v3855_v53 = vcombine.low %v1252_v39, %v1262_v57  ;;  %v1238_v54 = vsel %vm4226_vm5, %v1233_v38, %v1237_v12  ;;  %v1438_v3 = vsel %vm4182_vm2, %v1436_v5, %v1437_v43  ;;  %v3785_v10 = vcombine.low %v4093_v59, %v4094_v36  ;;  %3980 = vmatmul.mubr.msk.bf16.gmra.mxu0 %vm3084_vm15, %v3047_v18  ;;  %v5601_v20 = vpop.permute.xlu1 %2610  ;;  %v3758_v18 = vld [vmem:[%s4158_s20 + $0xc0] sm:$0xe] }
 0x13d   : > { %v3854_v0 = vcombine.low %v1228_v2, %v1238_v54  ;;  %v2811_v6 = vsel %vm2784_vm6, %v3784_v14, %v5430_v37  ;;  %v1428_v41 = vsel %vm4182_vm2, %v3694_v47, %v1427_v7  ;;  %v1429_v40 = vrot.slane %v1427_v7, 4  ;;  %v5603_v11 = vpop.permute.xlu0 %2608  ;;  %v3759_v2 = vld [vmem:[%s4158_s20 + $0xcc] sm:$0xe] }
 0x13e   : > { %2446 = vrot.lane.b32.xlu1 %v3855_v53, %s4115_s25  ;;  %v3871_v21 = vcombine.low %v1435_v45, %v1438_v3  ;;  %v1849_v30 = vshrl.u32 %v3726_v15, 16  ;;  %v1852_v31 = vshll.u32 %v3726_v15, 16  ;;  %v1862_v62 = vshrl.u32 %v5584_v26, 16 }
 0x13f   : > { %2444 = vrot.lane.b32.xlu0 %v3854_v0, %s4115_s25  ;;  %v1431_v37 = vsel %vm4182_vm2, %v1429_v40, %v1430_v13  ;;  %v1825_v46 = vshrl.u32 %v3724_v25, 16  ;;  %v1828_v60 = vshll.u32 %v3724_v25, 16  ;;  %v1838_v8 = vshrl.u32 %v5594_v33, 16 }
 0x140   : > { %v3870_v44 = vcombine.low %v1428_v41, %v1431_v37  ;;  %v2814_v1 = vsel %vm2784_vm6, %v3785_v10, %v5461_v50  ;;  %v1851_v42 = vrot.slane %v1849_v30, 4  ;;  %v1854_v28 = vrot.slane %v1852_v31, 5 }
 0x141   : > { %v3887_v16 = vcombine.low %v3726_v15, %v5584_v26  ;;  %v1827_v58 = vrot.slane %v1825_v46, 4  ;;  %v1830_v14 = vrot.slane %v1828_v60, 5  ;;  %v3886_v34 = vcombine.low %v3724_v25, %v5594_v33 }
 0x142   : > { %2526 = vrot.lane.b32.xlu1 %v3871_v21, %s4112_s22  ;;  %v1855_v12 = vor.u32 %v1854_v28, %v1851_v42  ;;  %v1858_v24 = vshll.u32 %v5584_v26, 16  ;;  %v1864_v29 = vrot.slane %v1862_v62, 4  ;;  %v1868_v39 = vshll.u32 %v3743_v52, 16  ;;  %v2691_v38 = vpop.permute.xlu1 %2690 }
 0x143   : > { %2524 = vrot.lane.b32.xlu0 %v3870_v44, %s4112_s22  ;;  %v1831_v50 = vor.u32 %v1830_v14, %v1827_v58  ;;  %v1834_v48 = vshll.u32 %v5594_v33, 16  ;;  %v1840_v43 = vrot.slane %v1838_v8, 4  ;;  %v1844_v47 = vshll.u32 %v3742_v63, 16  ;;  %v2689_v5 = vpop.permute.xlu0 %2688 }
 0x144   : > { %v2853_v7 = vsel %vm2833_vm7, %v2814_v1, %v5479_v49  ;;  %v2851_v57 = vsel %vm2833_vm7, %v2811_v6, %v5485_v9  ;;  %v1856_v45 = vrot.slane %v1855_v12, 4  ;;  %v1860_v13 = vrot.slane %v1858_v24, 5 }
 0x145   : > { %v1870_v15 = vrot.slane %v1868_v39, 5  ;;  %v1832_v53 = vrot.slane %v1831_v50, 4  ;;  %v1836_v54 = vrot.slane %v1834_v48, 5  ;;  %v2886_v3 = vsel %vm2866_vm8, %v2853_v7, %v5512_v27  ;;  %v4096_v7 = vld [vmem:[%s4158_s20 + $0x7c] sm:$0xf] }
 0x146   : > { %2622 = vrot.lane.b32.xlu1 %v3887_v16, %s4116_s26  ;;  %v1865_v59 = vor.u32 %v1864_v29, %v1860_v13  ;;  %v1846_v36 = vrot.slane %v1844_v47, 5  ;;  %v3775_v10 = vrot.slane %v3759_v2, 9  ;;  %v2043_v25 = vrot.slane %v5584_v26, 5 }
 0x147   : > { %2620 = vrot.lane.b32.xlu0 %v3886_v34, %s4116_s26  ;;  %v1841_v49 = vor.u32 %v1840_v43, %v1836_v54  ;;  %v2884_v9 = vsel %vm2866_vm8, %v2851_v57, %v5519_v61  ;;  %v2046_v0 = vrot.slane %v3743_v52, 5  ;;  %v3774_v6 = vrot.slane %v3758_v18, 9  ;;  %v2769_v30 = vpop.permute.xlu0 %2768 }
 0x148   : > { %v1861_v41 = vsel %vm4226_vm5, %v1856_v45, %v1860_v13  ;;  %v1866_v40 = vrot.slane %v1865_v59, 4  ;;  %v2045_v27 = vrot.slane %v2043_v25, 4  ;;  %v2036_v21 = vrot.slane %v5594_v33, 5  ;;  %v4097_v59 = vld [vmem:[%s4158_s20 + $0x84] sm:$0xf] }
 0x149   : > { %v1837_v31 = vsel %vm4226_vm5, %v1832_v53, %v1836_v54  ;;  %v1842_v26 = vrot.slane %v1841_v49, 4  ;;  %v2044_v62 = vsel %vm4182_vm2, %v3775_v10, %v2043_v25  ;;  %v2039_v37 = vrot.slane %v3742_v63, 5  ;;  %v2181_v46 = vpop.permute.xlu1 %2180 }
 0x14a   : > { %v1871_v61 = vsel %vm4226_vm5, %v1866_v40, %v1870_v15  ;;  %v2047_v60 = vsel %vm4182_vm2, %v2045_v27, %v2046_v0  ;;  %v2038_v8 = vrot.slane %v2036_v21, 4  ;;  %v2919_v33 = vsel %vm2899_vm9, %v2886_v3, %v5547_v23 }
 0x14b   : > { %v3903_v52 = vcombine.low %v1861_v41, %v1871_v61  ;;  %v1847_v44 = vsel %vm4226_vm5, %v1842_v26, %v1846_v36  ;;  %v2037_v1 = vsel %vm4182_vm2, %v3774_v6, %v2036_v21  ;;  %v2917_v42 = vsel %vm2899_vm9, %v2884_v9, %v5551_v4  ;;  %v4098_v36 = vld [vmem:[%s4158_s20 + $0x88] sm:$0xf] }
 0x14c   : > { %v3902_v28 = vcombine.low %v1837_v31, %v1847_v44  ;;  %v2040_v63 = vsel %vm4182_vm2, %v2038_v8, %v2039_v37  ;;  %v2952_v16 = vsel %vm2932_vm10, %v2919_v33, %v5564_v56  ;;  %v2950_v23 = vsel %vm2932_vm10, %v2917_v42, %v5568_v51 }
 0x14d   : > { %2702 = vrot.lane.b32.xlu1 %v3903_v52, %s4117_s27  ;;  %v3919_v19 = vcombine.low %v2044_v62, %v2047_v60  ;;  %v2985_v58 = vsel %vm2965_vm11, %v2952_v16, %v5601_v20  ;;  %v2983_v14 = vsel %vm2965_vm11, %v2950_v23, %v5603_v11  ;;  %v3918_v4 = vcombine.low %v2037_v1, %v2040_v63 }
 0x14e   : > { %2700 = vrot.lane.b32.xlu0 %v3902_v28, %s4117_s27  ;;  %v3018_v17 = vsel %vm2998_vm13, %v2985_v58, %v2691_v38  ;;  %v3016_v34 = vsel %vm2998_vm13, %v2983_v14, %v2689_v5  ;;  %v2771_v56 = vpop.permute.xlu0 %2770  ;;  %v3790_v20 = vcombine.low %v5407_v55, %v5414_v22  ;;  %v3791_v11 = vcombine.low %v5445_v35, %v5448_v32  ;;  %v4095_v5 = vld [vmem:[%s4158_s20 + $0x78] sm:$0xf] }
 0x14f   : > { %v3049_v12 = vsel %vm3031_vm14, %v3016_v34, %v2769_v30  ;;  %v2183_v51 = vpop.permute.xlu1 %2182  ;;  %v3051_v24 = vsel %vm3031_vm14, %v3018_v17, %v2771_v56  ;;  %v3786_v57 = vcombine.low %v4095_v5, %v4096_v7  ;;  %v3787_v10 = vcombine.low %v4097_v59, %v4098_v36  ;;  %v4099_v7 = vld [vmem:[%s4158_s20 + $0x90] sm:$0xf] }
 0x150   : > { %3983 = vmatprep.mubr.msk.bf16.mxu1 %vm3084_vm15, %v3049_v12 }
 0x151   : > { %2782 = vrot.lane.b32.xlu1 %v3919_v19, %s4118_s28  ;;  %3984 = vmatmul.mubr.msk.bf16.vlgmr.msra.gmra.mxu1 %vm3084_vm15, %v3051_v24  ;;  %v2817_v18 = vsel %vm2784_vm6, %v3786_v57, %v2181_v46  ;;  %v2820_v41 = vsel %vm2784_vm6, %v3787_v10, %v2183_v51  ;;  %v4100_v57 = vld [vmem:[%s4158_s20 + $0x94] sm:$0xf]  ;;  %v4101_v10 = vld [vmem:[%s4158_s20 + $0x9c] sm:$0xf] }
 0x152   : > { %2780 = vrot.lane.b32.xlu0 %v3918_v4, %s4118_s28  ;;  %v2261_v29 = vpop.permute.xlu0 %2260 }
 0x153   : > { %v2263_v39 = vpop.permute.xlu1 %2262  ;;  %v2855_v15 = vsel %vm2833_vm7, %v2817_v18, %v2261_v29 }
 0x154   : > { %v2857_v27 = vsel %vm2833_vm7, %v2820_v41, %v2263_v39 }
 0x156   : > { %v2357_v48 = vpop.permute.xlu0 %2356 }
 0x157   : > { %v2359_v50 = vpop.permute.xlu1 %2358  ;;  %v2888_v53 = vsel %vm2866_vm8, %v2855_v15, %v2357_v48 }
 0x158   : > { %v2890_v30 = vsel %vm2866_vm8, %v2857_v27, %v2359_v50 }
 0x15d   : > { %v2439_v43 = vpop.permute.xlu1 %2438 }
 0x15e   : > { %v2437_v47 = vpop.permute.xlu0 %2436  ;;  %v2923_v31 = vsel %vm2899_vm9, %v2890_v30, %v2439_v43 }
 0x15f   : > { %v2921_v25 = vsel %vm2899_vm9, %v2888_v53, %v2437_v47 }
 0x161   : > { %v2519_v2 = vpop.permute.xlu1 %2518 }
 0x162   : > { %v2517_v38 = vpop.permute.xlu0 %2516  ;;  %v2956_v26 = vsel %vm2932_vm10, %v2923_v31, %v2519_v2 }
 0x163   : > { %v2954_v49 = vsel %vm2932_vm10, %v2921_v25, %v2517_v38  ;;  %v4102_v25 = vld [vmem:[%s4158_s20 + $0xa0] sm:$0xf]  ;;  %s214_s20 = scalar_lea.vmem %s5894_s4, %s5900_s16 }
 0x165   : > { %v2615_v45 = vpop.permute.xlu1 %2614 }
 0x166   : > { %v2613_v13 = vpop.permute.xlu0 %2612  ;;  %v2989_v62 = vsel %vm2965_vm11, %v2956_v26, %v2615_v45  ;;  %v3788_v45 = vcombine.low %v4099_v7, %v4100_v57 }
 0x167   : > { %v2987_v9 = vsel %vm2965_vm11, %v2954_v49, %v2613_v13  ;;  %v3789_v49 = vcombine.low %v4101_v10, %v4102_v25 }
 0x16c   : > { %v2695_v54 = vpop.permute.xlu1 %2694 }
 0x16d   : > { %v2693_v3 = vpop.permute.xlu0 %2692  ;;  %v3022_v37 = vsel %vm2998_vm13, %v2989_v62, %v2695_v54 }
 0x16e   : > { %v3020_v0 = vsel %vm2998_vm13, %v2987_v9, %v2693_v3 }
 0x171   : > { %v2773_v6 = vpop.permute.xlu0 %2772 }
 0x172   : > { %v3053_v40 = vsel %vm3031_vm14, %v3020_v0, %v2773_v6  ;;  %v2185_v21 = vpop.permute.xlu1 %2184 }
 0x173   : > { %3987 = vmatprep.mubr.msk.bf16.mxu1 %vm3084_vm15, %v3053_v40  ;;  %v2823_v53 = vsel %vm2784_vm6, %v3788_v45, %v2185_v21 }
 0x178   : > { %v2775_v46 = vpop.permute.xlu0 %2774 }
 0x179   : > { %v2187_v61 = vpop.permute.xlu1 %2186  ;;  %v3055_v60 = vsel %vm3031_vm14, %v3022_v37, %v2775_v46 }
 0x17a   : > { %3988 = vmatmul.mubr.msk.bf16.gmra.mxu1 %vm3084_vm15, %v3055_v60  ;;  %v2826_v27 = vsel %vm2784_vm6, %v3789_v49, %v2187_v61 }
 0x17c   : > { %v2265_v8 = vpop.permute.xlu0 %2264 }
 0x17d   : > { %v2267_v33 = vpop.permute.xlu1 %2266  ;;  %v2859_v54 = vsel %vm2833_vm7, %v2823_v53, %v2265_v8 }
 0x17e   : > { %v2861_v30 = vsel %vm2833_vm7, %v2826_v27, %v2267_v33 }
 0x180   : > { %v2361_v44 = vpop.permute.xlu0 %2360 }
 0x181   : > { %v2363_v52 = vpop.permute.xlu1 %2362  ;;  %v2892_v3 = vsel %vm2866_vm8, %v2859_v54, %v2361_v44 }
 0x182   : > { %v3969_v1 = vpop.f32.mrf.mxu0  ;;  %v2894_v26 = vsel %vm2866_vm8, %v2861_v30, %v2363_v52 }
 0x183   : > { %3284 = vst.msk [vmem:[%s5703_s12 + $0x10] sm:$0xff] %vm2784_vm6, %v3969_v1  ;;  %v3387_v58 = vmul.f32 %v3969_v1, %v3969_v1  ;;  %v3317_v12 = vsel %vm2784_vm6, %v3969_v1, 0.0 }
 0x184   : > { %v3155_v42 = vpop.f32.mrf.mxu0 }
 0x185   : > { %3282 = vst.msk [vmem:[%s5703_s12] sm:$0xff] %vm2784_vm6, %v3155_v42  ;;  %v3385_v16 = vmul.f32 %v3155_v42, %v3155_v42  ;;  %v3314_v14 = vsel %vm2784_vm6, %v3155_v42, 0.0  ;;  %v3420_v43 = vsel %vm2784_vm6, %v3387_v58, 0.0 }
 0x186   : > { %v3970_v63 = vpop.f32.mrf.mxu0 }
 0x187   : > { %v2443_v28 = vpop.permute.xlu1 %2442  ;;  %3285 = vst.msk [vmem:[%s5703_s12 + $0x18] sm:$0xff] %vm2784_vm6, %v3970_v63  ;;  %v3417_v51 = vsel %vm2784_vm6, %v3385_v16, 0.0  ;;  %v3388_v24 = vmul.f32 %v3970_v63, %v3970_v63  ;;  %v3319_v47 = vsel %vm2784_vm6, %v3970_v63, 0.0 }
 0x188   : > { %v2441_v23 = vpop.permute.xlu0 %2440  ;;  %v3158_v19 = vpop.f32.mrf.mxu0  ;;  %v2927_v62 = vsel %vm2899_vm9, %v2894_v26, %v2443_v28 }
 0x189   : > { %3283 = vst.msk [vmem:[%s5703_s12 + $0x8] sm:$0xff] %vm2784_vm6, %v3158_v19  ;;  %v3315_v4 = vsel %vm2784_vm6, %v3158_v19, 0.0  ;;  %v3386_v17 = vmul.f32 %v3158_v19, %v3158_v19  ;;  %v3422_v5 = vsel %vm2784_vm6, %v3388_v24, 0.0  ;;  %v2925_v9 = vsel %vm2899_vm9, %v2892_v3, %v2441_v23 }
 0x18a   : > { %v3316_v56 = vadd.f32 %v3315_v4, %v3314_v14 }
 0x18b   : > { %v2523_v34 = vpop.permute.xlu1 %2522  ;;  %v3418_v29 = vsel %vm2784_vm6, %v3386_v17, 0.0 }
 0x18c   : > { %v2521_v39 = vpop.permute.xlu0 %2520  ;;  %v3318_v50 = vadd.f32 %v3317_v12, %v3316_v56  ;;  %v3419_v48 = vadd.f32 %v3418_v29, %v3417_v51  ;;  %v2960_v37 = vsel %vm2932_vm10, %v2927_v62, %v2523_v34 }
 0x18d   : > { %v2958_v0 = vsel %vm2932_vm10, %v2925_v9, %v2521_v39 }
 0x18e   : > { %v3421_v2 = vadd.f32 %v3420_v43, %v3419_v48  ;;  %v3320_v38 = vadd.f32 %v3319_v47, %v3318_v50 }
 0x18f   : > { %v2619_v13 = vpop.permute.xlu1 %2618 }
 0x190   : > { %v2617_v18 = vpop.permute.xlu0 %2616  ;;  %v3423_v15 = vadd.f32 %v3422_v5, %v3421_v2  ;;  %v2993_v46 = vsel %vm2965_vm11, %v2960_v37, %v2619_v13 }
 0x191   : > { %v2991_v6 = vsel %vm2965_vm11, %v2958_v0, %v2617_v18 }
 0x195   : > { %v2699_v59 = vpop.permute.xlu1 %2698 }
 0x196   : > { %v2697_v36 = vpop.permute.xlu0 %2696  ;;  %v3026_v60 = vsel %vm2998_vm13, %v2993_v46, %v2699_v59 }
 0x197   : > { %v3024_v41 = vsel %vm2998_vm13, %v2991_v6, %v2697_v36 }
 0x19a   : > { %v2777_v40 = vpop.permute.xlu0 %2776 }
 0x19b   : > { %v3057_v21 = vsel %vm3031_vm14, %v3024_v41, %v2777_v40 }
 0x19c   : > { %v2189_v31 = vpop.permute.xlu1 %2188  ;;  %3991 = vmatprep.mubr.msk.bf16.mxu1 %vm3084_vm15, %v3057_v21 }
 0x19d   : > { %v2829_v3 = vsel %vm2784_vm6, %v3790_v20, %v2189_v31 }
 0x1a1   : > { %v2779_v61 = vpop.permute.xlu0 %2778 }
 0x1a2   : > { %v2191_v8 = vpop.permute.xlu1 %2190  ;;  %v3059_v33 = vsel %vm3031_vm14, %v3026_v60, %v2779_v61 }
 0x1a3   : > { %3992 = vmatmul.mubr.msk.bf16.gmra.mxu1 %vm3084_vm15, %v3059_v33  ;;  %v2832_v54 = vsel %vm2784_vm6, %v3791_v11, %v2191_v8 }
 0x1a5   : > { %v2269_v44 = vpop.permute.xlu0 %2268 }
 0x1a6   : > { %v2271_v1 = vpop.permute.xlu1 %2270  ;;  %v2863_v36 = vsel %vm2833_vm7, %v2829_v3, %v2269_v44 }
 0x1a7   : > { %v2865_v59 = vsel %vm2833_vm7, %v2832_v54, %v2271_v1 }
 0x1a9   : > { %v2365_v28 = vpop.permute.xlu0 %2364 }
 0x1aa   : > { %v3973_v42 = vpop.f32.mrf.mxu0  ;;  %v2367_v52 = vpop.permute.xlu1 %2366  ;;  %v2896_v49 = vsel %vm2866_vm8, %v2863_v36, %v2365_v28 }
 0x1ab   : > { %3288 = vst.msk [vmem:[%s5703_s12 + $0x30] sm:$0xff] %vm2784_vm6, %v3973_v42  ;;  %v3391_v56 = vmul.f32 %v3973_v42, %v3973_v42  ;;  %v3325_v39 = vsel %vm2784_vm6, %v3973_v42, 0.0  ;;  %v2898_v10 = vsel %vm2866_vm8, %v2865_v59, %v2367_v52 }
 0x1ac   : > { %v3171_v63 = vpop.f32.mrf.mxu0 }
 0x1ad   : > { %3286 = vst.msk [vmem:[%s5703_s12 + $0x20] sm:$0xff] %vm2784_vm6, %v3171_v63  ;;  %v3321_v16 = vsel %vm2784_vm6, %v3171_v63, 0.0  ;;  %v3389_v23 = vmul.f32 %v3171_v63, %v3171_v63 }
 0x1ae   : > { %v3322_v19 = vadd.f32 %v3321_v16, %v3320_v38  ;;  %v3974_v58 = vpop.f32.mrf.mxu0  ;;  %v3428_v38 = vsel %vm2784_vm6, %v3391_v56, 0.0 }
 0x1af   : > { %v3424_v14 = vsel %vm2784_vm6, %v3389_v23, 0.0  ;;  %3289 = vst.msk [vmem:[%s5703_s12 + $0x38] sm:$0xff] %vm2784_vm6, %v3974_v58  ;;  %v3392_v50 = vmul.f32 %v3974_v58, %v3974_v58  ;;  %v3327_v5 = vsel %vm2784_vm6, %v3974_v58, 0.0 }
 0x1b0   : > { %v3425_v4 = vadd.f32 %v3424_v14, %v3423_v15  ;;  %v3174_v17 = vpop.f32.mrf.mxu0  ;;  %v2447_v34 = vpop.permute.xlu1 %2446 }
 0x1b1   : > { %3287 = vst.msk [vmem:[%s5703_s12 + $0x28] sm:$0xff] %vm2784_vm6, %v3174_v17  ;;  %v3323_v12 = vsel %vm2784_vm6, %v3174_v17, 0.0  ;;  %v3390_v51 = vmul.f32 %v3174_v17, %v3174_v17  ;;  %v2445_v24 = vpop.permute.xlu0 %2444  ;;  %v3430_v13 = vsel %vm2784_vm6, %v3392_v50, 0.0  ;;  %v2931_v9 = vsel %vm2899_vm9, %v2898_v10, %v2447_v34 }
 0x1b2   : > { %v3324_v29 = vadd.f32 %v3323_v12, %v3322_v19  ;;  %v2929_v32 = vsel %vm2899_vm9, %v2896_v49, %v2445_v24 }
 0x1b3   : > { %v3426_v48 = vsel %vm2784_vm6, %v3390_v51, 0.0 }
 0x1b4   : > { %v3326_v43 = vadd.f32 %v3325_v39, %v3324_v29  ;;  %v3427_v47 = vadd.f32 %v3426_v48, %v3425_v4  ;;  %v2527_v2 = vpop.permute.xlu1 %2526 }
 0x1b5   : > { %v2525_v7 = vpop.permute.xlu0 %2524  ;;  %v2964_v55 = vsel %vm2932_vm10, %v2931_v9, %v2527_v2 }
 0x1b6   : > { %v3429_v57 = vadd.f32 %v3428_v38, %v3427_v47  ;;  %v3328_v45 = vadd.f32 %v3327_v5, %v3326_v43  ;;  %v2962_v22 = vsel %vm2932_vm10, %v2929_v32, %v2525_v7 }
 0x1b8   : > { %v3431_v18 = vadd.f32 %v3430_v13, %v3429_v57  ;;  %v2623_v15 = vpop.permute.xlu1 %2622 }
 0x1b9   : > { %v2621_v53 = vpop.permute.xlu0 %2620  ;;  %v2997_v20 = vsel %vm2965_vm11, %v2964_v55, %v2623_v15 }
 0x1ba   : > { %v2995_v11 = vsel %vm2965_vm11, %v2962_v22, %v2621_v53 }
 0x1bf   : > { %v2703_v25 = vpop.permute.xlu1 %2702 }
 0x1c0   : > { %v2701_v35 = vpop.permute.xlu0 %2700  ;;  %v3030_v0 = vsel %vm2998_vm13, %v2997_v20, %v2703_v25 }
 0x1c1   : > { %v3028_v41 = vsel %vm2998_vm13, %v2995_v11, %v2701_v35 }
 0x1c3   : > { %v2783_v6 = vpop.permute.xlu1 %2782 }
 0x1c4   : > { %v3063_v40 = vsel %vm3031_vm14, %v3030_v0, %v2783_v6  ;;  %v2781_v27 = vpop.permute.xlu0 %2780 }
 0x1c5   : > { %v3061_v21 = vsel %vm3031_vm14, %v3028_v41, %v2781_v27 }
 0x1c6   : > { %3995 = vmatprep.mubr.msk.bf16.mxu1 %vm3084_vm15, %v3061_v21 }
 0x1c7   : > { %3996 = vmatmul.mubr.msk.bf16.gmra.mxu1 %vm3084_vm15, %v3063_v40 }
 0x1d4   : > { %v3977_v30 = vpop.f32.mrf.mxu0 }
 0x1d5   : > { %3292 = vst.msk [vmem:[%s5703_s12 + $0x50] sm:$0xff] %vm2784_vm6, %v3977_v30  ;;  %v3395_v33 = vmul.f32 %v3977_v30, %v3977_v30  ;;  %v3333_v52 = vsel %vm2784_vm6, %v3977_v30, 0.0 }
 0x1d6   : > { %v3187_v31 = vpop.f32.mrf.mxu0 }
 0x1d7   : > { %3290 = vst.msk [vmem:[%s5703_s12 + $0x40] sm:$0xff] %vm2784_vm6, %v3187_v31  ;;  %v3329_v26 = vsel %vm2784_vm6, %v3187_v31, 0.0  ;;  %v3393_v62 = vmul.f32 %v3187_v31, %v3187_v31  ;;  %v3436_v19 = vsel %vm2784_vm6, %v3395_v33, 0.0 }
 0x1d8   : > { %v3330_v37 = vadd.f32 %v3329_v26, %v3328_v45  ;;  %v3978_v46 = vpop.f32.mrf.mxu0 }
 0x1d9   : > { %v3432_v60 = vsel %vm2784_vm6, %v3393_v62, 0.0  ;;  %3293 = vst.msk [vmem:[%s5703_s12 + $0x58] sm:$0xff] %vm2784_vm6, %v3978_v46  ;;  %v3396_v28 = vmul.f32 %v3978_v46, %v3978_v46  ;;  %v3335_v58 = vsel %vm2784_vm6, %v3978_v46, 0.0 }
 0x1da   : > { %v3433_v61 = vadd.f32 %v3432_v60, %v3431_v18  ;;  %v3190_v8 = vpop.f32.mrf.mxu0 }
 0x1db   : > { %3291 = vst.msk [vmem:[%s5703_s12 + $0x48] sm:$0xff] %vm2784_vm6, %v3190_v8  ;;  %v3331_v44 = vsel %vm2784_vm6, %v3190_v8, 0.0  ;;  %v3394_v1 = vmul.f32 %v3190_v8, %v3190_v8  ;;  %v3438_v17 = vsel %vm2784_vm6, %v3396_v28, 0.0 }
 0x1dc   : > { %v3332_v42 = vadd.f32 %v3331_v44, %v3330_v37 }
 0x1dd   : > { %v3434_v63 = vsel %vm2784_vm6, %v3394_v1, 0.0 }
 0x1de   : > { %v3334_v16 = vadd.f32 %v3333_v52, %v3332_v42  ;;  %v3435_v23 = vadd.f32 %v3434_v63, %v3433_v61 }
 0x1e0   : > { %v3437_v14 = vadd.f32 %v3436_v19, %v3435_v23  ;;  %v3336_v4 = vadd.f32 %v3335_v58, %v3334_v16 }
 0x1e2   : > { %v3439_v34 = vadd.f32 %v3438_v17, %v3437_v14 }
 0x1fc   : > { %v3981_v56 = vpop.f32.mrf.mxu0 }
 0x1fd   : > { %3296 = vst.msk [vmem:[%s5703_s12 + $0x70] sm:$0xff] %vm2784_vm6, %v3981_v56  ;;  %v3399_v47 = vmul.f32 %v3981_v56, %v3981_v56  ;;  %v3341_v7 = vsel %vm2784_vm6, %v3981_v56, 0.0 }
 0x1fe   : > { %v3203_v12 = vpop.f32.mrf.mxu0 }
 0x1ff   : > { %3294 = vst.msk [vmem:[%s5703_s12 + $0x60] sm:$0xff] %vm2784_vm6, %v3203_v12  ;;  %v3337_v51 = vsel %vm2784_vm6, %v3203_v12, 0.0  ;;  %v3397_v24 = vmul.f32 %v3203_v12, %v3203_v12  ;;  %v3444_v15 = vsel %vm2784_vm6, %v3399_v47, 0.0 }
 0x200   : > { %v3338_v29 = vadd.f32 %v3337_v51, %v3336_v4  ;;  %v3982_v39 = vpop.f32.mrf.mxu0 }
 0x201   : > { %v3440_v50 = vsel %vm2784_vm6, %v3397_v24, 0.0  ;;  %3297 = vst.msk [vmem:[%s5703_s12 + $0x78] sm:$0xff] %vm2784_vm6, %v3982_v39  ;;  %v3400_v57 = vmul.f32 %v3982_v39, %v3982_v39  ;;  %v3343_v53 = vsel %vm2784_vm6, %v3982_v39, 0.0 }
 0x202   : > { %v3441_v48 = vadd.f32 %v3440_v50, %v3439_v34  ;;  %v3206_v43 = vpop.f32.mrf.mxu0 }
 0x203   : > { %3295 = vst.msk [vmem:[%s5703_s12 + $0x68] sm:$0xff] %vm2784_vm6, %v3206_v43  ;;  %v3339_v2 = vsel %vm2784_vm6, %v3206_v43, 0.0  ;;  %v3398_v38 = vmul.f32 %v3206_v43, %v3206_v43  ;;  %v3446_v59 = vsel %vm2784_vm6, %v3400_v57, 0.0 }
 0x204   : > { %v3340_v5 = vadd.f32 %v3339_v2, %v3338_v29 }
 0x205   : > { %v3442_v45 = vsel %vm2784_vm6, %v3398_v38, 0.0 }
 0x206   : > { %v3342_v13 = vadd.f32 %v3341_v7, %v3340_v5  ;;  %v3443_v18 = vadd.f32 %v3442_v45, %v3441_v48 }
 0x208   : > { %v3445_v54 = vadd.f32 %v3444_v15, %v3443_v18  ;;  %v3344_v3 = vadd.f32 %v3343_v53, %v3342_v13 }
 0x20a   : > { %v3447_v36 = vadd.f32 %v3446_v59, %v3445_v54 }
 0x211   : > { %v3985_v10 = vpop.f32.mrf.mxu1 }
 0x212   : > { %3300 = vst.msk [vmem:[%s5703_s12 + $0x90] sm:$0xff] %vm2784_vm6, %v3985_v10  ;;  %v3403_v11 = vmul.f32 %v3985_v10, %v3985_v10  ;;  %v3349_v40 = vsel %vm2784_vm6, %v3985_v10, 0.0 }
 0x213   : > { %v3219_v25 = vpop.f32.mrf.mxu1 }
 0x214   : > { %3298 = vst.msk [vmem:[%s5703_s12 + $0x80] sm:$0xff] %vm2784_vm6, %v3219_v25  ;;  %v3345_v49 = vsel %vm2784_vm6, %v3219_v25, 0.0  ;;  %v3401_v9 = vmul.f32 %v3219_v25, %v3219_v25  ;;  %v3452_v26 = vsel %vm2784_vm6, %v3403_v11, 0.0 }
 0x215   : > { %v3346_v35 = vadd.f32 %v3345_v49, %v3344_v3  ;;  %v3986_v32 = vpop.f32.mrf.mxu1 }
 0x216   : > { %v3448_v55 = vsel %vm2784_vm6, %v3401_v9, 0.0  ;;  %3301 = vst.msk [vmem:[%s5703_s12 + $0x98] sm:$0xff] %vm2784_vm6, %v3986_v32  ;;  %v3404_v27 = vmul.f32 %v3986_v32, %v3986_v32  ;;  %v3351_v62 = vsel %vm2784_vm6, %v3986_v32, 0.0 }
 0x217   : > { %v3449_v22 = vadd.f32 %v3448_v55, %v3447_v36  ;;  %v3222_v20 = vpop.f32.mrf.mxu1 }
 0x218   : > { %3299 = vst.msk [vmem:[%s5703_s12 + $0x88] sm:$0xff] %vm2784_vm6, %v3222_v20  ;;  %v3347_v0 = vsel %vm2784_vm6, %v3222_v20, 0.0  ;;  %v3402_v6 = vmul.f32 %v3222_v20, %v3222_v20  ;;  %v3454_v60 = vsel %vm2784_vm6, %v3404_v27, 0.0 }
 0x219   : > { %v3348_v41 = vadd.f32 %v3347_v0, %v3346_v35 }
 0x21a   : > { %v3450_v21 = vsel %vm2784_vm6, %v3402_v6, 0.0 }
 0x21b   : > { %v3350_v30 = vadd.f32 %v3349_v40, %v3348_v41  ;;  %v3451_v31 = vadd.f32 %v3450_v21, %v3449_v22 }
 0x21d   : > { %v3453_v37 = vadd.f32 %v3452_v26, %v3451_v31  ;;  %v3352_v46 = vadd.f32 %v3351_v62, %v3350_v30 }
 0x21f   : > { %v3455_v61 = vadd.f32 %v3454_v60, %v3453_v37 }
 0x23a   : > { %v3989_v8 = vpop.f32.mrf.mxu1 }
 0x23b   : > { %3304 = vst.msk [vmem:[%s5703_s12 + $0xb0] sm:$0xff] %vm2784_vm6, %v3989_v8  ;;  %v3407_v16 = vmul.f32 %v3989_v8, %v3989_v8  ;;  %v3357_v4 = vsel %vm2784_vm6, %v3989_v8, 0.0 }
 0x23c   : > { %v3235_v33 = vpop.f32.mrf.mxu1 }
 0x23d   : > { %3302 = vst.msk [vmem:[%s5703_s12 + $0xa0] sm:$0xff] %vm2784_vm6, %v3235_v33  ;;  %v3353_v44 = vsel %vm2784_vm6, %v3235_v33, 0.0  ;;  %v3405_v1 = vmul.f32 %v3235_v33, %v3235_v33  ;;  %v3460_v51 = vsel %vm2784_vm6, %v3407_v16, 0.0 }
 0x23e   : > { %v3990_v42 = vpop.f32.mrf.mxu1  ;;  %v3354_v28 = vadd.f32 %v3353_v44, %v3352_v46 }
 0x23f   : > { %v3456_v52 = vsel %vm2784_vm6, %v3405_v1, 0.0  ;;  %3305 = vst.msk [vmem:[%s5703_s12 + $0xb8] sm:$0xff] %vm2784_vm6, %v3990_v42  ;;  %v3408_v17 = vmul.f32 %v3990_v42, %v3990_v42  ;;  %v3359_v24 = vsel %vm2784_vm6, %v3990_v42, 0.0 }
 0x240   : > { %v3238_v63 = vpop.f32.mrf.mxu1  ;;  %v3457_v58 = vadd.f32 %v3456_v52, %v3455_v61 }
 0x241   : > { %3303 = vst.msk [vmem:[%s5703_s12 + $0xa8] sm:$0xff] %vm2784_vm6, %v3238_v63  ;;  %v3355_v23 = vsel %vm2784_vm6, %v3238_v63, 0.0  ;;  %v3406_v19 = vmul.f32 %v3238_v63, %v3238_v63  ;;  %v3462_v50 = vsel %vm2784_vm6, %v3408_v17, 0.0 }
 0x242   : > { %v3356_v14 = vadd.f32 %v3355_v23, %v3354_v28 }
 0x243   : > { %v3458_v34 = vsel %vm2784_vm6, %v3406_v19, 0.0 }
 0x244   : > { %v3358_v56 = vadd.f32 %v3357_v4, %v3356_v14  ;;  %v3459_v12 = vadd.f32 %v3458_v34, %v3457_v58 }
 0x246   : > { %v3461_v29 = vadd.f32 %v3460_v51, %v3459_v12  ;;  %v3360_v39 = vadd.f32 %v3359_v24, %v3358_v56 }
 0x248   : > { %v3463_v48 = vadd.f32 %v3462_v50, %v3461_v29 }
 0x263   : > { %v3993_v43 = vpop.f32.mrf.mxu1 }
 0x264   : > { %3308 = vst.msk [vmem:[%s5703_s12 + $0xd0] sm:$0xff] %vm2784_vm6, %v3993_v43  ;;  %v3411_v3 = vmul.f32 %v3993_v43, %v3993_v43  ;;  %v3365_v36 = vsel %vm2784_vm6, %v3993_v43, 0.0 }
 0x265   : > { %v3251_v47 = vpop.f32.mrf.mxu1 }
 0x266   : > { %3306 = vst.msk [vmem:[%s5703_s12 + $0xc0] sm:$0xff] %vm2784_vm6, %v3251_v47  ;;  %v3409_v5 = vmul.f32 %v3251_v47, %v3251_v47  ;;  %v3361_v7 = vsel %vm2784_vm6, %v3251_v47, 0.0  ;;  %v3468_v49 = vsel %vm2784_vm6, %v3411_v3, 0.0 }
 0x267   : > { %v3994_v2 = vpop.f32.mrf.mxu1  ;;  %v3362_v18 = vadd.f32 %v3361_v7, %v3360_v39 }
 0x268   : > { %3309 = vst.msk [vmem:[%s5703_s12 + $0xd8] sm:$0xff] %vm2784_vm6, %v3994_v2  ;;  %v3464_v45 = vsel %vm2784_vm6, %v3409_v5, 0.0  ;;  %v3412_v9 = vmul.f32 %v3994_v2, %v3994_v2  ;;  %v3367_v55 = vsel %vm2784_vm6, %v3994_v2, 0.0 }
 0x269   : > { %v3254_v38 = vpop.f32.mrf.mxu1  ;;  %v3465_v53 = vadd.f32 %v3464_v45, %v3463_v48 }
 0x26a   : > { %3307 = vst.msk [vmem:[%s5703_s12 + $0xc8] sm:$0xff] %vm2784_vm6, %v3254_v38  ;;  %v3410_v57 = vmul.f32 %v3254_v38, %v3254_v38  ;;  %v3363_v13 = vsel %vm2784_vm6, %v3254_v38, 0.0  ;;  %v3470_v6 = vsel %vm2784_vm6, %v3412_v9, 0.0 }
 0x26b   : > { %v3364_v54 = vadd.f32 %v3363_v13, %v3362_v18 }
 0x26c   : > { %v3466_v15 = vsel %vm2784_vm6, %v3410_v57, 0.0 }
 0x26d   : > { %v3467_v59 = vadd.f32 %v3466_v15, %v3465_v53  ;;  %v3366_v10 = vadd.f32 %v3365_v36, %v3364_v54 }
 0x26f   : > { %v3469_v35 = vadd.f32 %v3468_v49, %v3467_v59  ;;  %v3368_v11 = vadd.f32 %v3367_v55, %v3366_v10 }
 0x271   : > { %v3471_v27 = vadd.f32 %v3470_v6, %v3469_v35 }
 0x287   : > { %v3997_v25 = vpop.f32.mrf.mxu1 }
 0x288   : > { %3312 = vst.msk [vmem:[%s5703_s12 + $0xf0] sm:$0xff] %vm2784_vm6, %v3997_v25  ;;  %v3415_v30 = vmul.f32 %v3997_v25, %v3997_v25  ;;  %v3373_v46 = vsel %vm2784_vm6, %v3997_v25, 0.0 }
 0x289   : > { %v3267_v32 = vpop.f32.mrf.mxu1 }
 0x28a   : > { %3310 = vst.msk [vmem:[%s5703_s12 + $0xe0] sm:$0xff] %vm2784_vm6, %v3267_v32  ;;  %v3369_v22 = vsel %vm2784_vm6, %v3267_v32, 0.0  ;;  %v3413_v20 = vmul.f32 %v3267_v32, %v3267_v32  ;;  %v3476_v44 = vsel %vm2784_vm6, %v3415_v30, 0.0 }
 0x28b   : > { %v3998_v0 = vpop.f32.mrf.mxu1  ;;  %v3370_v40 = vadd.f32 %v3369_v22, %v3368_v11 }
 0x28c   : > { %v3472_v41 = vsel %vm2784_vm6, %v3413_v20, 0.0  ;;  %3313 = vst.msk [vmem:[%s5703_s12 + $0xf8] sm:$0xff] %vm2784_vm6, %v3998_v0  ;;  %v3416_v60 = vmul.f32 %v3998_v0, %v3998_v0  ;;  %v3375_v1 = vsel %vm2784_vm6, %v3998_v0, 0.0 }
 0x28d   : > { %v3270_v21 = vpop.f32.mrf.mxu1  ;;  %v3473_v62 = vadd.f32 %v3472_v41, %v3471_v27 }
 0x28e   : > { %3311 = vst.msk [vmem:[%s5703_s12 + $0xe8] sm:$0xff] %vm2784_vm6, %v3270_v21  ;;  %v3371_v31 = vsel %vm2784_vm6, %v3270_v21, 0.0  ;;  %v3414_v26 = vmul.f32 %v3270_v21, %v3270_v21  ;;  %v3478_v28 = vsel %vm2784_vm6, %v3416_v60, 0.0 }
 0x28f   : > { %v3372_v37 = vadd.f32 %v3371_v31, %v3370_v40 }
 0x290   : > { %v3474_v61 = vsel %vm2784_vm6, %v3414_v26, 0.0 }
 0x291   : > { %v3374_v8 = vadd.f32 %v3373_v46, %v3372_v37  ;;  %v3475_v33 = vadd.f32 %v3474_v61, %v3473_v62 }
 0x293   : > { %v3376_v42 = vadd.f32 %v3375_v1, %v3374_v8  ;;  %v3477_v52 = vadd.f32 %v3476_v44, %v3475_v33 }
 0x295   : > { %v3377_v63 = vrot.slane %v3376_v42, 4  ;;  %v3479_v16 = vadd.f32 %v3478_v28, %v3477_v52 }
 0x297   : > { %v3378_v23 = vadd.f32 %v3377_v63, %v3376_v42  ;;  %v3480_v19 = vrot.slane %v3479_v16, 4 }
 0x299   : > { %v3379_v58 = vrot.slane %v3378_v23, 2  ;;  %v3481_v14 = vadd.f32 %v3480_v19, %v3479_v16 }
 0x29b   : > { %v3380_v4 = vadd.f32 %v3379_v58, %v3378_v23  ;;  %v3482_v17 = vrot.slane %v3481_v14, 2 }
 0x29d   : > { %v3381_v34 = vrot.slane %v3380_v4, 1  ;;  %v3483_v56 = vadd.f32 %v3482_v17, %v3481_v14 }
 0x29f   : > { %v3382_v12 = vadd.f32 %v3381_v34, %v3380_v4  ;;  %v3484_v51 = vrot.slane %v3483_v56, 1 }
 0x2a1   : > { %3384 = vst.msk [vmem:[%s211_s17] sm:$0x1] %vm3383_vm0, %v3382_v12  ;;  %v3485_v24 = vadd.f32 %v3484_v51, %v3483_v56 }
 0x2a3   : > { %3486 = vst.msk [vmem:[%s214_s20] sm:$0x1] %vm3383_vm0, %v3485_v24 }
 0x2a4 PF: > { %s15_s15 = sadd.s32 1, %s4109_s15  }
 0x2a5   : > { %p12_p4 = scmp.ge.s32.totalorder %s15_s15, 4  }
 0x2a7   :  { %14 = sbr.rel (!%p12_p4) target bundleno = 1 (0x1), region = 84 }

</bundles_post_ra>
